<compile_context>
chip_gen: v7x
topology: tpu7x:2x2x1
jax: 0.10.0
libtpu: 0.0.40
codegen_flags: <defaults>
</compile_context>

<pallas_src>
import jax
import jax.numpy as jnp
import numpy as np
from jax.experimental import pallas as pl
from jax.experimental.pallas import tpu as pltpu


def _round_up(a, b):
    return ((a + b - 1) // b) * b


def _ln_convtranspose_kernel(x_ref, gamma_ref, beta_ref, ared_ref, abcast_ref,
                             m_ref, bias_ref, o_ref):
    B = x_ref.shape[0]
    xv = x_ref[...].astype(jnp.float32)                           # (B, D_in)
    # Grouped LayerNorm (one length-L group per input channel).  Per-group mean
    # and E[x^2] via ONE skinny f32 MXU matmul (stacked LHS), biased variance,
    # eps=1e-5 -- exact PyTorch semantics, all in f32 at HIGHEST precision.
    lhs = jnp.concatenate([xv, xv * xv], axis=0)                  # (2B, D_in)
    red = jnp.dot(lhs, ared_ref[...],
                  preferred_element_type=jnp.float32,
                  precision=jax.lax.Precision.HIGHEST)            # (2B, C_in)
    mean_g = red[:B]
    var_g = jnp.maximum(red[B:] - mean_g * mean_g, 0.0)
    inv_g = jax.lax.rsqrt(var_g + 1e-5)
    stats = jnp.concatenate([mean_g, inv_g], axis=0)              # (2B, C_in)
    full = jnp.dot(stats, abcast_ref[...],
                   preferred_element_type=jnp.float32,
                   precision=jax.lax.Precision.HIGHEST)           # (2B, D_in)
    xn = (xv - full[:B]) * full[B:] * gamma_ref[...] + beta_ref[...]
    # Fused transposed convolution: one bf16 MXU matmul, f32 accumulation.
    # (bf16 LHS caps output accuracy at ~3 decimal digits.)
    y = jnp.dot(xn.astype(jnp.bfloat16), m_ref[...],
                preferred_element_type=jnp.float32)               # (B, D_out_pad)
    o_ref[...] = (y + bias_ref[...]).astype(o_ref.dtype)


def build_layernorm_convtranspose1d(gamma, beta, weight, bias, *, stride,
                                    dilation, length, block_batch=512,
                                    out_dtype=None):
    """Returns fn(x: (N, C_in, L)) -> (N, C_out, L_out).  Requires L == C_in.

    gamma/beta: (C_in,) LayerNorm affine; weight: (C_in, C_out, K) (PyTorch
    ConvTranspose1d layout); bias: (C_out,).  All data-independent prep is
    done here, once, not on every call.
    """
    C_in, C_out, K = weight.shape
    L = length
    assert L == C_in, "LayerNorm(in_channels) on NCL input requires L == in_channels"

    padding = (K - 1) * dilation // 2
    output_padding = stride - 1
    L_out = (L - 1) * stride - 2 * padding + dilation * (K - 1) + output_padding + 1
    D_in = C_in * L
    D_out = C_out * L_out
    D_out_pad = _round_up(D_out, 128)     # lane-dense, full-lane output stores

    # ---- one-time, data-independent weight / layout prep ----
    Wnp = np.asarray(weight, np.float32)
    m = np.zeros((D_in, D_out_pad), np.float32)
    for k in range(K):
        for l in range(L):
            t = l * stride - padding + k * dilation
            if 0 <= t < L_out:
                rows = np.arange(C_in) * L + l
                cols = np.arange(C_out) * L_out + t
                m[np.ix_(rows, cols)] += Wnp[:, :, k]
    m_bf16 = jnp.asarray(m, jnp.bfloat16)                         # (D_in, D_out_pad)

    # Skinny LayerNorm reduction / broadcast-back matrices.
    a_reduce_np = np.zeros((D_in, C_in), np.float32)
    a_bcast_np = np.zeros((C_in, D_in), np.float32)
    for ci in range(C_in):
        a_reduce_np[ci * L:(ci + 1) * L, ci] = 1.0 / L
        a_bcast_np[ci, ci * L:(ci + 1) * L] = 1.0
    a_reduce = jnp.asarray(a_reduce_np)
    a_bcast = jnp.asarray(a_bcast_np)

    gamma_flat = jnp.tile(jnp.asarray(gamma, jnp.float32), C_in).reshape(1, D_in)
    beta_flat = jnp.tile(jnp.asarray(beta, jnp.float32), C_in).reshape(1, D_in)
    bias_np = np.zeros((1, D_out_pad), np.float32)
    bias_np[0, :D_out] = np.repeat(np.asarray(bias, np.float32), L_out)
    bias_flat = jnp.asarray(bias_np)

    def _choose_block(N):
        target = min(block_batch, N)
        if N >= 16:
            # keep >= 2 grid blocks so the "parallel" batch axis can be split
            # across both v7x TensorCores
            target = min(target, _round_up(-(-N // 2), 8))
        target = max(8, (target // 8) * 8)
        for cand in range(target, 0, -8):        # prefer B | N: no pad / slice passes
            if N % cand == 0:
                return cand
        return target

    def apply(x):
        N, c_in, l_in = x.shape
        assert c_in == C_in and l_in == L
        odt = jnp.dtype(out_dtype) if out_dtype is not None else x.dtype
        B = _choose_block(N)
        N_pad = _round_up(N, B)
        x_flat = x.reshape(N, D_in)              # free contiguous reshape in HBM
        if N_pad != N:
            x_flat = jnp.pad(x_flat, ((0, N_pad - N), (0, 0)))
        n_blocks = N_pad // B

        def run(single_buffer_consts):
            const_kw = ({"pipeline_mode": pl.Buffered(1)}
                        if single_buffer_consts else {})
            in_specs = [
                pl.BlockSpec((B, D_in), lambda i: (i, 0)),                      # x slab
                pl.BlockSpec((1, D_in), lambda i: (0, 0), **const_kw),          # gamma
                pl.BlockSpec((1, D_in), lambda i: (0, 0), **const_kw),          # beta
                pl.BlockSpec((D_in, C_in), lambda i: (0, 0), **const_kw),       # A_reduce
                pl.BlockSpec((C_in, D_in), lambda i: (0, 0), **const_kw),       # A_bcast
                pl.BlockSpec((D_in, D_out_pad), lambda i: (0, 0), **const_kw),  # fused M
                pl.BlockSpec((1, D_out_pad), lambda i: (0, 0), **const_kw),     # bias
            ]
            const_bufs = 1 if single_buffer_consts else 2
            vmem_est = (2 * B * D_in * 4                                # x slab (2-buf)
                        + 2 * B * D_out_pad * jnp.dtype(odt).itemsize   # out slab (2-buf)
                        + const_bufs * (D_in * D_out_pad * 2            # M (bf16)
                                        + 2 * D_in * C_in * 4           # LN matrices
                                        + 2 * D_in * 4 + D_out_pad * 4)
                        + 8 * B * D_in * 4)                             # f32 temporaries
            vmem_limit = int(min(64 << 20, max(32 << 20, 2 * vmem_est)))
            return pl.pallas_call(
                _ln_convtranspose_kernel,
                out_shape=jax.ShapeDtypeStruct((N_pad, D_out_pad), odt),
                grid_spec=pltpu.PrefetchScalarGridSpec(
                    num_scalar_prefetch=0,
                    grid=(n_blocks,),
                    in_specs=in_specs,
                    out_specs=pl.BlockSpec((B, D_out_pad), lambda i: (i, 0)),
                ),
                compiler_params=pltpu.CompilerParams(
                    dimension_semantics=("parallel",),   # megacore / 2 TCs on v7x
                    vmem_limit_bytes=vmem_limit,
                ),
            )(x_flat, gamma_flat, beta_flat, a_reduce, a_bcast, m_bf16, bias_flat)

        try:
            out_flat = run(True)
        except Exception:
            # pl.Buffered(1) not supported by this Pallas build -> fall back to
            # default double buffering of the constant operands.
            out_flat = run(False)

        out = out_flat
        if N_pad != N:
            out = out[:N]
        if D_out_pad != D_out:
            out = out[:, :D_out]
        return out.reshape(N, C_out, L_out)

    return apply


if __name__ == "__main__":
    # in_channels = 16, out_channels = 8, kernel_size = 3, stride = 2, dilation = 1.
    # L must equal in_channels (see module-layout note above).
    N, C_in, C_out, K, stride, dilation = 64, 16, 8, 3, 2, 1
    L = C_in

    key = jax.random.PRNGKey(0)
    k_x, k_w, k_b, k_g, k_bt = jax.random.split(key, 5)

    x = jax.random.normal(k_x, (N, C_in, L), jnp.float32)
    gamma = 1.0 + 0.1 * jax.random.normal(k_g, (C_in,), jnp.float32)   # non-trivial affine
    beta = 0.1 * jax.random.normal(k_bt, (C_in,), jnp.float32)
    fan = C_in * K
    weight = jax.random.normal(k_w, (C_in, C_out, K), jnp.float32) / np.sqrt(fan)
    bias = 0.01 * jax.random.normal(k_b, (C_out,), jnp.float32)

    fn = build_layernorm_convtranspose1d(gamma, beta, weight, bias,
                                         stride=stride, dilation=dilation,
                                         length=L)
    y = fn(x)
    jax.block_until_ready(y)

    padding = (K - 1) * dilation // 2
    L_out = (L - 1) * stride - 2 * padding + dilation * (K - 1) + (stride - 1) + 1
    assert y.shape == (N, C_out, L_out), y.shape

    # Independent float64 numpy reference (LayerNorm + explicit tap scatter).
    xr = np.asarray(x, np.float64)
    mean = xr.mean(-1, keepdims=True)
    var = ((xr - mean) ** 2).mean(-1, keepdims=True)
    xn = (xr - mean) / np.sqrt(var + 1e-5)
    xn = xn * np.asarray(gamma, np.float64) + np.asarray(beta, np.float64)
    Wnp = np.asarray(weight, np.float64)
    ref = np.zeros((N, C_out, L_out), np.float64)
    for k in range(K):
        for l in range(L):
            t = l * stride - padding + k * dilation
            if 0 <= t < L_out:
                ref[:, :, t] += xn[:, :, l] @ Wnp[:, :, k]
    ref += np.asarray(bias, np.float64).reshape(1, C_out, 1)

    np.testing.assert_allclose(np.asarray(y), ref, atol=5e-2, rtol=5e-2)  # bf16 matmul tol
    assert bool(jnp.all(jnp.isfinite(y)))
    print("KERNEL_OK")
</pallas_src>

<mosaic_0001>
module attributes {stable_mosaic.version = 11 : i64} {
  func.func @_ln_convtranspose_kernel(%arg0: i32, %arg1: memref<32x256xf32, #tpu.memory_space<vmem>>, %arg2: memref<1x256xf32, #tpu.memory_space<vmem>>, %arg3: memref<1x256xf32, #tpu.memory_space<vmem>>, %arg4: memref<256x16xf32, #tpu.memory_space<vmem>>, %arg5: memref<16x256xf32, #tpu.memory_space<vmem>>, %arg6: memref<256x256xbf16, #tpu.memory_space<vmem>>, %arg7: memref<1x256xf32, #tpu.memory_space<vmem>>, %arg8: memref<32x256xf32, #tpu.memory_space<vmem>>) attributes {dimension_semantics = [#tpu.dimension_semantics<parallel>], iteration_bounds = array<i64: 2>, scalar_prefetch = 0 : i64, scratch_operands = 0 : i64, tpu.core_type = #tpu.core_type<tc>, window_params = [{transform_indices = @transform_0, window_bounds = array<i64: 32, 256>}, {pipeline_mode = #tpu.pipeline_mode<synchronous>, transform_indices = @transform_1, window_bounds = array<i64: 1, 256>}, {pipeline_mode = #tpu.pipeline_mode<synchronous>, transform_indices = @transform_2, window_bounds = array<i64: 1, 256>}, {pipeline_mode = #tpu.pipeline_mode<synchronous>, transform_indices = @transform_3, window_bounds = array<i64: 256, 16>}, {pipeline_mode = #tpu.pipeline_mode<synchronous>, transform_indices = @transform_4, window_bounds = array<i64: 16, 256>}, {pipeline_mode = #tpu.pipeline_mode<synchronous>, transform_indices = @transform_5, window_bounds = array<i64: 256, 256>}, {pipeline_mode = #tpu.pipeline_mode<synchronous>, transform_indices = @transform_6, window_bounds = array<i64: 1, 256>}, {transform_indices = @transform_7, window_bounds = array<i64: 32, 256>}]} {
    %c0 = arith.constant 0 : index
    %c0_0 = arith.constant 0 : index
    %0 = vector.load %arg1[%c0, %c0_0] : memref<32x256xf32, #tpu.memory_space<vmem>>, vector<32x256xf32>
    %1 = arith.mulf %0, %0 : vector<32x256xf32>
    %2 = tpu.concatenate %0, %1 in 0 : vector<32x256xf32>, vector<32x256xf32> -> vector<64x256xf32>
    %c0_1 = arith.constant 0 : index
    %c0_2 = arith.constant 0 : index
    %3 = vector.load %arg4[%c0_1, %c0_2] : memref<256x16xf32, #tpu.memory_space<vmem>>, vector<256x16xf32>
    %cst = arith.constant dense<0.000000e+00> : vector<64x16xf32>
    %4 = tpu.matmul %2, %3, %cst {dimension_numbers = #tpu.dot_dimension_numbers<[1], [0], [0], [1], [0, 0, 1, 1], [], []>, precision = #tpu.contract_precision<fp32>} : vector<64x256xf32>, vector<256x16xf32>, vector<64x16xf32> -> vector<64x16xf32>
    %5 = vector.extract_strided_slice %4 {offsets = [0, 0], sizes = [32, 16], strides = [1, 1]} : vector<64x16xf32> to vector<32x16xf32>
    %6 = vector.extract_strided_slice %4 {offsets = [32, 0], sizes = [32, 16], strides = [1, 1]} : vector<64x16xf32> to vector<32x16xf32>
    %7 = arith.mulf %5, %5 : vector<32x16xf32>
    %8 = arith.subf %6, %7 : vector<32x16xf32>
    %cst_3 = arith.constant 0.000000e+00 : f32
    %9 = vector.broadcast %cst_3 : f32 to vector<32x16xf32>
    %10 = arith.maximumf %8, %9 : vector<32x16xf32>
    %cst_4 = arith.constant 9.99999974E-6 : f32
    %11 = vector.broadcast %cst_4 : f32 to vector<32x16xf32>
    %12 = arith.addf %10, %11 : vector<32x16xf32>
    %13 = math.rsqrt %12 : vector<32x16xf32>
    %14 = tpu.concatenate %5, %13 in 0 : vector<32x16xf32>, vector<32x16xf32> -> vector<64x16xf32>
    %c0_5 = arith.constant 0 : index
    %c0_6 = arith.constant 0 : index
    %15 = vector.load %arg5[%c0_5, %c0_6] : memref<16x256xf32, #tpu.memory_space<vmem>>, vector<16x256xf32>
    %cst_7 = arith.constant dense<0.000000e+00> : vector<64x256xf32>
    %16 = tpu.matmul %14, %15, %cst_7 {dimension_numbers = #tpu.dot_dimension_numbers<[1], [0], [0], [1], [0, 0, 1, 1], [], []>, precision = #tpu.contract_precision<fp32>} : vector<64x16xf32>, vector<16x256xf32>, vector<64x256xf32> -> vector<64x256xf32>
    %17 = vector.extract_strided_slice %16 {offsets = [0, 0], sizes = [32, 256], strides = [1, 1]} : vector<64x256xf32> to vector<32x256xf32>
    %18 = arith.subf %0, %17 : vector<32x256xf32>
    %19 = vector.extract_strided_slice %16 {offsets = [32, 0], sizes = [32, 256], strides = [1, 1]} : vector<64x256xf32> to vector<32x256xf32>
    %20 = arith.mulf %18, %19 : vector<32x256xf32>
    %c0_8 = arith.constant 0 : index
    %c0_9 = arith.constant 0 : index
    %21 = vector.load %arg2[%c0_8, %c0_9] : memref<1x256xf32, #tpu.memory_space<vmem>>, vector<1x256xf32>
    %22 = vector.broadcast %21 : vector<1x256xf32> to vector<32x256xf32>
    %23 = arith.mulf %20, %22 : vector<32x256xf32>
    %c0_10 = arith.constant 0 : index
    %c0_11 = arith.constant 0 : index
    %24 = vector.load %arg3[%c0_10, %c0_11] : memref<1x256xf32, #tpu.memory_space<vmem>>, vector<1x256xf32>
    %25 = vector.broadcast %24 : vector<1x256xf32> to vector<32x256xf32>
    %26 = arith.addf %23, %25 : vector<32x256xf32>
    %27 = arith.truncf %26 : vector<32x256xf32> to vector<32x256xbf16>
    %c0_12 = arith.constant 0 : index
    %c0_13 = arith.constant 0 : index
    %28 = vector.load %arg6[%c0_12, %c0_13] : memref<256x256xbf16, #tpu.memory_space<vmem>>, vector<256x256xbf16>
    %cst_14 = arith.constant dense<0.000000e+00> : vector<32x256xf32>
    %29 = tpu.matmul %27, %28, %cst_14 {dimension_numbers = #tpu.dot_dimension_numbers<[1], [0], [0], [1], [0, 0, 1, 1], [], []>} : vector<32x256xbf16>, vector<256x256xbf16>, vector<32x256xf32> -> vector<32x256xf32>
    %c0_15 = arith.constant 0 : index
    %c0_16 = arith.constant 0 : index
    %30 = vector.load %arg7[%c0_15, %c0_16] : memref<1x256xf32, #tpu.memory_space<vmem>>, vector<1x256xf32>
    %31 = vector.broadcast %30 : vector<1x256xf32> to vector<32x256xf32>
    %32 = arith.addf %29, %31 : vector<32x256xf32>
    %c0_17 = arith.constant 0 : index
    %c0_18 = arith.constant 0 : index
    %33 = vector.load %arg8[%c0_17, %c0_18] : memref<32x256xf32, #tpu.memory_space<vmem>>, vector<32x256xf32>
    tpu.vector_store %arg8[%c0_17, %c0_18], %32 {strides = array<i32>} : memref<32x256xf32, #tpu.memory_space<vmem>>, vector<32x256xf32>,
    return
  }
  func.func @transform_0(%arg0: i32) -> (i32, i32) {
    %c0_i32 = arith.constant 0 : i32
    %c0_i32_0 = arith.constant 0 : i32
    return %arg0, %c0_i32 : i32, i32
  }
  func.func @transform_1(%arg0: i32) -> (i32, i32) {
    %c0_i32 = arith.constant 0 : i32
    %c0_i32_0 = arith.constant 0 : i32
    %c0_i32_1 = arith.constant 0 : i32
    return %c0_i32, %c0_i32_0 : i32, i32
  }
  func.func @transform_2(%arg0: i32) -> (i32, i32) {
    %c0_i32 = arith.constant 0 : i32
    %c0_i32_0 = arith.constant 0 : i32
    %c0_i32_1 = arith.constant 0 : i32
    return %c0_i32, %c0_i32_0 : i32, i32
  }
  func.func @transform_3(%arg0: i32) -> (i32, i32) {
    %c0_i32 = arith.constant 0 : i32
    %c0_i32_0 = arith.constant 0 : i32
    %c0_i32_1 = arith.constant 0 : i32
    return %c0_i32, %c0_i32_0 : i32, i32
  }
  func.func @transform_4(%arg0: i32) -> (i32, i32) {
    %c0_i32 = arith.constant 0 : i32
    %c0_i32_0 = arith.constant 0 : i32
    %c0_i32_1 = arith.constant 0 : i32
    return %c0_i32, %c0_i32_0 : i32, i32
  }
  func.func @transform_5(%arg0: i32) -> (i32, i32) {
    %c0_i32 = arith.constant 0 : i32
    %c0_i32_0 = arith.constant 0 : i32
    %c0_i32_1 = arith.constant 0 : i32
    return %c0_i32, %c0_i32_0 : i32, i32
  }
  func.func @transform_6(%arg0: i32) -> (i32, i32) {
    %c0_i32 = arith.constant 0 : i32
    %c0_i32_0 = arith.constant 0 : i32
    %c0_i32_1 = arith.constant 0 : i32
    return %c0_i32, %c0_i32_0 : i32, i32
  }
  func.func @transform_7(%arg0: i32) -> (i32, i32) {
    %c0_i32 = arith.constant 0 : i32
    %c0_i32_0 = arith.constant 0 : i32
    return %arg0, %c0_i32 : i32, i32
  }
}

module attributes {stable_mosaic.version = 11 : i64} {
  func.func @_ln_convtranspose_kernel(%arg0: i32, %arg1: memref<32x256xf32, #tpu.memory_space<vmem>>, %arg2: memref<1x256xf32, #tpu.memory_space<vmem>>, %arg3: memref<1x256xf32, #tpu.memory_space<vmem>>, %arg4: memref<256x16xf32, #tpu.memory_space<vmem>>, %arg5: memref<16x256xf32, #tpu.memory_space<vmem>>, %arg6: memref<256x256xbf16, #tpu.memory_space<vmem>>, %arg7: memref<1x256xf32, #tpu.memory_space<vmem>>, %arg8: memref<32x256xf32, #tpu.memory_space<vmem>>) attributes {dimension_semantics = [#tpu.dimension_semantics<parallel>], iteration_bounds = array<i64: 2>, scalar_prefetch = 0 : i64, scratch_operands = 0 : i64, tpu.core_type = #tpu.core_type<tc>, window_params = [{transform_indices = @transform_0, window_bounds = array<i64: 32, 256>}, {pipeline_mode = #tpu.pipeline_mode<synchronous>, transform_indices = @transform_1, window_bounds = array<i64: 1, 256>}, {pipeline_mode = #tpu.pipeline_mode<synchronous>, transform_indices = @transform_2, window_bounds = array<i64: 1, 256>}, {pipeline_mode = #tpu.pipeline_mode<synchronous>, transform_indices = @transform_3, window_bounds = array<i64: 256, 16>}, {pipeline_mode = #tpu.pipeline_mode<synchronous>, transform_indices = @transform_4, window_bounds = array<i64: 16, 256>}, {pipeline_mode = #tpu.pipeline_mode<synchronous>, transform_indices = @transform_5, window_bounds = array<i64: 256, 256>}, {pipeline_mode = #tpu.pipeline_mode<synchronous>, transform_indices = @transform_6, window_bounds = array<i64: 1, 256>}, {transform_indices = @transform_7, window_bounds = array<i64: 32, 256>}]} {
    %c0 = arith.constant 0 : index
    %c0_0 = arith.constant 0 : index
    %0 = vector.load %arg1[%c0, %c0_0] : memref<32x256xf32, #tpu.memory_space<vmem>>, vector<32x256xf32>
    %1 = arith.mulf %0, %0 : vector<32x256xf32>
    %2 = tpu.concatenate %0, %1 in 0 : vector<32x256xf32>, vector<32x256xf32> -> vector<64x256xf32>
    %c0_1 = arith.constant 0 : index
    %c0_2 = arith.constant 0 : index
    %3 = vector.load %arg4[%c0_1, %c0_2] : memref<256x16xf32, #tpu.memory_space<vmem>>, vector<256x16xf32>
    %cst = arith.constant dense<0.000000e+00> : vector<64x16xf32>
    %4 = tpu.matmul %2, %3, %cst {dimension_numbers = #tpu.dot_dimension_numbers<[1], [0], [0], [1], [0, 0, 1, 1], [], []>, precision = #tpu.contract_precision<fp32>} : vector<64x256xf32>, vector<256x16xf32>, vector<64x16xf32> -> vector<64x16xf32>
    %5 = vector.extract_strided_slice %4 {offsets = [0, 0], sizes = [32, 16], strides = [1, 1]} : vector<64x16xf32> to vector<32x16xf32>
    %6 = vector.extract_strided_slice %4 {offsets = [32, 0], sizes = [32, 16], strides = [1, 1]} : vector<64x16xf32> to vector<32x16xf32>
    %7 = arith.mulf %5, %5 : vector<32x16xf32>
    %8 = arith.subf %6, %7 : vector<32x16xf32>
    %cst_3 = arith.constant 0.000000e+00 : f32
    %9 = vector.broadcast %cst_3 : f32 to vector<32x16xf32>
    %10 = arith.maximumf %8, %9 : vector<32x16xf32>
    %cst_4 = arith.constant 9.99999974E-6 : f32
    %11 = vector.broadcast %cst_4 : f32 to vector<32x16xf32>
    %12 = arith.addf %10, %11 : vector<32x16xf32>
    %13 = math.rsqrt %12 : vector<32x16xf32>
    %14 = tpu.concatenate %5, %13 in 0 : vector<32x16xf32>, vector<32x16xf32> -> vector<64x16xf32>
    %c0_5 = arith.constant 0 : index
    %c0_6 = arith.constant 0 : index
    %15 = vector.load %arg5[%c0_5, %c0_6] : memref<16x256xf32, #tpu.memory_space<vmem>>, vector<16x256xf32>
    %cst_7 = arith.constant dense<0.000000e+00> : vector<64x256xf32>
    %16 = tpu.matmul %14, %15, %cst_7 {dimension_numbers = #tpu.dot_dimension_numbers<[1], [0], [0], [1], [0, 0, 1, 1], [], []>, precision = #tpu.contract_precision<fp32>} : vector<64x16xf32>, vector<16x256xf32>, vector<64x256xf32> -> vector<64x256xf32>
    %17 = vector.extract_strided_slice %16 {offsets = [0, 0], sizes = [32, 256], strides = [1, 1]} : vector<64x256xf32> to vector<32x256xf32>
    %18 = arith.subf %0, %17 : vector<32x256xf32>
    %19 = vector.extract_strided_slice %16 {offsets = [32, 0], sizes = [32, 256], strides = [1, 1]} : vector<64x256xf32> to vector<32x256xf32>
    %20 = arith.mulf %18, %19 : vector<32x256xf32>
    %c0_8 = arith.constant 0 : index
    %c0_9 = arith.constant 0 : index
    %21 = vector.load %arg2[%c0_8, %c0_9] : memref<1x256xf32, #tpu.memory_space<vmem>>, vector<1x256xf32>
    %22 = vector.broadcast %21 : vector<1x256xf32> to vector<32x256xf32>
    %23 = arith.mulf %20, %22 : vector<32x256xf32>
    %c0_10 = arith.constant 0 : index
    %c0_11 = arith.constant 0 : index
    %24 = vector.load %arg3[%c0_10, %c0_11] : memref<1x256xf32, #tpu.memory_space<vmem>>, vector<1x256xf32>
    %25 = vector.broadcast %24 : vector<1x256xf32> to vector<32x256xf32>
    %26 = arith.addf %23, %25 : vector<32x256xf32>
    %27 = arith.truncf %26 : vector<32x256xf32> to vector<32x256xbf16>
    %c0_12 = arith.constant 0 : index
    %c0_13 = arith.constant 0 : index
    %28 = vector.load %arg6[%c0_12, %c0_13] : memref<256x256xbf16, #tpu.memory_space<vmem>>, vector<256x256xbf16>
    %cst_14 = arith.constant dense<0.000000e+00> : vector<32x256xf32>
    %29 = tpu.matmul %27, %28, %cst_14 {dimension_numbers = #tpu.dot_dimension_numbers<[1], [0], [0], [1], [0, 0, 1, 1], [], []>} : vector<32x256xbf16>, vector<256x256xbf16>, vector<32x256xf32> -> vector<32x256xf32>
    %c0_15 = arith.constant 0 : index
    %c0_16 = arith.constant 0 : index
    %30 = vector.load %arg7[%c0_15, %c0_16] : memref<1x256xf32, #tpu.memory_space<vmem>>, vector<1x256xf32>
    %31 = vector.broadcast %30 : vector<1x256xf32> to vector<32x256xf32>
    %32 = arith.addf %29, %31 : vector<32x256xf32>
    %c0_17 = arith.constant 0 : index
    %c0_18 = arith.constant 0 : index
    %33 = vector.load %arg8[%c0_17, %c0_18] : memref<32x256xf32, #tpu.memory_space<vmem>>, vector<32x256xf32>
    tpu.vector_store %arg8[%c0_17, %c0_18], %32 {strides = array<i32>} : memref<32x256xf32, #tpu.memory_space<vmem>>, vector<32x256xf32>,
    return
  }
  func.func @transform_0(%arg0: i32) -> (i32, i32) {
    %c0_i32 = arith.constant 0 : i32
    %c0_i32_0 = arith.constant 0 : i32
    return %arg0, %c0_i32 : i32, i32
  }
  func.func @transform_1(%arg0: i32) -> (i32, i32) {
    %c0_i32 = arith.constant 0 : i32
    %c0_i32_0 = arith.constant 0 : i32
    %c0_i32_1 = arith.constant 0 : i32
    return %c0_i32, %c0_i32_0 : i32, i32
  }
  func.func @transform_2(%arg0: i32) -> (i32, i32) {
    %c0_i32 = arith.constant 0 : i32
    %c0_i32_0 = arith.constant 0 : i32
    %c0_i32_1 = arith.constant 0 : i32
    return %c0_i32, %c0_i32_0 : i32, i32
  }
  func.func @transform_3(%arg0: i32) -> (i32, i32) {
    %c0_i32 = arith.constant 0 : i32
    %c0_i32_0 = arith.constant 0 : i32
    %c0_i32_1 = arith.constant 0 : i32
    return %c0_i32, %c0_i32_0 : i32, i32
  }
  func.func @transform_4(%arg0: i32) -> (i32, i32) {
    %c0_i32 = arith.constant 0 : i32
    %c0_i32_0 = arith.constant 0 : i32
    %c0_i32_1 = arith.constant 0 : i32
    return %c0_i32, %c0_i32_0 : i32, i32
  }
  func.func @transform_5(%arg0: i32) -> (i32, i32) {
    %c0_i32 = arith.constant 0 : i32
    %c0_i32_0 = arith.constant 0 : i32
    %c0_i32_1 = arith.constant 0 : i32
    return %c0_i32, %c0_i32_0 : i32, i32
  }
  func.func @transform_6(%arg0: i32) -> (i32, i32) {
    %c0_i32 = arith.constant 0 : i32
    %c0_i32_0 = arith.constant 0 : i32
    %c0_i32_1 = arith.constant 0 : i32
    return %c0_i32, %c0_i32_0 : i32, i32
  }
  func.func @transform_7(%arg0: i32) -> (i32, i32) {
    %c0_i32 = arith.constant 0 : i32
    %c0_i32_0 = arith.constant 0 : i32
    return %arg0, %c0_i32 : i32, i32
  }
}

</mosaic_0001>

<bundles_post_ra>
// kernel: tpu_custom_call.1
= control target key start
LH: loop header
LB: loop body
LE: loop exit
PB: predicated region body
PF: predicated region fallthrough
CT: control target
= control target key end

     0   :  { %12 = vsyncpa [#allocation3], 0  ;;  %s5145_s0 = inlined_call_operand.hbm [shape: f32[64,256], index: 0, kind: input, shape index: {}]   ;;  %s5146_s1 = inlined_call_operand.vmem [shape: f32[1,256], index: 1, kind: input, shape index: {}]   ;;  %s5147_s2 = inlined_call_operand.vmem [shape: f32[1,256], index: 2, kind: input, shape index: {}]   ;;  %s5148_s3 = inlined_call_operand.vmem [shape: f32[256,16], index: 3, kind: input, shape index: {}]   ;;  %s5149_s4 = inlined_call_operand.vmem [shape: f32[16,256], index: 4, kind: input, shape index: {}]   ;;  %s5150_s5 = inlined_call_operand.vmem [shape: bf16[256,256], index: 5, kind: input, shape index: {}]   ;;  %s5151_s6 = inlined_call_operand.vmem [shape: f32[1,256], index: 6, kind: input, shape index: {}]   ;;  %s5152_s7 = inlined_call_operand.hbm [shape: f32[64,256], index: 7, kind: output, shape index: {}]  }
   0x1   :  { %14 = vsyncpa [#allocation3 + $0x1], 0 }
   0x2   :  { %15 = vsyncpa [#allocation4], 0 }
   0x3   :  { %17 = vsyncpa [#allocation4 + $0x1], 0  ;;  %s3842_s24 = smov 0   ;;  %s3844_s25 = smov 0  }
   0x4   :  { %s3846_s26 = smov 0   ;;  %s3848_s27 = smov 0  }
   0x5 LB: > { %s3863_s28 = sadd.s32 4294967295, %s3793_s27   ;;  %s2898_s29 = sadd.s32 4294967294, %s3793_s27   ;;  %s3793_s27 = sphi %s3848_s27, %s5391_s27   ;;  %s3789_s26 = sphi %s3846_s26, %s5390_s26   ;;  %s3785_s25 = sphi %s3844_s25, %s5389_s25   ;;  %s3781_s24 = sphi %s3842_s24, %s5388_s24  }
   0x6   : > { %s3867_s30 = sadd.s32 1, %s3793_s27   ;;  %s30_s8 = sadd.s32 1, %s3789_s26 }
   0x7   : > { %s27_s9 = ssub.s32 %s3793_s27, %s3867_s30  ;;  %p37_p0 = scmp.ne.s32.totalorder %s3789_s26, %s3785_s25 }
   0x8   : > { %p28_p1 = scmp.eq.s32.totalorder %s27_s9, 0  ;;  %p38_p2 = scmp.eq.s32.totalorder %s3793_s27, 0 }
   0x9   : > { %p43_p3 = scmp.ne.s32.totalorder %s3785_s25, %s3781_s24  ;;  %p44_p4 = scmp.eq.s32.totalorder %s3863_s28, 0 }
   0xa   : > { %s3879_s10 = scalar_select %p28_p1, %s3789_s26, %s30_s8  }
   0xb   : > { %p3881_p5 = por %p38_p2, %p37_p0  ;;  %p3885_p6 = por %p44_p4, %p43_p3 }
   0xc   : > { %p193_p7 = scmp.eq.s32.totalorder %s3863_s28, 1  ;;  %p199_p8 = scmp.eq.s32.totalorder %s2898_s29, 1 }
   0xd   : > { %p3594_p10 = scmp.lt.s32.totalorder %s3793_s27, 2  ;;  %s237_s15 = sand.u32 1, %s3789_s26  }
   0xe   : > { %p3892_p11 = por %p193_p7, %p37_p0  ;;  %p3896_p12 = por %p199_p8, %p43_p3 }
   0xf   : > { %s2947_s16 = sshll.u32 %s3793_s27, 10  ;;  %s2901_s17 = sshll.u32 %s237_s15, 6 }
  0x10   : > { %s5264_s13 = scalar_select %p3892_p11, 1, 0 }
  0x11   : > { %s5265_s14 = scalar_select %p3896_p12, 1, 0 }
  0x12   : > { %s3905_s20 = scalar_lea.hbm %s5145_s0, %s2947_s16  ;;  %s241_s21 = scalar_lea.vmem [#allocation2], %s2901_s17 }
  0x13   : > { %s249_s22 = sshll.u32 %s241_s21, 4  ;;  %p3909_p13 = pnand %p3594_p10, %p3881_p5  ;;  %s3913_s22 = int_to_ptr.vmem [resolvable:$true] %s249_s22 }
  0x14   : > { %s3915_s29 = scalar_lea.sflag [#allocation3], %s237_s15  ;;  %s3697_s8 = scalar_lea.hbm %s3905_s20, 1024 }
  0x15   : > { %p3698_p0 = scmp.ne.s32.totalorder %s3905_s20, %s3697_s8  ;;  %p3699_p1 = pneg %p3909_p13 }
  0x16   : > { %s3702_s16 = scalar_lea.hbm %s5145_s0, 2048  ;;  %p3703_p4 = scmp.lt.u32.totalorder %s3905_s20, %s5145_s0 }
  0x17   : > { %p3700_p2 = pnand %p3699_p1, %p3698_p0  ;;  %p3704_p5 = scmp.lt.u32.totalorder %s3702_s16, %s3697_s8 }
  0x18   : > { %p3706_p8 = scmp.lt.u32.totalorder %s3697_s8, %s3905_s20 }
  0x19   : > { %p3701_p3 = pneg %p3700_p2  ;;  %p3705_p7 = por %p3704_p5, %p3703_p4 }
  0x1b   : > { %p3707_p10 = por %p3706_p8, %p3705_p7 }
  0x1d   : > { %p3708_p9 = pnand %p3707_p10, %p3701_p3 }
  0x1f   : > { %3711 = shalt.err (!%p3708_p9)
}
  0x20   : > { %s3712_s15 = scalar_lea.vmem %s3913_s22, 1024  ;;  %s3795_s19 = smov [#allocation2]  }
  0x21   : > { %p3713_p0 = scmp.ne.s32.totalorder %s3913_s22, %s3712_s15  ;;  %s3717_s21 = sshll.u32 %s3795_s19, 4  ;;  %s3718_s21 = int_to_ptr.vmem [resolvable:$false] %s3717_s21 }
  0x22   : > { %s3719_s9 = scalar_lea.vmem %s3718_s21, 2048  ;;  %p3720_p11 = scmp.lt.s32.totalorder %s3913_s22, %s3718_s21 }
  0x23   : > { %p3715_p2 = pnand %p3713_p0, %p3699_p1  ;;  %p3721_p4 = scmp.lt.s32.totalorder %s3719_s9, %s3712_s15 }
  0x25   : > { %p3716_p12 = pneg %p3715_p2  ;;  %p3722_p5 = por %p3721_p4, %p3720_p11 }
  0x27   : > { %p3723_p7 = pnand %p3722_p5, %p3716_p12 }
  0x29   : > { %3726 = shalt.err (!%p3723_p7)
}
  0x2a   : > { %s3796_s8 = smov 256   ;;  %s3797_s11 = smov 16  }
  0x2b   : > { %3589 = dma.hbm_to_vmem [thread:$0]  (!%p3909_p13), %s3905_s20, 1024, %s3913_s22, %s3915_s29, %s3796_s8, %s3796_s8, %s3797_s11  }
  0x2c   : > { %p2905_p9 = scmp.ge.s32.totalorder %s3793_s27, 1  ;;  %p257_p1 = scmp.lt.s32.totalorder %s3793_s27, 3 }
  0x2e   : > { %p258_p3 = pnand %p2905_p9, %p257_p1 }
  0x30   : > { %261 = sbr.rel (%p258_p3) target bundleno = 1121 (0x461), region = 48 }
  0x37   : > { %s3946_s16 = sand.u32 1, %s3785_s25  }
  0x38   : > { %s2906_s17 = sshll.u32 %s3946_s16, 6  ;;  %s264_s18 = scalar_lea.sflag [#allocation3], %s3946_s16 }
  0x39   : > { %s3952_s15 = scalar_lea.vmem [#allocation2], %s2906_s17 }
  0x3a   : > { %3772 = dma.done.wait (%p3885_p6), %s264_s18, 1024  }
  0x3b   : > { %3774 = vsyncadd (%p3885_p6), %s264_s18, 4294966272  ;;  %v332_v0 = vld [vmem:[%s5148_s3 + $0x80] sm:$0xff]  ;;  %v333_v1 = vld [vmem:[%s5148_s3 + $0x88] sm:$0xff]  ;;  %vm1626_vm0 = vcmask 130048   ;;  %s297_s11 = scalar_lea.vmem [#allocation5], %s2906_s17  ;;  %s2949_s20 = sshll.u32 %s3863_s28, 10 }
  0x3c   : > { %v316_v2 = vld [vmem:[%s5148_s3] sm:$0xff]  ;;  %v397_v3 = vand.u32 4294901760, %v332_v0  ;;  %v400_v4 = vand.u32 4294901760, %v333_v1  ;;  %v317_v5 = vld [vmem:[%s5148_s3 + $0x8] sm:$0xff]  ;;  %v334_v7 = vld [vmem:[%s5148_s3 + $0x90] sm:$0xff]  ;;  %s2825_s18 = sshll.u32 %s297_s11, 4  ;;  %s5101_s23 = scalar_lea.hbm %s5152_s7, %s2949_s20  ;;  %s5096_s18 = int_to_ptr.vmem [resolvable:$true] %s2825_s18 }
  0x3d   : > { %v349_v6 = vand.u32 4294901760, %v316_v2  ;;  %v335_v8 = vld [vmem:[%s5148_s3 + $0x98] sm:$0xff]  ;;  %v352_v9 = vand.u32 4294901760, %v317_v5  ;;  %v403_v10 = vand.u32 4294901760, %v334_v7  ;;  %v318_v12 = vld [vmem:[%s5148_s3 + $0x10] sm:$0xff]  ;;  %v336_v14 = vld [vmem:[%s5148_s3 + $0xa0] sm:$0xff] }
  0x3e   : > { %v406_v11 = vand.u32 4294901760, %v335_v8  ;;  %v319_v13 = vld [vmem:[%s5148_s3 + $0x18] sm:$0xff]  ;;  %v3985_v15 = vpack.c.bf16 %v400_v4, %v397_v3  ;;  %v3987_v16 = vsub.f32 %v332_v0, %v397_v3  ;;  %v3989_v17 = vsub.f32 %v333_v1, %v400_v4  ;;  %v337_v19 = vld [vmem:[%s5148_s3 + $0xa8] sm:$0xff]  ;;  %v320_v20 = vld [vmem:[%s5148_s3 + $0x20] sm:$0xff]  ;;  %s2811_s28 = scalar_lea.sflag [#allocation4], %s3946_s16  ;;  %s3727_s29 = scalar_lea.vmem %s5096_s18, 1024 }
  0x3f   : > { %v3991_v18 = vsub.f32 %v316_v2, %v349_v6  ;;  %v321_v21 = vld [vmem:[%s5148_s3 + $0x28] sm:$0xff]  ;;  %v4002_v22 = vpack.c.bf16 %v352_v9, %v349_v6  ;;  %v4004_v23 = vsub.f32 %v317_v5, %v352_v9  ;;  %v4008_v25 = vsub.f32 %v334_v7, %v403_v10  ;;  %v338_v26 = vld [vmem:[%s5148_s3 + $0xb0] sm:$0xff]  ;;  %v339_v31 = vld [vmem:[%s5148_s3 + $0xb8] sm:$0xff]  ;;  %p3728_p6 = scmp.ne.s32.totalorder %s5096_s18, %s3727_s29  ;;  %p5385_p11 = scmp.ne.s32.totalorder %s5264_s13, 0 }
  0x40   : > { %5267 = vst [vmem:[#allocation8_spill] sm:$0xff] %v3985_v15  ;;  %v4006_v24 = vpack.c.bf16 %v406_v11, %v403_v10  ;;  %3287 = vmatprep.subr.bf16.mxu1 %v3985_v15  ;;  %v4014_v27 = vsub.f32 %v335_v8, %v406_v11  ;;  %v355_v28 = vand.u32 4294901760, %v318_v12  ;;  %v358_v29 = vand.u32 4294901760, %v319_v13  ;;  %v322_v36 = vld [vmem:[%s5148_s3 + $0x30] sm:$0xff]  ;;  %v323_v37 = vld [vmem:[%s5148_s3 + $0x38] sm:$0xff]  ;;  %v340_v42 = vld [vmem:[%s5148_s3 + $0xc0] sm:$0xff] }
  0x41   : > { %5268 = vst [vmem:[#allocation9_spill] sm:$0xff] %v4002_v22  ;;  %v409_v30 = vand.u32 4294901760, %v336_v14  ;;  %3289 = vmatpush3.bf16.msra.mxu1 %v4002_v22  ;;  %v412_v32 = vand.u32 4294901760, %v337_v19  ;;  %v361_v33 = vand.u32 4294901760, %v320_v20  ;;  %v364_v34 = vand.u32 4294901760, %v321_v21  ;;  %v341_v43 = vld [vmem:[%s5148_s3 + $0xc8] sm:$0xff]  ;;  %p3729_p12 = pnand %p3728_p6, %p5385_p11 }
  0x42   : > { %5269 = vst [vmem:[#allocation10_spill] sm:$0xff] %v4006_v24  ;;  %v415_v35 = vand.u32 4294901760, %v338_v26  ;;  %3291 = vmatprep.subr.bf16.mxu1 %v4006_v24  ;;  %v4027_v38 = vpack.c.bf16 %v358_v29, %v355_v28  ;;  %v4029_v39 = vsub.f32 %v318_v12, %v355_v28  ;;  %v4031_v40 = vsub.f32 %v319_v13, %v358_v29  ;;  %v324_v44 = vld [vmem:[%s5148_s3 + $0x40] sm:$0xff]  ;;  %v325_v49 = vld [vmem:[%s5148_s3 + $0x48] sm:$0xff]  ;;  %v342_v58 = vld [vmem:[%s5148_s3 + $0xd0] sm:$0xff]  ;;  %s3799_s19 = smov [#allocation5]  }
  0x43   : > { %v4033_v41 = vsub.f32 %v336_v14, %v409_v30  ;;  %v4044_v45 = vpack.c.bf16 %v412_v32, %v409_v30  ;;  %v4046_v46 = vsub.f32 %v337_v19, %v412_v32  ;;  %v4048_v47 = vpack.c.bf16 %v364_v34, %v361_v33  ;;  %v343_v59 = vld [vmem:[%s5148_s3 + $0xd8] sm:$0xff]  ;;  %v326_v0 = vld [vmem:[%s5148_s3 + $0x50] sm:$0xff]  ;;  %v344_v2 = vld [vmem:[%s5148_s3 + $0xe0] sm:$0xff]  ;;  %p3730_p13 = pneg %p3729_p12  ;;  %s3731_s21 = sshll.u32 %s3799_s19, 4  ;;  %s3732_s21 = int_to_ptr.vmem [resolvable:$false] %s3731_s21 }
  0x44   : > { %5270 = vst [vmem:[#allocation11_spill] sm:$0xff] %v4027_v38  ;;  %v4050_v48 = vsub.f32 %v320_v20, %v361_v33  ;;  %v4055_v50 = vsub.f32 %v321_v21, %v364_v34  ;;  %v418_v51 = vand.u32 4294901760, %v339_v31  ;;  %v4057_v52 = vsub.f32 %v338_v26, %v415_v35  ;;  %v327_v1 = vld [vmem:[%s5148_s3 + $0x58] sm:$0xff]  ;;  %v345_v7 = vld [vmem:[%s5148_s3 + $0xe8] sm:$0xff]  ;;  %v328_v8 = vld [vmem:[%s5148_s3 + $0x60] sm:$0xff]  ;;  %s3733_s9 = scalar_lea.vmem %s3732_s21, 2048  ;;  %p3734_p8 = scmp.lt.s32.totalorder %s5096_s18, %s3732_s21 }
  0x45   : > { %5271 = vst [vmem:[#allocation12_spill] sm:$0xff] %v4044_v45  ;;  %5272 = vst [vmem:[#allocation13_spill] sm:$0xff] %v4048_v47  ;;  %v367_v53 = vand.u32 4294901760, %v322_v36  ;;  %3293 = vmatpush3.bf16.msra.mxu1 %v4027_v38  ;;  %v370_v54 = vand.u32 4294901760, %v323_v37  ;;  %v421_v55 = vand.u32 4294901760, %v340_v42  ;;  %v424_v56 = vand.u32 4294901760, %v341_v43  ;;  %p3735_p10 = scmp.lt.s32.totalorder %s3733_s9, %s3727_s29 }
  0x46   : > { %5273 = vst [vmem:[#allocation14_spill] sm:$0xff] %v4050_v48  ;;  %v373_v57 = vand.u32 4294901760, %v324_v44  ;;  %3295 = vmatprep.subr.bf16.mxu1 %v4044_v45  ;;  %v4067_v60 = vpack.c.bf16 %v418_v51, %v415_v35  ;;  %v4069_v61 = vsub.f32 %v339_v31, %v418_v51  ;;  %v376_v63 = vand.u32 4294901760, %v325_v49  ;;  %v329_v9 = vld [vmem:[%s5148_s3 + $0x68] sm:$0xff]  ;;  %v346_v26 = vld [vmem:[%s5148_s3 + $0xf0] sm:$0xff]  ;;  %v347_v28 = vld [vmem:[%s5148_s3 + $0xf8] sm:$0xff] }
  0x47   : > { %v4071_v62 = vsub.f32 %v322_v36, %v367_v53  ;;  %v4082_v3 = vpack.c.bf16 %v370_v54, %v367_v53  ;;  %v4084_v4 = vsub.f32 %v323_v37, %v370_v54  ;;  %v4086_v5 = vpack.c.bf16 %v424_v56, %v421_v55  ;;  %v330_v29 = vld [vmem:[%s5148_s3 + $0x70] sm:$0xff]  ;;  %v331_v30 = vld [vmem:[%s5148_s3 + $0x78] sm:$0xff]  ;;  %v4122_v35 = vld [vmem:[%s3952_s15 + $0x8] sm:$0xff]  ;;  %p3736_p0 = por %p3735_p10, %p3734_p8 }
  0x48   : > { %5274 = vst [vmem:[#allocation15_spill] sm:$0xff] %v4067_v60  ;;  %v4088_v6 = vsub.f32 %v340_v42, %v421_v55  ;;  %v4099_v10 = vsub.f32 %v341_v43, %v424_v56  ;;  %v4101_v11 = vpack.c.bf16 %v376_v63, %v373_v57  ;;  %v4103_v12 = vsub.f32 %v324_v44, %v373_v57  ;;  %v4125_v36 = vld [vmem:[%s3952_s15] sm:$0xff] }
  0x49   : > { %5275 = vst [vmem:[#allocation16_spill] sm:$0xff] %v4082_v3  ;;  %5276 = vst [vmem:[#allocation17_spill] sm:$0xff] %v4086_v5  ;;  %v4105_v13 = vsub.f32 %v325_v49, %v376_v63  ;;  %3297 = vmatpush3.bf16.msra.mxu1 %v4048_v47  ;;  %v427_v14 = vand.u32 4294901760, %v342_v58  ;;  %v430_v19 = vand.u32 4294901760, %v343_v59  ;;  %v379_v20 = vand.u32 4294901760, %v326_v0  ;;  %p3737_p2 = pnand %p3736_p0, %p3730_p13 }
  0x4a   : > { %5277 = vst [vmem:[#allocation18_spill] sm:$0xff] %v4101_v11  ;;  %v382_v21 = vand.u32 4294901760, %v327_v1  ;;  %3299 = vmatprep.subr.bf16.mxu1 %v4067_v60  ;;  %v433_v31 = vand.u32 4294901760, %v344_v2  ;;  %v436_v32 = vand.u32 4294901760, %v345_v7  ;;  %v385_v33 = vand.u32 4294901760, %v328_v8 }
  0x4b   : > { %v388_v34 = vand.u32 4294901760, %v329_v9  ;;  %v4127_v37 = vpack.c.bf16 %v430_v19, %v427_v14  ;;  %v4129_v42 = vsub.f32 %v342_v58, %v427_v14  ;;  %v4131_v43 = vsub.f32 %v343_v59, %v430_v19  ;;  %v4154_v14 = vld [vmem:[%s3952_s15 + $0x18] sm:$0xff] }
  0x4c   : > { %v4133_v44 = vpack.c.bf16 %v382_v21, %v379_v20  ;;  %v4135_v49 = vsub.f32 %v326_v0, %v379_v20  ;;  %v4137_v51 = vsub.f32 %v327_v1, %v382_v21  ;;  %v4139_v53 = vpack.c.bf16 %v436_v32, %v433_v31 }
  0x4d   : > { %5278 = vst [vmem:[#allocation19_spill] sm:$0xff] %v4127_v37  ;;  %v4141_v54 = vsub.f32 %v344_v2, %v433_v31  ;;  %3301 = vmatpush3.bf16.msra.mxu1 %v4082_v3  ;;  %v4144_v55 = vsub.f32 %v345_v7, %v436_v32  ;;  %v4146_v56 = vpack.c.bf16 %v388_v34, %v385_v33  ;;  %v439_v59 = vand.u32 4294901760, %v346_v26  ;;  %v4157_v2 = vld [vmem:[%s3952_s15 + $0x10] sm:$0xff] }
  0x4e   : > { %5279 = vst [vmem:[#allocation20_spill] sm:$0xff] %v4133_v44  ;;  %5280 = vst [vmem:[#allocation21_spill] sm:$0xff] %v4139_v53  ;;  %v4148_v57 = vsub.f32 %v328_v8, %v385_v33  ;;  %v4150_v58 = vsub.f32 %v329_v9, %v388_v34  ;;  %3303 = vmatprep.subr.bf16.mxu1 %v4086_v5  ;;  %v442_v63 = vand.u32 4294901760, %v347_v28  ;;  %v391_v0 = vand.u32 4294901760, %v330_v29 }
  0x4f   : > { %5281 = vst [vmem:[#allocation22_spill] sm:$0xff] %v4146_v56  ;;  %v394_v1 = vand.u32 4294901760, %v331_v30  ;;  %v4160_v19 = vand.u32 4294901760, %v4122_v35  ;;  %v4163_v7 = vand.u32 4294901760, %v4125_v36  ;;  %v5156_v8 = vand.u32 4294901760, %v3987_v16 }
  0x50   : > { %v4167_v20 = vpack.c.bf16 %v442_v63, %v439_v59  ;;  %v4169_v21 = vsub.f32 %v346_v26, %v439_v59  ;;  %v4171_v31 = vsub.f32 %v347_v28, %v442_v63  ;;  %v4176_v33 = vsub.f32 %v330_v29, %v391_v0 }
  0x51   : > { %v4173_v32 = vpack.c.bf16 %v394_v1, %v391_v0  ;;  %3305 = vmatpush3.bf16.msra.mxu1 %v4101_v11  ;;  %v4178_v34 = vsub.f32 %v331_v30, %v394_v1  ;;  %v4182_v5 = vsub.f32 %v4122_v35, %v4160_v19  ;;  %v4186_v9 = vsub.f32 %v4125_v36, %v4163_v7 }
  0x52   : > { %5282 = vst [vmem:[#allocation23_spill] sm:$0xff] %v4167_v20  ;;  %3307 = vmatprep.subr.bf16.mxu1 %v4127_v37  ;;  %v681_v26 = vsub.f32 %v3987_v16, %v5156_v8  ;;  %v5286_v28 = vand.u32 4294901760, %v3989_v17  ;;  %v5165_v30 = vand.u32 4294901760, %v3991_v18  ;;  %v5166_v59 = vand.u32 4294901760, %v4004_v23  ;;  %1393 = vmatprep.mubr.f32.mxu0 %v4160_v19 }
  0x53   : > { %5283 = vst [vmem:[#allocation24_spill] sm:$0xff] %v4173_v32  ;;  %5284 = vst [vmem:[#allocation25_spill] sm:$0xff] %v4182_v5  ;;  %v5173_v63 = vand.u32 4294901760, %v4182_v5  ;;  %v4201_v1 = vand.u32 4294901760, %v4154_v14  ;;  %v4204_v8 = vand.u32 4294901760, %v4157_v2  ;;  %v5288_v60 = vand.u32 4294901760, %v4186_v9 }
  0x54   : > { %5285 = vst [vmem:[#allocation26_spill] sm:$0xff] %v4186_v9  ;;  %v688_v29 = vsub.f32 %v3989_v17, %v5286_v28  ;;  %v682_v37 = vand.u32 4294901760, %v681_v26  ;;  %v569_v28 = vsub.f32 %v3991_v18, %v5165_v30  ;;  %v576_v3 = vsub.f32 %v4004_v23, %v5166_v59 }
  0x55   : > { %5287 = vst [vmem:[#allocation27_spill] sm:$0xff] %v4204_v8  ;;  %3309 = vmatpush3.bf16.msra.mxu1 %v4133_v44  ;;  %v447_v0 = vsub.f32 %v4182_v5, %v5173_v63  ;;  %v453_v26 = vsub.f32 %v4186_v9, %v5288_v60  ;;  %v4225_v30 = vsub.f32 %v4157_v2, %v4204_v8  ;;  %v5188_v45 = vand.u32 4294901760, %v4008_v25  ;;  %v4230_v63 = vld [vmem:[%s3952_s15 + $0x28] sm:$0xff]  ;;  %v4235_v9 = vld [vmem:[%s3952_s15 + $0x20] sm:$0xff]  ;;  %v4280_v5 = vld [vmem:[%s3952_s15 + $0x38] sm:$0xff] }
  0x56   : > { %v689_v11 = vand.u32 4294901760, %v688_v29  ;;  %v4221_v29 = vsub.f32 %v4154_v14, %v4201_v1  ;;  %3311 = vmatprep.subr.bf16.mxu1 %v4139_v53  ;;  %v570_v44 = vand.u32 4294901760, %v569_v28  ;;  %v577_v47 = vand.u32 4294901760, %v576_v3 }
  0x57   : > { %5290 = vst [vmem:[#allocation29_spill] sm:$0xff] %v4225_v30  ;;  %v448_v38 = vand.u32 4294901760, %v447_v0  ;;  %v454_v24 = vand.u32 4294901760, %v453_v26  ;;  %v5187_v22 = vand.u32 4294901760, %v4225_v30  ;;  %v695_v53 = vsub.f32 %v4008_v25, %v5188_v45 }
  0x58   : > { %5289 = vst [vmem:[#allocation28_spill] sm:$0xff] %v4221_v29  ;;  %v3318_v59 = vpack.c.bf16 %v689_v11, %v682_v37  ;;  %v5186_v60 = vand.u32 4294901760, %v4221_v29  ;;  %v3320_v15 = vpack.c.bf16 %v577_v47, %v570_v44  ;;  %v5191_v11 = vand.u32 4294901760, %v4014_v27 }
  0x59   : > { %v5196_v3 = vand.u32 4294901760, %v4029_v39  ;;  %3313 = vmatpush3.bf16.msra.mxu1 %v4146_v56  ;;  %449 = vmatprep.mubr.f32.mxu1 %v448_v38  ;;  %v468_v0 = vsub.f32 %v4225_v30, %v5187_v22  ;;  %v5197_v47 = vand.u32 4294901760, %v4031_v40  ;;  %v4251_v44 = vand.u32 4294901760, %v4230_v63 }
  0x5a   : > { %v462_v37 = vsub.f32 %v4221_v29, %v5186_v60  ;;  %3315 = vmatprep.subr.bf16.mxu1 %v4167_v20  ;;  %v696_v28 = vand.u32 4294901760, %v695_v53  ;;  %v702_v38 = vsub.f32 %v4014_v27, %v5191_v11  ;;  %v4261_v60 = vand.u32 4294901760, %v4235_v9 }
  0x5b   : > { %5291 = vst [vmem:[#allocation30_spill] sm:$0xff] %v4251_v44  ;;  %v583_v26 = vsub.f32 %v4029_v39, %v5196_v3  ;;  %v469_v45 = vand.u32 4294901760, %v468_v0  ;;  %v590_v56 = vsub.f32 %v4031_v40, %v5197_v47  ;;  %v4268_v53 = vsub.f32 %v4230_v63, %v4251_v44 }
  0x5c   : > { %5292 = vst [vmem:[#allocation31_spill] sm:$0xff] %v4261_v60  ;;  %v463_v22 = vand.u32 4294901760, %v462_v37  ;;  %v703_v11 = vand.u32 4294901760, %v702_v38  ;;  %v4272_v30 = vsub.f32 %v4235_v9, %v4261_v60  ;;  %v5208_v3 = vand.u32 4294901760, %v4033_v41 }
  0x5d   : > { %5293 = vst [vmem:[#allocation32_spill] sm:$0xff] %v4268_v53  ;;  %v584_v20 = vand.u32 4294901760, %v583_v26  ;;  %3317 = vmatpush3.bf16.msra.mxu1 %v4173_v32  ;;  %v591_v37 = vand.u32 4294901760, %v590_v56  ;;  %v5209_v0 = vand.u32 4294901760, %v4268_v53  ;;  %v4288_v32 = vld [vmem:[%s3952_s15 + $0x30] sm:$0xff]  ;;  %v5295_v29 = vand.u32 4294901760, %v4046_v46 }
  0x5e   : > { %5294 = vst [vmem:[#allocation33_spill] sm:$0xff] %v4272_v30  ;;  %3319 = vmatprep.subr.bf16.mxu1 %v3318_v59  ;;  %v3322_v38 = vpack.c.bf16 %v703_v11, %v696_v28  ;;  %v5216_v26 = vand.u32 4294901760, %v4272_v30  ;;  %v709_v60 = vsub.f32 %v4033_v41, %v5208_v3  ;;  %v5296_v11 = vand.u32 4294901760, %v4050_v48 }
  0x5f   : > { %v3324_v56 = vpack.c.bf16 %v591_v37, %v584_v20  ;;  %v477_v47 = vsub.f32 %v4268_v53, %v5209_v0  ;;  %v716_v59 = vsub.f32 %v4046_v46, %v5295_v29  ;;  %v5297_v20 = vand.u32 4294901760, %v4055_v50 }
  0x60   : > { %v597_v28 = vsub.f32 %v4050_v48, %v5296_v11  ;;  %455 = vmatmul.mubr.f32.vlgmr.msra.gmra.mrb[0].mxu1 %v454_v24  ;;  %v483_v3 = vsub.f32 %v4272_v30, %v5216_v26  ;;  %v710_v44 = vand.u32 4294901760, %v709_v60  ;;  %v4306_v0 = vand.u32 4294901760, %v4280_v5 }
  0x61   : > { %v604_v37 = vsub.f32 %v4055_v50, %v5297_v20  ;;  %3321 = vmatpush3.bf16.msra.mxu1 %v3320_v15  ;;  %464 = vmatprep.mubr.f32.mxu1 %v463_v22  ;;  %v478_v29 = vand.u32 4294901760, %v477_v47  ;;  %v717_v53 = vand.u32 4294901760, %v716_v59  ;;  %v4309_v11 = vand.u32 4294901760, %v4288_v32 }
  0x62   : > { %v598_v8 = vand.u32 4294901760, %v597_v28  ;;  %3323 = vmatprep.subr.bf16.mxu1 %v3322_v38  ;;  %v484_v24 = vand.u32 4294901760, %v483_v3  ;;  %v4313_v60 = vsub.f32 %v4280_v5, %v4306_v0  ;;  %v5219_v20 = vand.u32 4294901760, %v4057_v52 }
  0x63   : > { %5298 = vst [vmem:[#allocation34_spill] sm:$0xff] %v4309_v11  ;;  %v605_v48 = vand.u32 4294901760, %v604_v37  ;;  %v3326_v26 = vpack.c.bf16 %v717_v53, %v710_v44  ;;  %v4318_v15 = vsub.f32 %v4288_v32, %v4309_v11  ;;  %v5218_v22 = vand.u32 4294901760, %v4069_v61 }
  0x64   : > { %5299 = vst [vmem:[#allocation35_spill] sm:$0xff] %v4313_v60  ;;  %v5217_v47 = vand.u32 4294901760, %v4071_v62  ;;  %470 = vmatmul.mubr.f32.gmra.mrb[2].mxu1 %v469_v45  ;;  %v5222_v3 = vand.u32 4294901760, %v4313_v60  ;;  %v723_v38 = vsub.f32 %v4057_v52, %v5219_v20  ;;  %v5223_v28 = vand.u32 4294901760, %v4084_v4 }
  0x65   : > { %v3328_v59 = vpack.c.bf16 %v605_v48, %v598_v8  ;;  %3325 = vmatpush3.bf16.msra.mxu1 %v3324_v56  ;;  %479 = vmatprep.mubr.f32.mxu1 %v478_v29  ;;  %v5228_v44 = vand.u32 4294901760, %v4318_v15  ;;  %v730_v53 = vsub.f32 %v4069_v61, %v5218_v22  ;;  %v309_v48 = vmul.f32 %v4122_v35, %v4122_v35 }
  0x66   : > { %v611_v45 = vsub.f32 %v4071_v62, %v5217_v47  ;;  %3327 = vmatprep.subr.bf16.mxu1 %v3326_v26  ;;  %v492_v8 = vsub.f32 %v4313_v60, %v5222_v3  ;;  %v724_v56 = vand.u32 4294901760, %v723_v38  ;;  %v618_v37 = vsub.f32 %v4084_v4, %v5223_v28 }
  0x67   : > { %v308_v29 = vmul.f32 %v4125_v36, %v4125_v36  ;;  %v498_v47 = vsub.f32 %v4318_v15, %v5228_v44  ;;  %v731_v22 = vand.u32 4294901760, %v730_v53  ;;  %v4347_v35 = vand.u32 4294901760, %v309_v48 }
  0x68   : > { %v612_v20 = vand.u32 4294901760, %v611_v45  ;;  %485 = vmatmul.mubr.f32.gmra.mrb[4].mxu1 %v484_v24  ;;  %v493_v26 = vand.u32 4294901760, %v492_v8  ;;  %v619_v30 = vand.u32 4294901760, %v618_v37  ;;  %v5233_v38 = vand.u32 4294901760, %v4088_v6 }
  0x69   : > { %v4349_v3 = vand.u32 4294901760, %v308_v29  ;;  %3329 = vmatpush3.bf16.msra.mxu1 %v3328_v59  ;;  %v499_v28 = vand.u32 4294901760, %v498_v47  ;;  %v3330_v60 = vpack.c.bf16 %v731_v22, %v724_v56  ;;  %v4353_v36 = vsub.f32 %v309_v48, %v4347_v35 }
  0x6a   : > { %v5230_v11 = vand.u32 4294901760, %v4099_v10  ;;  %494 = vmatprep.mubr.f32.mxu1 %v493_v26  ;;  %v3332_v53 = vpack.c.bf16 %v619_v30, %v612_v20  ;;  %v737_v24 = vsub.f32 %v4088_v6, %v5233_v38  ;;  %v5229_v8 = vand.u32 4294901760, %v4103_v12 }
  0x6b   : > { %5300 = vst [vmem:[#allocation36_spill] sm:$0xff] %v4353_v36  ;;  %v4357_v45 = vsub.f32 %v308_v29, %v4349_v3  ;;  %3331 = vmatprep.subr.bf16.mxu1 %v3330_v60  ;;  %v5231_v47 = vand.u32 4294901760, %v4353_v36  ;;  %v5232_v59 = vand.u32 4294901760, %v4105_v13  ;;  %v311_v30 = vmul.f32 %v4154_v14, %v4154_v14 }
  0x6c   : > { %v744_v22 = vsub.f32 %v4099_v10, %v5230_v11  ;;  %500 = vmatmul.mubr.f32.gmra.mrb[6].mxu1 %v499_v28  ;;  %v738_v48 = vand.u32 4294901760, %v737_v24  ;;  %v625_v56 = vsub.f32 %v4103_v12, %v5229_v8  ;;  %v310_v60 = vmul.f32 %v4157_v2, %v4157_v2 }
  0x6d   : > { %5301 = vst [vmem:[#allocation37_spill] sm:$0xff] %v4357_v45  ;;  %v5234_v20 = vand.u32 4294901760, %v4357_v45  ;;  %3333 = vmatpush3.bf16.msra.mxu1 %v3332_v53  ;;  %v507_v37 = vsub.f32 %v4353_v36, %v5231_v47  ;;  %v632_v14 = vsub.f32 %v4105_v13, %v5232_v59  ;;  %v4382_v28 = vand.u32 4294901760, %v311_v30 }
  0x6e   : > { %v745_v29 = vand.u32 4294901760, %v744_v22  ;;  %v626_v24 = vand.u32 4294901760, %v625_v56  ;;  %v4387_v44 = vand.u32 4294901760, %v310_v60  ;;  %v5237_v2 = vand.u32 4294901760, %v4129_v42 }
  0x6f   : > { %v513_v26 = vsub.f32 %v4357_v45, %v5234_v20  ;;  %v508_v53 = vand.u32 4294901760, %v507_v37  ;;  %v633_v11 = vand.u32 4294901760, %v632_v14  ;;  %v4391_v22 = vsub.f32 %v311_v30, %v4382_v28 }
  0x70   : > { %v3334_v8 = vpack.c.bf16 %v745_v29, %v738_v48  ;;  %v4394_v59 = vsub.f32 %v310_v60, %v4387_v44  ;;  %v751_v38 = vsub.f32 %v4129_v42, %v5237_v2  ;;  %v5236_v56 = vand.u32 4294901760, %v4131_v43 }
  0x71   : > { %5302 = vst [vmem:[#allocation38_spill] sm:$0xff] %v4391_v22  ;;  %v514_v47 = vand.u32 4294901760, %v513_v26  ;;  %509 = vmatprep.mubr.f32.mxu1 %v508_v53  ;;  %v3336_v20 = vpack.c.bf16 %v633_v11, %v626_v24  ;;  %v5235_v37 = vand.u32 4294901760, %v4391_v22  ;;  %v5238_v48 = vand.u32 4294901760, %v4135_v49 }
  0x72   : > { %5303 = vst [vmem:[#allocation39_spill] sm:$0xff] %v4394_v59  ;;  %3335 = vmatprep.subr.bf16.mxu1 %v3334_v8  ;;  %v5243_v30 = vand.u32 4294901760, %v4137_v51  ;;  %v5244_v29 = vand.u32 4294901760, %v4394_v59  ;;  %v752_v60 = vand.u32 4294901760, %v751_v38  ;;  %v758_v14 = vsub.f32 %v4131_v43, %v5236_v56 }
  0x73   : > { %515 = vmatmul.mubr.f32.gmra.mrb[8].mxu1 %v514_v47  ;;  %v313_v26 = vmul.f32 %v4230_v63, %v4230_v63  ;;  %v522_v11 = vsub.f32 %v4391_v22, %v5235_v37  ;;  %v639_v8 = vsub.f32 %v4135_v49, %v5238_v48  ;;  %v312_v47 = vmul.f32 %v4235_v9, %v4235_v9 }
  0x74   : > { %3337 = vmatpush3.bf16.msra.mxu1 %v3336_v20  ;;  %v646_v38 = vsub.f32 %v4137_v51, %v5243_v30  ;;  %v528_v63 = vsub.f32 %v4394_v59, %v5244_v29  ;;  %v759_v20 = vand.u32 4294901760, %v758_v14  ;;  %v5247_v53 = vand.u32 4294901760, %v4141_v54 }
  0x75   : > { %v4423_v24 = vand.u32 4294901760, %v313_v26  ;;  %v523_v37 = vand.u32 4294901760, %v522_v11  ;;  %v640_v56 = vand.u32 4294901760, %v639_v8  ;;  %v4426_v48 = vand.u32 4294901760, %v312_v47 }
  0x76   : > { %v647_v2 = vand.u32 4294901760, %v646_v38  ;;  %v529_v22 = vand.u32 4294901760, %v528_v63  ;;  %v3338_v45 = vpack.c.bf16 %v759_v20, %v752_v60  ;;  %v765_v9 = vsub.f32 %v4141_v54, %v5247_v53 }
  0x77   : > { %v4429_v30 = vsub.f32 %v313_v26, %v4423_v24  ;;  %524 = vmatprep.mubr.f32.mxu1 %v523_v37  ;;  %v4435_v29 = vsub.f32 %v312_v47, %v4426_v48  ;;  %v5246_v11 = vand.u32 4294901760, %v4144_v55  ;;  %v5245_v8 = vand.u32 4294901760, %v4148_v57 }
  0x78   : > { %v3340_v14 = vpack.c.bf16 %v647_v2, %v640_v56  ;;  %530 = vmatmul.mubr.f32.gmra.mrb[10].mxu1 %v529_v22  ;;  %3339 = vmatprep.subr.bf16.mxu1 %v3338_v45  ;;  %v766_v38 = vand.u32 4294901760, %v765_v9  ;;  %v5249_v26 = vand.u32 4294901760, %v4150_v58  ;;  %v315_v63 = vmul.f32 %v4280_v5, %v4280_v5 }
  0x79   : > { %5304 = vst [vmem:[#allocation40_spill] sm:$0xff] %v4429_v30  ;;  %v5248_v60 = vand.u32 4294901760, %v4429_v30  ;;  %v5256_v2 = vand.u32 4294901760, %v4435_v29  ;;  %v772_v56 = vsub.f32 %v4144_v55, %v5246_v11  ;;  %v653_v22 = vsub.f32 %v4148_v57, %v5245_v8 }
  0x7a   : > { %3341 = vmatpush3.bf16.msra.mxu1 %v3340_v14  ;;  %v314_v45 = vmul.f32 %v4288_v32, %v4288_v32  ;;  %v660_v5 = vsub.f32 %v4150_v58, %v5249_v26  ;;  %v4458_v47 = vand.u32 4294901760, %v315_v63  ;;  %v5261_v20 = vand.u32 4294901760, %v4169_v21 }
  0x7b   : > { %v537_v37 = vsub.f32 %v4429_v30, %v5248_v60  ;;  %v543_v9 = vsub.f32 %v4435_v29, %v5256_v2  ;;  %v773_v14 = vand.u32 4294901760, %v772_v56  ;;  %v654_v8 = vand.u32 4294901760, %v653_v22 }
  0x7c   : > { %v4464_v11 = vand.u32 4294901760, %v314_v45  ;;  %v661_v53 = vand.u32 4294901760, %v660_v5  ;;  %v4467_v60 = vsub.f32 %v315_v63, %v4458_v47  ;;  %v779_v26 = vsub.f32 %v4169_v21, %v5261_v20 }
  0x7d   : > { %v538_v32 = vand.u32 4294901760, %v537_v37  ;;  %v544_v30 = vand.u32 4294901760, %v543_v9  ;;  %v3342_v59 = vpack.c.bf16 %v773_v14, %v766_v38  ;;  %v5257_v2 = vand.u32 4294901760, %v4171_v31 }
  0x7e   : > { %v4473_v36 = vsub.f32 %v314_v45, %v4464_v11  ;;  %v3344_v56 = vpack.c.bf16 %v661_v53, %v654_v8  ;;  %v5258_v22 = vand.u32 4294901760, %v4467_v60  ;;  %v5259_v37 = vand.u32 4294901760, %v4176_v33 }
  0x7f   : > { %539 = vmatprep.mubr.f32.mxu1 %v538_v32  ;;  %3343 = vmatprep.subr.bf16.mxu1 %v3342_v59  ;;  %v780_v5 = vand.u32 4294901760, %v779_v26  ;;  %v786_v38 = vsub.f32 %v4171_v31, %v5257_v2  ;;  %v673_v45 = vand.u32 4294901760, %v4178_v34 }
  0x80   : > { %545 = vmatmul.mubr.f32.gmra.mrb[12].mxu1 %v544_v30  ;;  %v5260_v63 = vand.u32 4294901760, %v4473_v36  ;;  %v552_v53 = vsub.f32 %v4467_v60, %v5258_v22  ;;  %v667_v8 = vsub.f32 %v4176_v33, %v5259_v37  ;;  %v3350_v22 = vpack.c.bf16 %v3989_v17, %v3987_v16 }
  0x81   : > { %3345 = vmatpush3.bf16.msra.mxu1 %v3344_v56  ;;  %v787_v30 = vand.u32 4294901760, %v786_v38  ;;  %v674_v26 = vsub.f32 %v4178_v34, %v673_v45  ;;  %v5305_v38 = vand.u32 4294901760, %v3987_v16  ;;  %v3354_v16 = vpack.c.bf16 %v4014_v27, %v4008_v25 }
  0x82   : > { %v558_v59 = vsub.f32 %v4473_v36, %v5260_v63  ;;  %v553_v9 = vand.u32 4294901760, %v552_v53  ;;  %v668_v14 = vand.u32 4294901760, %v667_v8  ;;  %v5306_v63 = vand.u32 4294901760, %v3989_v17 }
  0x83   : > { %v3346_v56 = vpack.c.bf16 %v787_v30, %v780_v5  ;;  %v675_v2 = vand.u32 4294901760, %v674_v26  ;;  %v3352_v53 = vpack.c.bf16 %v4004_v23, %v3991_v18  ;;  %v5307_v5 = vand.u32 4294901760, %v3991_v18 }
  0x84   : > { %v559_v32 = vand.u32 4294901760, %v558_v59  ;;  %554 = vmatprep.mubr.f32.mxu1 %v553_v9  ;;  %v3414_v20 = vpack.c.bf16 %v5306_v63, %v5305_v38  ;;  %v5308_v8 = vand.u32 4294901760, %v4004_v23  ;;  %v5309_v30 = vand.u32 4294901760, %v4008_v25 }
  0x85   : > { %3347 = vmatprep.subr.bf16.mxu1 %v3346_v56  ;;  %v3348_v37 = vpack.c.bf16 %v675_v2, %v668_v14  ;;  %v5310_v2 = vand.u32 4294901760, %v4014_v27  ;;  %v5311_v17 = vand.u32 4294901760, %v4029_v39  ;;  %v5313_v18 = vand.u32 4294901760, %v4033_v41  ;;  %v5318_v56 = vld [vmem:[#allocation27_spill] sm:$0xff] }
  0x86   : > { %560 = vmatmul.mubr.f32.gmra.mrb[14].mxu1 %v559_v32  ;;  %v3416_v59 = vpack.c.bf16 %v5308_v8, %v5307_v5  ;;  %3415 = vmatprep.subr.bf16.mxu0 %v3414_v20  ;;  %v5314_v23 = vand.u32 4294901760, %v4046_v46  ;;  %v3356_v25 = vpack.c.bf16 %v4031_v40, %v4029_v39  ;;  %v3358_v27 = vpack.c.bf16 %v4046_v46, %v4033_v41  ;;  %v5315_v20 = vld [vmem:[#allocation14_spill] sm:$0xff] }
  0x87   : > { %790 = vmatprep.mubr.f32.mxu1 %v4160_v19  ;;  %3349 = vmatpush3.bf16.msra.mxu1 %v3348_v37  ;;  %v3418_v26 = vpack.c.bf16 %v5310_v2, %v5309_v30  ;;  %v5312_v37 = vand.u32 4294901760, %v4031_v40  ;;  %v5317_v14 = vand.u32 4294901760, %v4055_v50  ;;  %v5319_v38 = vand.u32 4294901760, %v4057_v52  ;;  %v5321_v39 = vld [vmem:[#allocation30_spill] sm:$0xff]  ;;  %v5324_v30 = vld [vmem:[#allocation31_spill] sm:$0xff] }
  0x88   : > { %3351 = vmatprep.subr.bf16.mxu1 %v3350_v22  ;;  %3417 = vmatpush3.bf16.msra.mxu0 %v3416_v59  ;;  %v3422_v9 = vpack.c.bf16 %v5314_v23, %v5313_v18  ;;  %v5316_v22 = vand.u32 4294901760, %v5315_v20  ;;  %v3360_v40 = vpack.c.bf16 %v4055_v50, %v5315_v20  ;;  %v3362_v41 = vpack.c.bf16 %v4069_v61, %v4057_v52 }
  0x89   : > { %v3420_v63 = vpack.c.bf16 %v5312_v37, %v5311_v17  ;;  %3419 = vmatprep.subr.bf16.mxu0 %v3418_v26  ;;  %v5322_v46 = vand.u32 4294901760, %v4071_v62  ;;  %v5323_v8 = vand.u32 4294901760, %v4084_v4  ;;  %v5325_v2 = vand.u32 4294901760, %v4088_v6 }
  0x8a   : > { %792 = vmatmul.mubr.f32.vlgmr.msra.gmra.mrb[16].mxu1 %v4163_v7  ;;  %v3424_v32 = vpack.c.bf16 %v5317_v14, %v5316_v22  ;;  %v5326_v26 = vand.u32 4294901760, %v4099_v10  ;;  %v3364_v50 = vpack.c.bf16 %v4084_v4, %v4071_v62  ;;  %v3366_v52 = vpack.c.bf16 %v4099_v10, %v4088_v6 }
  0x8b   : > { %3353 = vmatpush3.bf16.msra.mxu1 %v3352_v53  ;;  %797 = vmatprep.mubr.f32.mxu1 %v4201_v1  ;;  %v5320_v53 = vand.u32 4294901760, %v4069_v61  ;;  %v3428_v59 = vpack.c.bf16 %v5323_v8, %v5322_v46  ;;  %v5327_v61 = vand.u32 4294901760, %v4103_v12  ;;  %v5328_v17 = vand.u32 4294901760, %v4105_v13  ;;  %v5350_v46 = vld [vmem:[#allocation12_spill] sm:$0xff]  ;;  %v5351_v8 = vld [vmem:[#allocation33_spill] sm:$0xff] }
  0x8c   : > { %3355 = vmatprep.subr.bf16.mxu1 %v3354_v16  ;;  %3421 = vmatpush3.bf16.msra.mxu0 %v3420_v63  ;;  %v3430_v16 = vpack.c.bf16 %v5326_v26, %v5325_v2  ;;  %v5329_v63 = vld [vmem:[#allocation34_spill] sm:$0xff]  ;;  %v5330_v18 = vand.u32 4294901760, %v4129_v42  ;;  %v5331_v23 = vand.u32 4294901760, %v4131_v43  ;;  %v3368_v62 = vpack.c.bf16 %v4105_v13, %v4103_v12  ;;  %v5353_v2 = vld [vmem:[#allocation35_spill] sm:$0xff] }
  0x8d   : > { %3423 = vmatprep.subr.bf16.mxu0 %v3422_v9  ;;  %v3426_v5 = vpack.c.bf16 %v5320_v53, %v5319_v38  ;;  %v3432_v37 = vpack.c.bf16 %v5328_v17, %v5327_v61  ;;  %v3370_v4 = vpack.c.bf16 %v4131_v43, %v4129_v42  ;;  %v5332_v6 = vand.u32 4294901760, %v4135_v49  ;;  %v5354_v26 = vld [vmem:[#allocation15_spill] sm:$0xff]  ;;  %v5358_v61 = vld [vmem:[#allocation37_spill] sm:$0xff]  ;;  %v5359_v17 = vld [vmem:[#allocation18_spill] sm:$0xff] }
  0x8e   : > { %799 = vmatmul.mubr.f32.gmra.mrb[18].mxu1 %v5318_v56  ;;  %v3434_v9 = vpack.c.bf16 %v5331_v23, %v5330_v18  ;;  %v5333_v10 = vand.u32 4294901760, %v4137_v51  ;;  %v5335_v20 = vand.u32 4294901760, %v4144_v55  ;;  %v3372_v12 = vpack.c.bf16 %v4137_v51, %v4135_v49  ;;  %v5361_v18 = vld [vmem:[#allocation19_spill] sm:$0xff] }
  0x8f   : > { %3357 = vmatpush3.bf16.msra.mxu1 %v3356_v25  ;;  %804 = vmatprep.mubr.f32.mxu1 %v5321_v39  ;;  %v3374_v13 = vpack.c.bf16 %v4144_v55, %v4141_v54  ;;  %v5336_v42 = vand.u32 4294901760, %v4148_v57  ;;  %v5337_v43 = vand.u32 4294901760, %v4150_v58  ;;  %v5339_v38 = vand.u32 4294901760, %v4171_v31  ;;  %v5362_v23 = vld [vmem:[#allocation39_spill] sm:$0xff] }
  0x90   : > { %3359 = vmatprep.subr.bf16.mxu1 %v3358_v27  ;;  %3425 = vmatpush3.bf16.msra.mxu0 %v3424_v32  ;;  %v3436_v25 = vpack.c.bf16 %v5333_v10, %v5332_v6  ;;  %v5334_v27 = vand.u32 4294901760, %v4141_v54  ;;  %v5338_v32 = vand.u32 4294901760, %v4169_v21  ;;  %v3376_v49 = vpack.c.bf16 %v4150_v58, %v4148_v57  ;;  %v5341_v57 = vld [vmem:[#allocation25_spill] sm:$0xff]  ;;  %v5342_v58 = vld [vmem:[#allocation8_spill] sm:$0xff]  ;;  %v5366_v6 = vld [vmem:[#allocation22_spill] sm:$0xff] }
  0x91   : > { %3427 = vmatprep.subr.bf16.mxu0 %v3426_v5  ;;  %v3440_v14 = vpack.c.bf16 %v5337_v43, %v5336_v42  ;;  %v3378_v51 = vpack.c.bf16 %v4171_v31, %v4169_v21  ;;  %v5340_v54 = vand.u32 4294901760, %v4176_v33  ;;  %v3380_v5 = vpack.c.bf16 %v4178_v34, %v4176_v33  ;;  %v5343_v21 = vld [vmem:[#allocation26_spill] sm:$0xff]  ;;  %v5344_v31 = vld [vmem:[#allocation9_spill] sm:$0xff]  ;;  %v5367_v10 = vld [vmem:[#allocation23_spill] sm:$0xff] }
  0x92   : > { %806 = vmatmul.mubr.f32.gmra.mrb[20].mxu1 %v5324_v30  ;;  %v3438_v22 = vpack.c.bf16 %v5335_v20, %v5334_v27  ;;  %v3442_v53 = vpack.c.bf16 %v5339_v38, %v5338_v32  ;;  %v5346_v33 = vld [vmem:[#allocation10_spill] sm:$0xff]  ;;  %v5347_v34 = vld [vmem:[#allocation29_spill] sm:$0xff]  ;;  %v5369_v27 = vand.u32 4294901760, %v5341_v57  ;;  %v5370_v20 = vand.u32 4294901760, %v5343_v21 }
  0x93   : > { %3361 = vmatpush3.bf16.msra.mxu1 %v3360_v40  ;;  %811 = vmatprep.mubr.f32.mxu1 %v4306_v0  ;;  %v3444_v55 = vpack.c.bf16 %v673_v45, %v5340_v54  ;;  %v5345_v45 = vld [vmem:[#allocation28_spill] sm:$0xff]  ;;  %v5348_v40 = vld [vmem:[#allocation11_spill] sm:$0xff]  ;;  %v5374_v42 = vand.u32 4294901760, %v5351_v8  ;;  %v5375_v43 = vand.u32 4294901760, %v5353_v2  ;;  %v5378_v38 = vand.u32 4294901760, %v5358_v61 }
  0x94   : > { %3363 = vmatprep.subr.bf16.mxu1 %v3362_v41  ;;  %3429 = vmatpush3.bf16.msra.mxu0 %v3428_v59  ;;  %v5349_v41 = vld [vmem:[#allocation32_spill] sm:$0xff]  ;;  %v5352_v59 = vld [vmem:[#allocation13_spill] sm:$0xff]  ;;  %v5383_v54 = vand.u32 4294901760, %v4467_v60 }
  0x95   : > { %3431 = vmatprep.subr.bf16.mxu0 %v3430_v16  ;;  %v5355_v16 = vld [vmem:[#allocation16_spill] sm:$0xff] }
  0x96   : > { %813 = vmatmul.mubr.f32.gmra.mrb[22].mxu1 %v5329_v63 }
  0x97   : > { %3365 = vmatpush3.bf16.msra.mxu1 %v3364_v50  ;;  %818 = vmatprep.mubr.f32.mxu1 %v4347_v35  ;;  %v5356_v50 = vld [vmem:[#allocation36_spill] sm:$0xff] }
  0x98   : > { %3367 = vmatprep.subr.bf16.mxu1 %v3366_v52  ;;  %3433 = vmatpush3.bf16.msra.mxu0 %v3432_v37  ;;  %v5357_v52 = vld [vmem:[#allocation17_spill] sm:$0xff]  ;;  %v5360_v37 = vld [vmem:[#allocation38_spill] sm:$0xff]  ;;  %v5377_v32 = vand.u32 4294901760, %v5356_v50 }
  0x99   : > { %3435 = vmatprep.subr.bf16.mxu0 %v3434_v9  ;;  %v5363_v9 = vld [vmem:[#allocation20_spill] sm:$0xff] }
  0x9a   : > { %820 = vmatmul.mubr.f32.gmra.mrb[24].mxu1 %v4349_v3 }
  0x9b   : > { %3369 = vmatpush3.bf16.msra.mxu1 %v3368_v62  ;;  %825 = vmatprep.mubr.f32.mxu1 %v4382_v28  ;;  %v5364_v62 = vld [vmem:[#allocation40_spill] sm:$0xff] }
  0x9c   : > { %3371 = vmatprep.subr.bf16.mxu1 %v3370_v4  ;;  %3437 = vmatpush3.bf16.msra.mxu0 %v3436_v25  ;;  %v5365_v4 = vld [vmem:[#allocation21_spill] sm:$0xff]  ;;  %v5368_v25 = vld [vmem:[#allocation24_spill] sm:$0xff] }
  0x9d   : > { %3439 = vmatprep.subr.bf16.mxu0 %v3438_v22  ;;  %v5371_v22 = vand.u32 4294901760, %v5345_v45 }
  0x9e   : > { %827 = vmatmul.mubr.f32.gmra.mrb[26].mxu1 %v4387_v44 }
  0x9f   : > { %3373 = vmatpush3.bf16.msra.mxu1 %v3372_v12  ;;  %832 = vmatprep.mubr.f32.mxu1 %v4423_v24  ;;  %v5372_v12 = vand.u32 4294901760, %v5347_v34 }
  0xa0   : > { %3375 = vmatprep.subr.bf16.mxu1 %v3374_v13  ;;  %3441 = vmatpush3.bf16.msra.mxu0 %v3440_v14  ;;  %v5373_v13 = vand.u32 4294901760, %v5349_v41  ;;  %v5376_v14 = vand.u32 4294901760, %v4318_v15 }
  0xa1   : > { %3443 = vmatprep.subr.bf16.mxu0 %v3442_v53  ;;  %v5379_v53 = vand.u32 4294901760, %v5360_v37 }
  0xa2   : > { %834 = vmatmul.mubr.f32.gmra.mrb[28].mxu1 %v4426_v48 }
  0xa3   : > { %3377 = vmatpush3.bf16.msra.mxu1 %v3376_v49  ;;  %839 = vmatprep.mubr.f32.mxu1 %v4458_v47  ;;  %v5381_v49 = vand.u32 4294901760, %v5364_v62 }
  0xa4   : > { %3379 = vmatprep.subr.bf16.mxu1 %v3378_v51  ;;  %3445 = vmatpush3.bf16.msra.mxu0 %v3444_v55  ;;  %v5382_v51 = vand.u32 4294901760, %v4435_v29  ;;  %v5384_v55 = vand.u32 4294901760, %v4473_v36 }
  0xa6   : > { %841 = vmatmul.mubr.f32.gmra.mrb[30].mxu1 %v4464_v11 }
  0xa7   : > { %3381 = vmatpush3.bf16.msra.mxu1 %v3380_v5  ;;  %976 = vmatprep.mubr.f32.mxu1 %v5341_v57  ;;  %v1624_v5 = vld [vmem:[%s5149_s4 + $0x10] sm:$0xff] }
  0xa8   : > { %3383 = vmatprep.subr.bf16.mxu1 %v5342_v58  ;;  %1395 = vmatmul.mubr.f32.vlgmr.msra.gmra.mrb[0].mxu0 %v4163_v7 }
  0xa9   : > { %1400 = vmatprep.mubr.f32.mxu0 %v4201_v1 }
  0xaa   : > { %979 = vmatmul.mubr.f32.vlgmr.msra.gmra.mrb[32].mxu1 %v5343_v21  ;;  %v1657_v21 = vand.u32 4294901760, %v1624_v5 }
  0xab   : > { %3385 = vmatpush3.bf16.msra.mxu1 %v5344_v31  ;;  %985 = vmatprep.mubr.f32.mxu1 %v5345_v45 }
  0xac   : > { %3387 = vmatprep.subr.bf16.mxu1 %v5346_v33  ;;  %1402 = vmatmul.mubr.f32.gmra.mrb[2].mxu0 %v5318_v56 }
  0xad   : > { %1407 = vmatprep.mubr.f32.mxu0 %v5321_v39 }
  0xae   : > { %988 = vmatmul.mubr.f32.gmra.mrb[34].mxu1 %v5347_v34 }
  0xaf   : > { %3389 = vmatpush3.bf16.msra.mxu1 %v5348_v40  ;;  %994 = vmatprep.mubr.f32.mxu1 %v5349_v41  ;;  %v4738_v41 = vsub.f32 %v1624_v5, %v1657_v21 }
  0xb0   : > { %3391 = vmatprep.subr.bf16.mxu1 %v5350_v46  ;;  %1409 = vmatmul.mubr.f32.gmra.mrb[4].mxu0 %v5324_v30 }
  0xb1   : > { %1414 = vmatprep.mubr.f32.mxu0 %v4306_v0 }
  0xb2   : > { %997 = vmatmul.mubr.f32.gmra.mrb[36].mxu1 %v5351_v8  ;;  %v3798_v8 = vmov 0.0  }
  0xb3   : > { %3393 = vmatpush3.bf16.msra.mxu1 %v5352_v59  ;;  %1003 = vmatprep.mubr.f32.mxu1 %v5353_v2 }
  0xb4   : > { %3395 = vmatprep.subr.bf16.mxu1 %v5354_v26  ;;  %1416 = vmatmul.mubr.f32.gmra.mrb[6].mxu0 %v5329_v63 }
  0xb5   : > { %1421 = vmatprep.mubr.f32.mxu0 %v4347_v35 }
  0xb6   : > { %1006 = vmatmul.mubr.f32.gmra.mrb[38].mxu1 %v4318_v15  ;;  %v5380_v15 = vand.u32 4294901760, %v5362_v23 }
  0xb7   : > { %3397 = vmatpush3.bf16.msra.mxu1 %v5355_v16  ;;  %1012 = vmatprep.mubr.f32.mxu1 %v5356_v50 }
  0xb8   : > { %3399 = vmatprep.subr.bf16.mxu1 %v5357_v52  ;;  %1423 = vmatmul.mubr.f32.gmra.mrb[8].mxu0 %v4349_v3 }
  0xb9   : > { %1428 = vmatprep.mubr.f32.mxu0 %v4382_v28 }
  0xba   : > { %1015 = vmatmul.mubr.f32.gmra.mrb[40].mxu1 %v5358_v61 }
  0xbb   : > { %3401 = vmatpush3.bf16.msra.mxu1 %v5359_v17  ;;  %1021 = vmatprep.mubr.f32.mxu1 %v5360_v37 }
  0xbc   : > { %3403 = vmatprep.subr.bf16.mxu1 %v5361_v18  ;;  %1430 = vmatmul.mubr.f32.gmra.mrb[10].mxu0 %v4387_v44 }
  0xbd   : > { %1435 = vmatprep.mubr.f32.mxu0 %v4423_v24 }
  0xbe   : > { %1024 = vmatmul.mubr.f32.gmra.mrb[42].mxu1 %v5362_v23 }
  0xbf   : > { %3405 = vmatpush3.bf16.msra.mxu1 %v5363_v9  ;;  %1030 = vmatprep.mubr.f32.mxu1 %v5364_v62 }
  0xc0   : > { %3407 = vmatprep.subr.bf16.mxu1 %v5365_v4  ;;  %1437 = vmatmul.mubr.f32.gmra.mrb[12].mxu0 %v4426_v48 }
  0xc1   : > { %1442 = vmatprep.mubr.f32.mxu0 %v4458_v47 }
  0xc2   : > { %1033 = vmatmul.mubr.f32.gmra.mrb[44].mxu1 %v4435_v29 }
  0xc3   : > { %3409 = vmatpush3.bf16.msra.mxu1 %v5366_v6  ;;  %1039 = vmatprep.mubr.f32.mxu1 %v4467_v60 }
  0xc4   : > { %3411 = vmatprep.subr.bf16.mxu1 %v5367_v10  ;;  %1444 = vmatmul.mubr.f32.gmra.mrb[14].mxu0 %v4464_v11 }
  0xc5   : > { %1719 = vmatprep.mubr.f32.mxu0 %v3798_v8 }
  0xc6   : > { %1042 = vmatmul.mubr.f32.gmra.mrb[46].mxu1 %v4473_v36 }
  0xc7   : > { %3413 = vmatpush3.bf16.msra.mxu1 %v5368_v25  ;;  %1146 = vmatprep.mubr.f32.mxu1 %v5369_v27 }
  0xc8   : > { %3447 = vmatprep.subr.bf16.mxu1 %v5342_v58 }
  0xca   : > { %1150 = vmatmul.mubr.f32.vlgmr.msra.gmra.mrb[48].mxu1 %v5370_v20 }
  0xcb   : > { %3449 = vmatpush3.bf16.msra.mxu1 %v5344_v31  ;;  %1157 = vmatprep.mubr.f32.mxu1 %v5371_v22 }
  0xcc   : > { %3451 = vmatprep.subr.bf16.mxu1 %v5346_v33 }
  0xce   : > { %1161 = vmatmul.mubr.f32.gmra.mrb[50].mxu1 %v5372_v12 }
  0xcf   : > { %3453 = vmatpush3.bf16.msra.mxu1 %v5348_v40  ;;  %1168 = vmatprep.mubr.f32.mxu1 %v5373_v13  ;;  %v1828_v13 = vand.u32 4294901760, %v4738_v41 }
  0xd0   : > { %3455 = vmatprep.subr.bf16.mxu1 %v5350_v46 }
  0xd2   : > { %1172 = vmatmul.mubr.f32.gmra.mrb[52].mxu1 %v5374_v42 }
  0xd3   : > { %3457 = vmatpush3.bf16.msra.mxu1 %v5352_v59  ;;  %1179 = vmatprep.mubr.f32.mxu1 %v5375_v43 }
  0xd4   : > { %3459 = vmatprep.subr.bf16.mxu1 %v5354_v26 }
  0xd6   : > { %1183 = vmatmul.mubr.f32.gmra.mrb[54].mxu1 %v5376_v14 }
  0xd7   : > { %3461 = vmatpush3.bf16.msra.mxu1 %v5355_v16  ;;  %1190 = vmatprep.mubr.f32.mxu1 %v5377_v32 }
  0xd8   : > { %3463 = vmatprep.subr.bf16.mxu1 %v5357_v52 }
  0xda   : > { %1194 = vmatmul.mubr.f32.gmra.mrb[56].mxu1 %v5378_v38  ;;  %v1829_v38 = vsub.f32 %v4738_v41, %v1828_v13 }
  0xdb   : > { %3465 = vmatpush3.bf16.msra.mxu1 %v5359_v17  ;;  %1201 = vmatprep.mubr.f32.mxu1 %v5379_v53 }
  0xdc   : > { %3467 = vmatprep.subr.bf16.mxu1 %v5361_v18 }
  0xde   : > { %1205 = vmatmul.mubr.f32.gmra.mrb[58].mxu1 %v5380_v15 }
  0xdf   : > { %3469 = vmatpush3.bf16.msra.mxu1 %v5363_v9  ;;  %1212 = vmatprep.mubr.f32.mxu1 %v5381_v49 }
  0xe0   : > { %3471 = vmatprep.subr.bf16.mxu1 %v5365_v4 }
  0xe2   : > { %1216 = vmatmul.mubr.f32.gmra.mrb[60].mxu1 %v5382_v51 }
  0xe3   : > { %3473 = vmatpush3.bf16.msra.mxu1 %v5366_v6  ;;  %1223 = vmatprep.mubr.f32.mxu1 %v5383_v54 }
  0xe4   : > { %3475 = vmatprep.subr.bf16.mxu1 %v5367_v10 }
  0xe6   : > { %1227 = vmatmul.mubr.f32.gmra.mrb[62].mxu1 %v5384_v55 }
  0xe7   : > { %3477 = vmatpush3.bf16.msra.mxu1 %v5368_v25  ;;  %1546 = vmatprep.mubr.f32.mxu1 %v4160_v19 }
  0xea   : > { %1548 = vmatmul.mubr.f32.vlgmr.msra.gmra.mrb[64].mxu1 %v4163_v7 }
  0xeb   : > { %1553 = vmatprep.mubr.f32.mxu1 %v4201_v1 }
  0xee   : > { %1555 = vmatmul.mubr.f32.gmra.mrb[66].mxu1 %v5318_v56 }
  0xef   : > { %1560 = vmatprep.mubr.f32.mxu1 %v5321_v39 }
  0xf2   : > { %1562 = vmatmul.mubr.f32.gmra.mrb[68].mxu1 %v5324_v30 }
  0xf3   : > { %1567 = vmatprep.mubr.f32.mxu1 %v4306_v0 }
  0xf6   : > { %1569 = vmatmul.mubr.f32.gmra.mrb[70].mxu1 %v5329_v63  ;;  %v1622_v63 = vld [vmem:[%s5149_s4] sm:$0xff] }
  0xf7   : > { %1574 = vmatprep.mubr.f32.mxu1 %v4347_v35  ;;  %v1653_v58 = vand.u32 4294901760, %v1622_v63 }
  0xf9   : > { %v4732_v45 = vpack.c.bf16 %v1657_v21, %v1653_v58  ;;  %v4736_v40 = vsub.f32 %v1622_v63, %v1653_v58 }
  0xfa   : > { %1576 = vmatmul.mubr.f32.gmra.mrb[72].mxu1 %v4349_v3 }
  0xfb   : > { %1581 = vmatprep.mubr.f32.mxu1 %v4382_v28  ;;  %v1816_v22 = vand.u32 4294901760, %v4736_v40 }
  0xfd   : > { %v1817_v32 = vsub.f32 %v4736_v40, %v1816_v22 }
  0xfe   : > { %1583 = vmatmul.mubr.f32.gmra.mrb[74].mxu1 %v4387_v44 }
  0xff   : > { %1588 = vmatprep.mubr.f32.mxu1 %v4423_v24  ;;  %v1625_v24 = vld [vmem:[%s5149_s4 + $0x18] sm:$0xff]  ;;  %v1818_v54 = vand.u32 4294901760, %v1817_v32 }
 0x100   : > { %v1655_v30 = vand.u32 4294901760, %v1625_v24 }
 0x102   : > { %1590 = vmatmul.mubr.f32.gmra.mrb[76].mxu1 %v4426_v48  ;;  %v1623_v48 = vld [vmem:[%s5149_s4 + $0x8] sm:$0xff]  ;;  %v4743_v62 = vsub.f32 %v1625_v24, %v1655_v30 }
 0x103   : > { %1595 = vmatprep.mubr.f32.mxu1 %v4458_v47  ;;  %v1651_v47 = vand.u32 4294901760, %v1623_v48 }
 0x104   : > { %v1822_v20 = vand.u32 4294901760, %v4743_v62 }
 0x105   : > { %v4730_v31 = vpack.c.bf16 %v1655_v30, %v1651_v47  ;;  %v4741_v9 = vsub.f32 %v1623_v48, %v1651_v47 }
 0x106   : > { %1597 = vmatmul.mubr.f32.gmra.mrb[78].mxu1 %v4464_v11  ;;  %v1823_v14 = vsub.f32 %v4743_v62, %v1822_v20 }
 0x107   : > { %3479 = vmatprep.subr.bf16.mxu0 %v4730_v31  ;;  %v1810_v27 = vand.u32 4294901760, %v4741_v9 }
 0x108   : > { %3481 = vmatpush1.bf16.msra.mxu0 %v4732_v45  ;;  %v1824_v51 = vand.u32 4294901760, %v1823_v14 }
 0x109   : > { %v1811_v43 = vsub.f32 %v4741_v9, %v1810_v27 }
 0x10b   : > { %v1812_v49 = vand.u32 4294901760, %v1811_v43 }
 0x133   : > { %v2982_v19 = vpop.f32.mrb[0].mxu1 }
 0x134   : > { %v2983_v7 = vpop.f32.mrb[1].mxu1 }
 0x135   : > { %v2984_v1 = vadd.f32 %v2983_v7, %v2982_v19  ;;  %v1830_v19 = vand.u32 4294901760, %v1829_v38 }
 0x137   : > { %v2985_v0 = vpop.f32.mrb[2].mxu1 }
 0x138   : > { %v2986_v36 = vpop.f32.mrb[3].mxu1 }
 0x139   : > { %v2987_v35 = vadd.f32 %v2986_v36, %v2985_v0  ;;  %v4761_v0 = vpack.c.bf16 %v1830_v19, %v1818_v54 }
 0x13b   : > { %v2988_v29 = vpop.f32.mrb[4].mxu1 }
 0x13c   : > { %v2989_v3 = vpop.f32.mrb[5].mxu1 }
 0x13d   : > { %v2990_v60 = vadd.f32 %v2989_v3, %v2988_v29 }
 0x13f   : > { %v2991_v28 = vpop.f32.mrb[6].mxu1 }
 0x140   : > { %v2992_v56 = vpop.f32.mrb[7].mxu1 }
 0x141   : > { %v2993_v44 = vadd.f32 %v2992_v56, %v2991_v28 }
 0x146   : > { %v2994_v39 = vpop.f32.mrb[8].mxu1 }
 0x147   : > { %v2995_v11 = vpop.f32.mrb[9].mxu1 }
 0x148   : > { %v2996_v57 = vadd.f32 %v2995_v11, %v2994_v39 }
 0x14b   : > { %v2997_v33 = vpop.f32.mrb[10].mxu1 }
 0x14c   : > { %v2998_v34 = vpop.f32.mrb[11].mxu1 }
 0x14d   : > { %v2999_v46 = vadd.f32 %v2998_v34, %v2997_v33 }
 0x153   : > { %v3000_v59 = vpop.f32.mrb[12].mxu1 }
 0x154   : > { %v3001_v2 = vpop.f32.mrb[13].mxu1 }
 0x155   : > { %v3002_v26 = vadd.f32 %v3001_v2, %v3000_v59 }
 0x159   : > { %v3003_v16 = vpop.f32.mrb[14].mxu1 }
 0x15a   : > { %v3004_v50 = vpop.f32.mrb[15].mxu1 }
 0x15b   : > { %v3005_v52 = vadd.f32 %v3004_v50, %v3003_v16 }
 0x15d   : > { %v3038_v61 = vpop.f32.mrb[16].mxu1 }
 0x15e   : > { %v3039_v17 = vpop.f32.mrb[17].mxu1 }
 0x15f   : > { %v3040_v37 = vadd.f32 %v3039_v17, %v3038_v61 }
 0x161   : > { %v794_v18 = vadd.f32 %v3040_v37, %v2984_v1  ;;  %v3041_v23 = vpop.f32.mrb[18].mxu1  ;;  %v3482_v1 = vpack.c.bf16 %v1824_v51, %v1812_v49 }
 0x162   : > { %v3042_v4 = vpop.f32.mrb[19].mxu1 }
 0x163   : > { %v3043_v6 = vadd.f32 %v3042_v4, %v3041_v23  ;;  %3483 = vmatprep.subr.bf16.mxu0 %v3482_v1 }
 0x165   : > { %v801_v10 = vadd.f32 %v3043_v6, %v2987_v35  ;;  %v3044_v25 = vpop.f32.mrb[20].mxu1 }
 0x166   : > { %v3045_v12 = vpop.f32.mrb[21].mxu1 }
 0x167   : > { %v3046_v42 = vadd.f32 %v3045_v12, %v3044_v25 }
 0x169   : > { %v808_v53 = vadd.f32 %v3046_v42, %v2990_v60  ;;  %v3047_v15 = vpop.f32.mrb[22].mxu1 }
 0x16a   : > { %v3048_v55 = vpop.f32.mrb[23].mxu1 }
 0x16b   : > { %v3049_v7 = vadd.f32 %v3048_v55, %v3047_v15 }
 0x16d   : > { %v815_v36 = vadd.f32 %v3049_v7, %v2993_v44  ;;  %v3050_v35 = vpop.f32.mrb[24].mxu1 }
 0x16e   : > { %v3051_v29 = vpop.f32.mrb[25].mxu1 }
 0x16f   : > { %v3052_v3 = vadd.f32 %v3051_v29, %v3050_v35 }
 0x171   : > { %v822_v28 = vadd.f32 %v3052_v3, %v2996_v57  ;;  %v3053_v56 = vpop.f32.mrb[26].mxu1  ;;  %v3486_v57 = vpack.c.bf16 %v4743_v62, %v4741_v9  ;;  %v3639_v9 = vld [vmem:[%s5150_s5 + $0x20] ss:$8 sps:$4 sm:$0xff]   ;;  %v3644_v62 = vld [vmem:[%s5150_s5 + $0x34] ss:$8 sps:$4 sm:$0xff]  }
 0x172   : > { %v3054_v39 = vpop.f32.mrb[27].mxu1 }
 0x173   : > { %v3055_v48 = vadd.f32 %v3054_v39, %v3053_v56 }
 0x175   : > { %v829_v60 = vadd.f32 %v3055_v48, %v2999_v46  ;;  %v3056_v24 = vpop.f32.mrb[28].mxu1  ;;  %v3488_v46 = vpack.c.bf16 %v4738_v41, %v4736_v40  ;;  %v3665_v40 = vld [vmem:[%s5150_s5 + $0xa4] ss:$8 sps:$4 sm:$0xff]   ;;  %v3663_v41 = vld [vmem:[%s5150_s5 + $0xa0] ss:$8 sps:$4 sm:$0xff]  }
 0x176   : > { %v3057_v11 = vpop.f32.mrb[29].mxu1 }
 0x177   : > { %v3058_v47 = vadd.f32 %v3057_v11, %v3056_v24 }
 0x179   : > { %v836_v30 = vadd.f32 %v3058_v47, %v3002_v26  ;;  %v3059_v63 = vpop.f32.mrb[30].mxu1 }
 0x17a   : > { %v3060_v5 = vpop.f32.mrb[31].mxu1 }
 0x17b   : > { %v3061_v58 = vadd.f32 %v3060_v5, %v3059_v63  ;;  %v3206_v21 = vpop.f32.mrb[0].mxu0 }
 0x17c   : > { %v3207_v33 = vpop.f32.mrb[1].mxu0 }
 0x17d   : > { %v843_v34 = vadd.f32 %v3061_v58, %v3005_v52  ;;  %v3094_v44 = vpop.f32.mrb[32].mxu1  ;;  %v3208_v59 = vadd.f32 %v3207_v33, %v3206_v21 }
 0x17e   : > { %v3095_v2 = vpop.f32.mrb[33].mxu1 }
 0x17f   : > { %v3096_v16 = vadd.f32 %v3095_v2, %v3094_v44  ;;  %v3209_v50 = vpop.f32.mrb[2].mxu0 }
 0x180   : > { %v3210_v61 = vpop.f32.mrb[3].mxu0 }
 0x181   : > { %v981_v17 = vadd.f32 %v3096_v16, %v794_v18  ;;  %v3097_v26 = vpop.f32.mrb[34].mxu1  ;;  %v3211_v37 = vadd.f32 %v3210_v61, %v3209_v50 }
 0x182   : > { %v3098_v23 = vpop.f32.mrb[35].mxu1 }
 0x183   : > { %v3099_v4 = vadd.f32 %v3098_v23, %v3097_v26  ;;  %v3212_v6 = vpop.f32.mrb[4].mxu0 }
 0x184   : > { %v3213_v25 = vpop.f32.mrb[5].mxu0 }
 0x185   : > { %v990_v52 = vadd.f32 %v3099_v4, %v801_v10  ;;  %v3100_v12 = vpop.f32.mrb[36].mxu1  ;;  %v3214_v42 = vadd.f32 %v3213_v25, %v3212_v6 }
 0x186   : > { %v3101_v43 = vpop.f32.mrb[37].mxu1 }
 0x187   : > { %v3102_v14 = vadd.f32 %v3101_v43, %v3100_v12  ;;  %v3215_v32 = vpop.f32.mrb[6].mxu0 }
 0x188   : > { %v3216_v38 = vpop.f32.mrb[7].mxu0 }
 0x189   : > { %v999_v15 = vadd.f32 %v3102_v14, %v808_v53  ;;  %v3103_v49 = vpop.f32.mrb[38].mxu1  ;;  %v3217_v51 = vadd.f32 %v3216_v38, %v3215_v32 }
 0x18a   : > { %v3104_v54 = vpop.f32.mrb[39].mxu1 }
 0x18b   : > { %v3105_v55 = vadd.f32 %v3104_v54, %v3103_v49  ;;  %v3218_v19 = vpop.f32.mrb[8].mxu0 }
 0x18c   : > { %v3219_v18 = vpop.f32.mrb[9].mxu0 }
 0x18d   : > { %v1008_v7 = vadd.f32 %v3105_v55, %v815_v36  ;;  %v3106_v1 = vpop.f32.mrb[40].mxu1  ;;  %v3220_v35 = vadd.f32 %v3219_v18, %v3218_v19 }
 0x18e   : > { %v3107_v29 = vpop.f32.mrb[41].mxu1 }
 0x18f   : > { %v3108_v3 = vadd.f32 %v3107_v29, %v3106_v1  ;;  %v3221_v56 = vpop.f32.mrb[10].mxu0 }
 0x190   : > { %v3222_v10 = vpop.f32.mrb[11].mxu0 }
 0x191   : > { %v1017_v39 = vadd.f32 %v3108_v3, %v822_v28  ;;  %v3109_v48 = vpop.f32.mrb[42].mxu1  ;;  %v3223_v24 = vadd.f32 %v3222_v10, %v3221_v56 }
 0x192   : > { %v3110_v11 = vpop.f32.mrb[43].mxu1 }
 0x193   : > { %v3111_v47 = vadd.f32 %v3110_v11, %v3109_v48  ;;  %v3224_v63 = vpop.f32.mrb[12].mxu0 }
 0x194   : > { %v3225_v53 = vpop.f32.mrb[13].mxu0 }
 0x195   : > { %v1026_v5 = vadd.f32 %v3111_v47, %v829_v60  ;;  %v3112_v58 = vpop.f32.mrb[44].mxu1  ;;  %v3226_v21 = vadd.f32 %v3225_v53, %v3224_v63 }
 0x196   : > { %v3113_v33 = vpop.f32.mrb[45].mxu1 }
 0x197   : > { %v3114_v44 = vadd.f32 %v3113_v33, %v3112_v58  ;;  %v3227_v2 = vpop.f32.mrb[14].mxu0 }
 0x198   : > { %v3228_v36 = vpop.f32.mrb[15].mxu0 }
 0x199   : > { %v1035_v16 = vadd.f32 %v3114_v44, %v836_v30  ;;  %v3115_v50 = vpop.f32.mrb[46].mxu1  ;;  %v3229_v61 = vadd.f32 %v3228_v36, %v3227_v2 }
 0x19a   : > { %v3116_v26 = vpop.f32.mrb[47].mxu1 }
 0x19b   : > { %v3117_v23 = vadd.f32 %v3116_v26, %v3115_v50 }
 0x19d   : > { %v1044_v4 = vadd.f32 %v3117_v23, %v843_v34  ;;  %v3150_v28 = vpop.f32.mrb[48].mxu1 }
 0x19e   : > { %v3151_v6 = vpop.f32.mrb[49].mxu1 }
 0x19f   : > { %v3152_v25 = vadd.f32 %v3151_v6, %v3150_v28 }
 0x1a1   : > { %v1152_v12 = vadd.f32 %v3152_v25, %v981_v17  ;;  %v3153_v43 = vpop.f32.mrb[50].mxu1 }
 0x1a2   : > { %v3154_v14 = vpop.f32.mrb[51].mxu1 }
 0x1a3   : > { %v1397_v32 = vadd.f32 %v3208_v59, %v1152_v12  ;;  %v3155_v60 = vadd.f32 %v3154_v14, %v3153_v43 }
 0x1a5   : > { %v1163_v38 = vadd.f32 %v3155_v60, %v990_v52  ;;  %v3156_v49 = vpop.f32.mrb[52].mxu1 }
 0x1a6   : > { %v3157_v54 = vpop.f32.mrb[53].mxu1 }
 0x1a7   : > { %v1404_v55 = vadd.f32 %v3211_v37, %v1163_v38  ;;  %v3158_v19 = vadd.f32 %v3157_v54, %v3156_v49 }
 0x1a9   : > { %v1174_v18 = vadd.f32 %v3158_v19, %v999_v15  ;;  %v3159_v30 = vpop.f32.mrb[54].mxu1 }
 0x1aa   : > { %v3160_v1 = vpop.f32.mrb[55].mxu1 }
 0x1ab   : > { %v1411_v29 = vadd.f32 %v3214_v42, %v1174_v18  ;;  %v3161_v3 = vadd.f32 %v3160_v1, %v3159_v30 }
 0x1ad   : > { %v1185_v56 = vadd.f32 %v3161_v3, %v1008_v7  ;;  %v3162_v34 = vpop.f32.mrb[56].mxu1 }
 0x1ae   : > { %v3163_v10 = vpop.f32.mrb[57].mxu1 }
 0x1af   : > { %v1418_v48 = vadd.f32 %v3217_v51, %v1185_v56  ;;  %v3164_v11 = vadd.f32 %v3163_v10, %v3162_v34 }
 0x1b1   : > { %v1196_v17 = vadd.f32 %v3164_v11, %v1017_v39  ;;  %v3165_v47 = vpop.f32.mrb[58].mxu1 }
 0x1b2   : > { %v3166_v63 = vpop.f32.mrb[59].mxu1 }
 0x1b3   : > { %v1425_v59 = vadd.f32 %v3220_v35, %v1196_v17  ;;  %v3167_v53 = vadd.f32 %v3166_v63, %v3165_v47 }
 0x1b5   : > { %v1207_v52 = vadd.f32 %v3167_v53, %v1026_v5  ;;  %v3168_v58 = vpop.f32.mrb[60].mxu1 }
 0x1b6   : > { %v3169_v33 = vpop.f32.mrb[61].mxu1 }
 0x1b7   : > { %v4767_v37 = vadd.f32 %v3223_v24, %v1207_v52  ;;  %v3170_v15 = vadd.f32 %v3169_v33, %v3168_v58 }
 0x1b9   : > { %v1218_v44 = vadd.f32 %v3170_v15, %v1035_v16  ;;  %v3171_v2 = vpop.f32.mrb[62].mxu1 }
 0x1ba   : > { %v3172_v42 = vpop.f32.mrb[63].mxu1 }
 0x1bb   : > { %v4769_v36 = vadd.f32 %v3226_v21, %v1218_v44  ;;  %v3173_v7 = vadd.f32 %v3172_v42, %v3171_v2 }
 0x1bd   : > { %v1229_v50 = vadd.f32 %v3173_v7, %v1044_v4  ;;  %v3262_v51 = vpop.f32.mrb[64].mxu1 }
 0x1be   : > { %v3263_v26 = vpop.f32.mrb[65].mxu1 }
 0x1bf   : > { %v4771_v39 = vadd.f32 %v3229_v61, %v1229_v50  ;;  %v3264_v23 = vadd.f32 %v3263_v26, %v3262_v51 }
 0x1c1   : > { %v1550_v35 = vadd.f32 %v3264_v23, %v1397_v32  ;;  %v3265_v5 = vpop.f32.mrb[66].mxu1 }
 0x1c2   : > { %v3266_v28 = vpop.f32.mrb[67].mxu1 }
 0x1c3   : > { %v1628_v24 = vsel %vm1626_vm0, %v1550_v35, 0  ;;  %v3267_v6 = vadd.f32 %v3266_v28, %v3265_v5  ;;  %v1602_v52 = vmul.f32 %v1550_v35, %v1550_v35 }
 0x1c4   : > { %v4774_v25 = vand.u32 4294901760, %v1628_v24 }
 0x1c5   : > { %v1557_v16 = vadd.f32 %v3267_v6, %v1404_v55  ;;  %v3268_v12 = vpop.f32.mrb[68].mxu1 }
 0x1c6   : > { %v4777_v21 = vsub.f32 %v1628_v24, %v4774_v25  ;;  %v3269_v4 = vpop.f32.mrb[69].mxu1 }
 0x1c7   : > { %v1631_v43 = vsel %vm1626_vm0, %v1557_v16, 0  ;;  %v3270_v61 = vadd.f32 %v3269_v4, %v3268_v12 }
 0x1c8   : > { %v1722_v14 = vand.u32 4294901760, %v4777_v21  ;;  %v4781_v60 = vand.u32 4294901760, %v1631_v43 }
 0x1c9   : > { %v1564_v32 = vadd.f32 %v3270_v61, %v1411_v29  ;;  %v3271_v38 = vpop.f32.mrb[70].mxu1 }
 0x1ca   : > { %v1723_v49 = vsub.f32 %v4777_v21, %v1722_v14  ;;  %v4787_v54 = vsub.f32 %v1631_v43, %v4781_v60  ;;  %v3272_v55 = vpop.f32.mrb[71].mxu1 }
 0x1cb   : > { %v1634_v19 = vsel %vm1626_vm0, %v1564_v32, 0  ;;  %v3273_v18 = vadd.f32 %v3272_v55, %v3271_v38  ;;  %v1604_v12 = vmul.f32 %v1564_v32, %v1564_v32 }
 0x1cc   : > { %v1724_v30 = vand.u32 4294901760, %v1723_v49  ;;  %v4790_v1 = vand.u32 4294901760, %v1634_v19  ;;  %v1733_v3 = vand.u32 4294901760, %v4787_v54 }
 0x1cd   : > { %v1571_v56 = vadd.f32 %v3273_v18, %v1418_v48  ;;  %v3274_v34 = vpop.f32.mrb[72].mxu1 }
 0x1ce   : > { %v4794_v29 = vsub.f32 %v1634_v19, %v4790_v1  ;;  %v3275_v10 = vpop.f32.mrb[73].mxu1  ;;  %1725 = vmatmul.mubr.f32.vlgmr.msra.gmra.mrb[16].mxu0 %v1724_v30  ;;  %v1734_v11 = vsub.f32 %v4787_v54, %v1733_v3 }
 0x1cf   : > { %v1637_v17 = vsel %vm1626_vm0, %v1571_v56, 0  ;;  %v3276_v47 = vadd.f32 %v3275_v10, %v3274_v34  ;;  %1730 = vmatprep.mubr.f32.mxu0 %v3798_v8  ;;  %3485 = vmatpush1.bf16.msra.mxu0 %v4761_v0  ;;  %v1605_v55 = vmul.f32 %v1571_v56, %v1571_v56 }
 0x1d0   : > { %v4802_v63 = vand.u32 4294901760, %v1637_v17  ;;  %v1735_v48 = vand.u32 4294901760, %v1734_v11  ;;  %v1744_v53 = vand.u32 4294901760, %v4794_v29  ;;  %3487 = vmatprep.subr.bf16.mxu0 %v3486_v57  ;;  %v1603_v57 = vmul.f32 %v1557_v16, %v1557_v16 }
 0x1d1   : > { %v1578_v58 = vadd.f32 %v3276_v47, %v1425_v59  ;;  %v3277_v33 = vpop.f32.mrb[74].mxu1 }
 0x1d2   : > { %v4809_v15 = vsub.f32 %v1637_v17, %v4802_v63  ;;  %v3278_v44 = vpop.f32.mrb[75].mxu1  ;;  %1736 = vmatmul.mubr.f32.gmra.mrb[18].mxu0 %v1735_v48  ;;  %v1745_v0 = vsub.f32 %v4794_v29, %v1744_v53 }
 0x1d3   : > { %v1606_v2 = vsub.f32 %v1578_v58, %v1602_v52  ;;  %v3279_v42 = vadd.f32 %v3278_v44, %v3277_v33  ;;  %1741 = vmatprep.mubr.f32.mxu0 %v3798_v8 }
 0x1d4   : > { %v1746_v7 = vand.u32 4294901760, %v1745_v0  ;;  %v1755_v50 = vand.u32 4294901760, %v4809_v15 }
 0x1d5   : > { %v1610_v51 = vmax.f32 %v1606_v2, 0.0  ;;  %v1585_v59 = vadd.f32 %v3279_v42, %v4767_v37  ;;  %v3280_v26 = vpop.f32.mrb[76].mxu1 }
 0x1d6   : > { %v3281_v23 = vpop.f32.mrb[77].mxu1  ;;  %1747 = vmatmul.mubr.f32.gmra.mrb[20].mxu0 %v1746_v7  ;;  %v1756_v35 = vsub.f32 %v4809_v15, %v1755_v50 }
 0x1d7   : > { %v1614_v5 = vadd.f32 1e-05, %v1610_v51  ;;  %v1607_v28 = vsub.f32 %v1585_v59, %v1603_v57  ;;  %v3282_v24 = vadd.f32 %v3281_v23, %v3280_v26  ;;  %1752 = vmatprep.mubr.f32.mxu0 %v3798_v8 }
 0x1d8   : > { %v1757_v6 = vand.u32 4294901760, %v1756_v35 }
 0x1d9   : > { %3681 = vrsqrt.f32 %v1614_v5  ;;  %v1611_v4 = vmax.f32 %v1607_v28, 0.0  ;;  %v1592_v16 = vadd.f32 %v3282_v24, %v4769_v36  ;;  %v3283_v43 = vpop.f32.mrb[78].mxu1 }
 0x1da   : > { %v3284_v37 = vpop.f32.mrb[79].mxu1  ;;  %1758 = vmatmul.mubr.f32.gmra.mrb[22].mxu0 %v1757_v6 }
 0x1db   : > { %v1615_v61 = vadd.f32 1e-05, %v1611_v4  ;;  %v1608_v38 = vsub.f32 %v1592_v16, %v1604_v12  ;;  %v3285_v49 = vadd.f32 %v3284_v37, %v3283_v43  ;;  %1763 = vmatprep.mubr.f32.mxu0 %v3798_v8  ;;  %v3635_v43 = vld [vmem:[%s5150_s5 + $0x4] ss:$8 sps:$4 sm:$0xff]   ;;  %v3638_v37 = vld [vmem:[%s5150_s5 + $0x14] ss:$8 sps:$4 sm:$0xff]  }
 0x1dc   : > { %2749 = vmatprep.subr.bf16.mxu1 %v3635_v43 }
 0x1dd   : > { %3683 = vrsqrt.f32 %v1615_v61  ;;  %v1612_v19 = vmax.f32 %v1608_v38, 0.0  ;;  %v1599_v18 = vadd.f32 %v3285_v49, %v4771_v39  ;;  %v3494_v61 = vpack.c.bf16 %v1822_v20, %v1810_v27  ;;  %v3636_v38 = vld [vmem:[%s5150_s5 + $0x10] ss:$8 sps:$4 sm:$0xff]   ;;  %v3641_v49 = vld [vmem:[%s5150_s5 + $0x24] ss:$8 sps:$4 sm:$0xff]  }
 0x1de   : > { %v3642_v27 = vld [vmem:[%s5150_s5 + $0x30] ss:$8 sps:$4 sm:$0xff]   ;;  %v3647_v20 = vld [vmem:[%s5150_s5 + $0x44] ss:$8 sps:$4 sm:$0xff]  }
 0x1df   : > { %v1616_v30 = vadd.f32 1e-05, %v1612_v19  ;;  %v1609_v34 = vsub.f32 %v1599_v18, %v1605_v55  ;;  %v3645_v55 = vld [vmem:[%s5150_s5 + $0x40] ss:$8 sps:$4 sm:$0xff]   ;;  %v3650_v19 = vld [vmem:[%s5150_s5 + $0x54] ss:$8 sps:$4 sm:$0xff]  }
 0x1e0   : > { %v3648_v18 = vld [vmem:[%s5150_s5 + $0x50] ss:$8 sps:$4 sm:$0xff]  }
 0x1e1   : > { %3685 = vrsqrt.f32 %v1616_v30  ;;  %v1613_v32 = vmax.f32 %v1609_v34, 0.0  ;;  %v3653_v30 = vld [vmem:[%s5150_s5 + $0x64] ss:$8 sps:$4 sm:$0xff]   ;;  %v3651_v34 = vld [vmem:[%s5150_s5 + $0x60] ss:$8 sps:$4 sm:$0xff]  }
 0x1e3   : > { %v3682_v10 = vpop.eup %3681  ;;  %v1617_v11 = vadd.f32 1e-05, %v1613_v32  ;;  %v3656_v32 = vld [vmem:[%s5150_s5 + $0x74] ss:$8 sps:$4 sm:$0xff]  }
 0x1e4   : > { %v1640_v36 = vsel %vm1626_vm0, %v3682_v10, 0  ;;  %v3654_v10 = vld [vmem:[%s5150_s5 + $0x70] ss:$8 sps:$4 sm:$0xff]  }
 0x1e5   : > { %3687 = vrsqrt.f32 %v1617_v11  ;;  %v4825_v17 = vand.u32 4294901760, %v1640_v36  ;;  %v3659_v11 = vld [vmem:[%s5150_s5 + $0x84] ss:$8 sps:$4 sm:$0xff]  }
 0x1e7   : > { %v3684_v47 = vpop.eup %3683  ;;  %v4828_v48 = vsub.f32 %v1640_v36, %v4825_v17  ;;  %v3657_v36 = vld [vmem:[%s5150_s5 + $0x80] ss:$8 sps:$4 sm:$0xff]  }
 0x1e8   : > { %v1643_v56 = vsel %vm1626_vm0, %v3684_v47, 0  ;;  %v3496_v47 = vpack.c.bf16 %v1828_v13, %v1816_v22  ;;  %v3666_v22 = vld [vmem:[%s5150_s5 + $0xb0] ss:$8 sps:$4 sm:$0xff]   ;;  %v3671_v13 = vld [vmem:[%s5150_s5 + $0xc4] ss:$8 sps:$4 sm:$0xff]  }
 0x1e9   : > { %v1766_v52 = vand.u32 4294901760, %v4828_v48  ;;  %v4832_v39 = vand.u32 4294901760, %v1643_v56 }
 0x1eb   : > { %v3686_v58 = vpop.eup %3685  ;;  %v1767_v33 = vsub.f32 %v4828_v48, %v1766_v52  ;;  %v4838_v44 = vsub.f32 %v1643_v56, %v4832_v39 }
 0x1ec   : > { %v1646_v0 = vsel %vm1626_vm0, %v3686_v58, 0 }
 0x1ed   : > { %v1768_v2 = vand.u32 4294901760, %v1767_v33  ;;  %v1777_v42 = vand.u32 4294901760, %v4838_v44  ;;  %v4842_v7 = vand.u32 4294901760, %v1646_v0  ;;  %v2501_v33 = vld [vmem:[%s5146_s1] sm:$0x3] }
 0x1ef   : > { %v3688_v57 = vpop.eup %3687  ;;  %1769 = vmatmul.mubr.f32.gmra.mrb[24].mxu0 %v1768_v2  ;;  %v1778_v51 = vsub.f32 %v4838_v44, %v1777_v42  ;;  %v4848_v59 = vsub.f32 %v1646_v0, %v4842_v7  ;;  %v3689_v0 = vld [vmem:[%s3952_s15] sm:$0xff] }
 0x1f0   : > { %1774 = vmatprep.mubr.f32.mxu0 %v3798_v8  ;;  %v1649_v26 = vsel %vm1626_vm0, %v3688_v57, 0 }
 0x1f1   : > { %v1779_v23 = vand.u32 4294901760, %v1778_v51  ;;  %v1788_v35 = vand.u32 4294901760, %v4848_v59  ;;  %v4853_v5 = vand.u32 4294901760, %v1649_v26 }
 0x1f3   : > { %1780 = vmatmul.mubr.f32.gmra.mrb[26].mxu0 %v1779_v23  ;;  %v1789_v28 = vsub.f32 %v4848_v59, %v1788_v35  ;;  %v4859_v24 = vsub.f32 %v1649_v26, %v4853_v5  ;;  %v2521_v23 = vld [vmem:[%s5147_s2] sm:$0x3] }
 0x1f4   : > { %1785 = vmatprep.mubr.f32.mxu0 %v3798_v8 }
 0x1f5   : > { %v1790_v6 = vand.u32 4294901760, %v1789_v28  ;;  %v1799_v12 = vand.u32 4294901760, %v4859_v24  ;;  %v3691_v28 = vld [vmem:[%s3952_s15 + $0x10] sm:$0xff] }
 0x1f7   : > { %1791 = vmatmul.mubr.f32.gmra.mrb[28].mxu0 %v1790_v6  ;;  %v1800_v4 = vsub.f32 %v4859_v24, %v1799_v12  ;;  %v3692_v6 = vld [vmem:[%s3952_s15 + $0x18] sm:$0xff] }
 0x1f8   : > { %1796 = vmatprep.mubr.f32.mxu0 %v3798_v8 }
 0x1f9   : > { %v1801_v16 = vand.u32 4294901760, %v1800_v4 }
 0x1fb   : > { %1802 = vmatmul.mubr.f32.gmra.mrb[30].mxu0 %v1801_v16 }
 0x1fc   : > { %1892 = vmatprep.mubr.f32.mxu0 %v3798_v8 }
 0x1ff   : > { %1894 = vmatmul.mubr.f32.vlgmr.msra.gmra.mrb[16].mxu0 %v4774_v25 }
 0x200   : > { %3489 = vmatpush1.bf16.msra.mxu0 %v3488_v46  ;;  %1899 = vmatprep.mubr.f32.mxu0 %v3798_v8  ;;  %v3633_v46 = vld [vmem:[%s5150_s5] ss:$8 sps:$4 sm:$0xff]  }
 0x201   : > { %3491 = vmatprep.subr.bf16.mxu0 %v4730_v31  ;;  %2750 = vmatpush1.bf16.msra.mxu1 %v3633_v46 }
 0x202   : > { %2751 = vmatprep.subr.bf16.mxu1 %v3638_v37 }
 0x203   : > { %1901 = vmatmul.mubr.f32.gmra.mrb[18].mxu0 %v4781_v60 }
 0x204   : > { %1906 = vmatprep.mubr.f32.mxu0 %v3798_v8 }
 0x205   : > { %2752 = vmatpush1.bf16.msra.mxu1 %v3636_v38 }
 0x206   : > { %2753 = vmatprep.subr.bf16.mxu1 %v3641_v49 }
 0x207   : > { %1908 = vmatmul.mubr.f32.gmra.mrb[20].mxu0 %v4790_v1 }
 0x208   : > { %1913 = vmatprep.mubr.f32.mxu0 %v3798_v8 }
 0x209   : > { %2754 = vmatpush1.bf16.msra.mxu1 %v3639_v9  ;;  %v3693_v9 = vld [vmem:[%s3952_s15 + $0x20] sm:$0xff] }
 0x20a   : > { %2755 = vmatprep.subr.bf16.mxu1 %v3644_v62 }
 0x20b   : > { %1915 = vmatmul.mubr.f32.gmra.mrb[22].mxu0 %v4802_v63 }
 0x20c   : > { %1920 = vmatprep.mubr.f32.mxu0 %v3798_v8 }
 0x20d   : > { %2756 = vmatpush1.bf16.msra.mxu1 %v3642_v27 }
 0x20e   : > { %2757 = vmatprep.subr.bf16.mxu1 %v3647_v20  ;;  %v3694_v20 = vld [vmem:[%s3952_s15 + $0x28] sm:$0xff] }
 0x20f   : > { %1922 = vmatmul.mubr.f32.gmra.mrb[24].mxu0 %v4825_v17 }
 0x210   : > { %1927 = vmatprep.mubr.f32.mxu0 %v3798_v8 }
 0x211   : > { %2758 = vmatpush1.bf16.msra.mxu1 %v3645_v55 }
 0x212   : > { %2759 = vmatprep.subr.bf16.mxu1 %v3650_v19 }
 0x213   : > { %1929 = vmatmul.mubr.f32.gmra.mrb[26].mxu0 %v4832_v39 }
 0x214   : > { %1934 = vmatprep.mubr.f32.mxu0 %v3798_v8 }
 0x215   : > { %2760 = vmatpush1.bf16.msra.mxu1 %v3648_v18 }
 0x216   : > { %2761 = vmatprep.subr.bf16.mxu1 %v3653_v30 }
 0x217   : > { %1936 = vmatmul.mubr.f32.gmra.mrb[28].mxu0 %v4842_v7 }
 0x218   : > { %1941 = vmatprep.mubr.f32.mxu0 %v3798_v8 }
 0x219   : > { %2762 = vmatpush1.bf16.msra.mxu1 %v3651_v34 }
 0x21a   : > { %2763 = vmatprep.subr.bf16.mxu1 %v3656_v32 }
 0x21b   : > { %1943 = vmatmul.mubr.f32.gmra.mrb[30].mxu0 %v4853_v5 }
 0x21c   : > { %2021 = vmatprep.mubr.f32.mxu0 %v3798_v8 }
 0x21d   : > { %2764 = vmatpush1.bf16.msra.mxu1 %v3654_v10 }
 0x21e   : > { %2765 = vmatprep.subr.bf16.mxu1 %v3659_v11 }
 0x21f   : > { %2024 = vmatmul.mubr.f32.vlgmr.msra.gmra.mrb[16].mxu0 %v4777_v21  ;;  %v3674_v21 = vld [vmem:[%s5150_s5 + $0xd4] ss:$8 sps:$4 sm:$0xff]  }
 0x220   : > { %3493 = vmatpush1.bf16.msra.mxu0 %v4732_v45  ;;  %2029 = vmatprep.mubr.f32.mxu0 %v3798_v8 }
 0x221   : > { %3495 = vmatprep.subr.bf16.mxu0 %v3494_v61  ;;  %2766 = vmatpush1.bf16.msra.mxu1 %v3657_v36 }
 0x223   : > { %2032 = vmatmul.mubr.f32.gmra.mrb[18].mxu0 %v4787_v54  ;;  %v3675_v54 = vld [vmem:[%s5150_s5 + $0xe0] ss:$8 sps:$4 sm:$0xff]  }
 0x224   : > { %2037 = vmatprep.mubr.f32.mxu0 %v3798_v8 }
 0x227   : > { %2040 = vmatmul.mubr.f32.gmra.mrb[20].mxu0 %v4794_v29 }
 0x228   : > { %2045 = vmatprep.mubr.f32.mxu0 %v3798_v8 }
 0x22b   : > { %2048 = vmatmul.mubr.f32.gmra.mrb[22].mxu0 %v4809_v15 }
 0x22c   : > { %2053 = vmatprep.mubr.f32.mxu0 %v3798_v8 }
 0x22f   : > { %2056 = vmatmul.mubr.f32.gmra.mrb[24].mxu0 %v4828_v48 }
 0x230   : > { %2061 = vmatprep.mubr.f32.mxu0 %v3798_v8 }
 0x233   : > { %2064 = vmatmul.mubr.f32.gmra.mrb[26].mxu0 %v4838_v44 }
 0x234   : > { %2069 = vmatprep.mubr.f32.mxu0 %v3798_v8 }
 0x237   : > { %2072 = vmatmul.mubr.f32.gmra.mrb[28].mxu0 %v4848_v59 }
 0x238   : > { %2077 = vmatprep.mubr.f32.mxu0 %v3798_v8 }
 0x23b   : > { %2080 = vmatmul.mubr.f32.gmra.mrb[30].mxu0 %v4859_v24 }
 0x23c   : > { %2154 = vmatprep.mubr.f32.mxu0 %v3798_v8 }
 0x23f   : > { %2158 = vmatmul.mubr.f32.vlgmr.msra.gmra.mrb[16].mxu0 %v1722_v14  ;;  %v3672_v14 = vld [vmem:[%s5150_s5 + $0xd0] ss:$8 sps:$4 sm:$0xff]  }
 0x240   : > { %3497 = vmatpush1.bf16.msra.mxu0 %v3496_v47  ;;  %2163 = vmatprep.mubr.f32.mxu0 %v3798_v8 }
 0x241   : > { %3499 = vmatprep.subr.bf16.mxu0 %v4730_v31  ;;  %v3662_v31 = vld [vmem:[%s5150_s5 + $0x94] ss:$8 sps:$4 sm:$0xff]  }
 0x242   : > { %2767 = vmatprep.subr.bf16.mxu1 %v3662_v31  ;;  %v3695_v31 = vld [vmem:[%s3952_s15 + $0x30] sm:$0xff] }
 0x243   : > { %2167 = vmatmul.mubr.f32.gmra.mrb[18].mxu0 %v1733_v3  ;;  %v3678_v3 = vld [vmem:[%s5150_s5 + $0xf0] ss:$8 sps:$4 sm:$0xff]  }
 0x244   : > { %2172 = vmatprep.mubr.f32.mxu0 %v3798_v8 }
 0x247   : > { %2176 = vmatmul.mubr.f32.gmra.mrb[20].mxu0 %v1744_v53 }
 0x248   : > { %2181 = vmatprep.mubr.f32.mxu0 %v3798_v8 }
 0x24b   : > { %2185 = vmatmul.mubr.f32.gmra.mrb[22].mxu0 %v1755_v50  ;;  %v2503_v50 = vlaneseq }
 0x24c   : > { %2190 = vmatprep.mubr.f32.mxu0 %v3798_v8 }
 0x24d   : > { %v2504_v56 = vshrl.u32 %v2503_v50, 7 }
 0x24f   : > { %2194 = vmatmul.mubr.f32.gmra.mrb[24].mxu0 %v1766_v52  ;;  %v5066_v58 = vsub.s32 0, %v2504_v56  ;;  %v5071_v44 = vsub.s32 1, %v2504_v56 }
 0x250   : > { %2199 = vmatprep.mubr.f32.mxu0 %v3798_v8 }
 0x251   : > { %v2506_v59 = vrot.slane %v2501_v33, %v5066_v58  ;;  %v2526_v46 = vrot.slane %v2521_v23, %v5066_v58  ;;  %v2530_v38 = vrot.slane %v2521_v23, %v5071_v44 }
 0x253   : > { %2203 = vmatmul.mubr.f32.gmra.mrb[26].mxu0 %v1777_v42  ;;  %v3690_v42 = vld [vmem:[%s3952_s15 + $0x8] sm:$0xff] }
 0x254   : > { %2208 = vmatprep.mubr.f32.mxu0 %v3798_v8 }
 0x257   : > { %2212 = vmatmul.mubr.f32.gmra.mrb[28].mxu0 %v1788_v35 }
 0x258   : > { %2217 = vmatprep.mubr.f32.mxu0 %v3798_v8 }
 0x25b   : > { %2221 = vmatmul.mubr.f32.gmra.mrb[30].mxu0 %v1799_v12 }
 0x25c   : > { %2303 = vmatprep.mubr.f32.mxu0 %v3798_v8 }
 0x25f   : > { %2305 = vmatmul.mubr.f32.vlgmr.msra.gmra.mrb[16].mxu0 %v4774_v25 }
 0x260   : > { %3501 = vmatpush1.bf16.msra.mxu0 %v4732_v45  ;;  %2310 = vmatprep.mubr.f32.mxu0 %v3798_v8  ;;  %v3660_v45 = vld [vmem:[%s5150_s5 + $0x90] ss:$8 sps:$4 sm:$0xff]  }
 0x261   : > { %2768 = vmatpush1.bf16.msra.mxu1 %v3660_v45 }
 0x262   : > { %2769 = vmatprep.subr.bf16.mxu1 %v3665_v40 }
 0x263   : > { %2312 = vmatmul.mubr.f32.gmra.mrb[18].mxu0 %v4781_v60 }
 0x264   : > { %2317 = vmatprep.mubr.f32.mxu0 %v3798_v8 }
 0x265   : > { %2770 = vmatpush1.bf16.msra.mxu1 %v3663_v41  ;;  %v3696_v41 = vld [vmem:[%s3952_s15 + $0x38] sm:$0xff] }
 0x267   : > { %2319 = vmatmul.mubr.f32.gmra.mrb[20].mxu0 %v4790_v1 }
 0x268   : > { %2324 = vmatprep.mubr.f32.mxu0 %v3798_v8 }
 0x26b   : > { %2326 = vmatmul.mubr.f32.gmra.mrb[22].mxu0 %v4802_v63 }
 0x26c   : > { %2331 = vmatprep.mubr.f32.mxu0 %v3798_v8 }
 0x26f   : > { %2333 = vmatmul.mubr.f32.gmra.mrb[24].mxu0 %v4825_v17 }
 0x270   : > { %2338 = vmatprep.mubr.f32.mxu0 %v3798_v8 }
 0x273   : > { %2340 = vmatmul.mubr.f32.gmra.mrb[26].mxu0 %v4832_v39 }
 0x274   : > { %2345 = vmatprep.mubr.f32.mxu0 %v3798_v8 }
 0x277   : > { %2347 = vmatmul.mubr.f32.gmra.mrb[28].mxu0 %v4842_v7 }
 0x278   : > { %2352 = vmatprep.mubr.f32.mxu0 %v3798_v8 }
 0x27b   : > { %2354 = vmatmul.mubr.f32.gmra.mrb[30].mxu0 %v4853_v5 }
 0x27c   : > { %2428 = vmatprep.mubr.f32.mxu0 %v3798_v8 }
 0x27f   : > { %2430 = vmatmul.mubr.f32.vlgmr.msra.gmra.mrb[16].mxu0 %v4774_v25  ;;  %v3669_v25 = vld [vmem:[%s5150_s5 + $0xc0] ss:$8 sps:$4 sm:$0xff]  }
 0x280   : > { %2435 = vmatprep.mubr.f32.mxu0 %v3798_v8 }
 0x283   : > { %2437 = vmatmul.mubr.f32.gmra.mrb[18].mxu0 %v4781_v60  ;;  %v3677_v60 = vld [vmem:[%s5150_s5 + $0xe4] ss:$8 sps:$4 sm:$0xff]  }
 0x284   : > { %2442 = vmatprep.mubr.f32.mxu0 %v3798_v8 }
 0x287   : > { %2444 = vmatmul.mubr.f32.gmra.mrb[20].mxu0 %v4790_v1  ;;  %v3680_v1 = vld [vmem:[%s5150_s5 + $0xf4] ss:$8 sps:$4 sm:$0xff]  }
 0x288   : > { %2449 = vmatprep.mubr.f32.mxu0 %v3798_v8 }
 0x28b   : > { %2451 = vmatmul.mubr.f32.gmra.mrb[22].mxu0 %v4802_v63 }
 0x28c   : > { %2456 = vmatprep.mubr.f32.mxu0 %v3798_v8 }
 0x28f   : > { %2458 = vmatmul.mubr.f32.gmra.mrb[24].mxu0 %v4825_v17 }
 0x290   : > { %2463 = vmatprep.mubr.f32.mxu0 %v3798_v8 }
 0x293   : > { %2465 = vmatmul.mubr.f32.gmra.mrb[26].mxu0 %v4832_v39 }
 0x294   : > { %2470 = vmatprep.mubr.f32.mxu0 %v3798_v8 }
 0x297   : > { %2472 = vmatmul.mubr.f32.gmra.mrb[28].mxu0 %v4842_v7 }
 0x298   : > { %2477 = vmatprep.mubr.f32.mxu0 %v3798_v8  ;;  %v3668_v8 = vld [vmem:[%s5150_s5 + $0xb4] ss:$8 sps:$4 sm:$0xff]  }
 0x299   : > { %2771 = vmatprep.subr.bf16.mxu1 %v3668_v8 }
 0x29a   : > { %2772 = vmatpush1.bf16.msra.mxu1 %v3666_v22 }
 0x29b   : > { %2479 = vmatmul.mubr.f32.gmra.mrb[30].mxu0 %v4853_v5  ;;  %2773 = vmatprep.subr.bf16.mxu1 %v3671_v13  ;;  %v2510_v5 = vrot.slane %v2501_v33, %v5071_v44 }
 0x29e   : > { %2774 = vmatpush1.bf16.msra.mxu1 %v3669_v25 }
 0x29f   : > { %2775 = vmatprep.subr.bf16.mxu1 %v3674_v21 }
 0x2a2   : > { %2776 = vmatpush1.bf16.msra.mxu1 %v3672_v14 }
 0x2a3   : > { %2777 = vmatprep.subr.bf16.mxu1 %v3677_v60 }
 0x2a6   : > { %2778 = vmatpush1.bf16.msra.mxu1 %v3675_v54 }
 0x2a7   : > { %2779 = vmatprep.subr.bf16.mxu1 %v3680_v1 }
 0x2aa   : > { %2780 = vmatpush1.bf16.msra.mxu1 %v3678_v3 }
 0x352   : > { %v2431_v29 = vpop.f32.mrb[16].mxu0 }
 0x353   : > { %v2433_v63 = vpop.f32.mrb[17].mxu0  ;;  %v2485_v2 = vsub.f32 %v3689_v0, %v2431_v29 }
 0x354   : > { %v2486_v7 = vsub.f32 %v3690_v42, %v2433_v63 }
 0x356   : > { %v2438_v53 = vpop.f32.mrb[18].mxu0 }
 0x357   : > { %v2440_v15 = vpop.f32.mrb[19].mxu0  ;;  %v2487_v24 = vsub.f32 %v3691_v28, %v2438_v53 }
 0x358   : > { %v2488_v12 = vsub.f32 %v3692_v6, %v2440_v15 }
 0x35a   : > { %v2445_v17 = vpop.f32.mrb[20].mxu0 }
 0x35b   : > { %v2447_v48 = vpop.f32.mrb[21].mxu0  ;;  %v2489_v62 = vsub.f32 %v3693_v9, %v2445_v17 }
 0x35c   : > { %v2490_v55 = vsub.f32 %v3694_v20, %v2447_v48  ;;  %v2577_v48 = vld [vmem:[%s5151_s6] sm:$0x3] }
 0x35d   : > { %v2582_v56 = vrot.slane %v2577_v48, %v5066_v58 }
 0x35e   : > { %v2452_v52 = vpop.f32.mrb[22].mxu0 }
 0x35f   : > { %v2454_v39 = vpop.f32.mrb[23].mxu0  ;;  %v2491_v45 = vsub.f32 %v3695_v31, %v2452_v52  ;;  %v2586_v52 = vrot.slane %v2577_v48, %v5071_v44 }
 0x360   : > { %v2492_v8 = vsub.f32 %v3696_v41, %v2454_v39 }
 0x362   : > { %v2459_v57 = vpop.f32.mrb[24].mxu0 }
 0x363   : > { %v2493_v51 = vmul.f32 %v2485_v2, %v2459_v57  ;;  %v2461_v26 = vpop.f32.mrb[25].mxu0 }
 0x364   : > { %v2494_v35 = vmul.f32 %v2486_v7, %v2461_v26 }
 0x365   : > { %v2513_v16 = vmul.f32 %v2506_v59, %v2493_v51 }
 0x366   : > { %v2466_v4 = vpop.f32.mrb[26].mxu0  ;;  %v2514_v61 = vmul.f32 %v2510_v5, %v2494_v35 }
 0x367   : > { %v2495_v43 = vmul.f32 %v2487_v24, %v2466_v4  ;;  %v2468_v37 = vpop.f32.mrb[27].mxu0  ;;  %v2533_v30 = vadd.f32 %v2526_v46, %v2513_v16 }
 0x368   : > { %v2496_v49 = vmul.f32 %v2488_v12, %v2468_v37  ;;  %v2534_v11 = vadd.f32 %v2530_v38, %v2514_v61 }
 0x369   : > { %v2515_v27 = vmul.f32 %v2506_v59, %v2495_v43 }
 0x36a   : > { %v2516_v19 = vmul.f32 %v2510_v5, %v2496_v49  ;;  %v2473_v18 = vpop.f32.mrb[28].mxu0 }
 0x36b   : > { %v2535_v34 = vadd.f32 %v2526_v46, %v2515_v27  ;;  %v2497_v32 = vmul.f32 %v2489_v62, %v2473_v18  ;;  %v2475_v10 = vpop.f32.mrb[29].mxu0 }
 0x36c   : > { %v2536_v36 = vadd.f32 %v2530_v38, %v2516_v19  ;;  %v2498_v47 = vmul.f32 %v2490_v55, %v2475_v10 }
 0x36d   : > { %v2541_v40 = vpack.c.bf16 %v2535_v34, %v2533_v30  ;;  %v2517_v25 = vmul.f32 %v2506_v59, %v2497_v32 }
 0x36e   : > { %v2480_v22 = vpop.f32.mrb[30].mxu0  ;;  %v2542_v13 = vpack.c.bf16 %v2536_v36, %v2534_v11  ;;  %v2518_v60 = vmul.f32 %v2510_v5, %v2498_v47 }
 0x36f   : > { %v2499_v21 = vmul.f32 %v2491_v45, %v2480_v22  ;;  %v2482_v14 = vpop.f32.mrb[31].mxu0  ;;  %v2537_v29 = vadd.f32 %v2526_v46, %v2517_v25 }
 0x370   : > { %v2500_v54 = vmul.f32 %v2492_v8, %v2482_v14  ;;  %2781 = vmatprep.mubr.bf16.mxu1 %v2542_v13  ;;  %v2538_v53 = vadd.f32 %v2530_v38, %v2518_v60 }
 0x371   : > { %v2519_v1 = vmul.f32 %v2506_v59, %v2499_v21  ;;  %2782 = vmatmul.mubr.bf16.vlgmr.msra.gmra.mrb[80].mxu1 %v2541_v40 }
 0x372   : > { %v2520_v3 = vmul.f32 %v2510_v5, %v2500_v54 }
 0x373   : > { %v2539_v63 = vadd.f32 %v2526_v46, %v2519_v1 }
 0x374   : > { %v2540_v15 = vadd.f32 %v2530_v38, %v2520_v3 }
 0x375   : > { %v2543_v50 = vpack.c.bf16 %v2539_v63, %v2537_v29 }
 0x376   : > { %v2544_v17 = vpack.c.bf16 %v2540_v15, %v2538_v53 }
 0x378   : > { %2791 = vmatprep.mubr.bf16.mxu1 %v2544_v17 }
 0x379   : > { %2792 = vmatmul.mubr.bf16.gmra.mrb[84].mxu1 %v2543_v50 }
 0x444   : > { %v2783_v39 = vpop.f32.mrb[80].mxu1 }
 0x445   : > { %v2784_v33 = vadd.f32 %v2783_v39, %v2582_v56  ;;  %v2785_v0 = vpop.f32.mrb[81].mxu1 }
 0x446   : > { %v2786_v2 = vadd.f32 %v2785_v0, %v2586_v52  ;;  %v2787_v42 = vpop.f32.mrb[82].mxu1 }
 0x447   : > { %2802 = vst [vmem:[%s297_s11] sm:$0xff] %v2784_v33  ;;  %v2788_v7 = vadd.f32 %v2787_v42, %v2582_v56  ;;  %v2789_v57 = vpop.f32.mrb[83].mxu1 }
 0x448   : > { %2803 = vst [vmem:[%s297_s11 + $0x8] sm:$0xff] %v2786_v2  ;;  %v2790_v51 = vadd.f32 %v2789_v57, %v2586_v52 }
 0x449   : > { %2804 = vst [vmem:[%s297_s11 + $0x10] sm:$0xff] %v2788_v7 }
 0x44a   : > { %2805 = vst [vmem:[%s297_s11 + $0x18] sm:$0xff] %v2790_v51 }
 0x44c   : > { %v2793_v58 = vpop.f32.mrb[84].mxu1 }
 0x44d   : > { %v2794_v44 = vadd.f32 %v2793_v58, %v2582_v56  ;;  %v2795_v59 = vpop.f32.mrb[85].mxu1 }
 0x44e   : > { %v2796_v26 = vadd.f32 %v2795_v59, %v2586_v52  ;;  %v2797_v23 = vpop.f32.mrb[86].mxu1 }
 0x44f   : > { %2806 = vst [vmem:[%s297_s11 + $0x20] sm:$0xff] %v2794_v44  ;;  %v2798_v35 = vadd.f32 %v2797_v23, %v2582_v56  ;;  %v2799_v5 = vpop.f32.mrb[87].mxu1 }
 0x450   : > { %2807 = vst [vmem:[%s297_s11 + $0x28] sm:$0xff] %v2796_v26  ;;  %v2800_v28 = vadd.f32 %v2799_v5, %v2586_v52 }
 0x451   : > { %2808 = vst [vmem:[%s297_s11 + $0x30] sm:$0xff] %v2798_v35 }
 0x452   : > { %2809 = vst [vmem:[%s297_s11 + $0x38] sm:$0xff] %v2800_v28 }
 0x453   : > { %3740 = shalt.err (!%p3737_p2)
}
 0x454   : > { %s3741_s8 = scalar_lea.hbm %s5101_s23, 1024  ;;  %s3745_s11 = scalar_lea.hbm %s5152_s7, 2048 }
 0x455   : > { %p3742_p4 = scmp.ne.s32.totalorder %s5101_s23, %s3741_s8  ;;  %p3746_p9 = scmp.lt.u32.totalorder %s5101_s23, %s5152_s7 }
 0x456   : > { %p3747_p1 = scmp.lt.u32.totalorder %s3745_s11, %s3741_s8  ;;  %p3749_p6 = scmp.lt.u32.totalorder %s3741_s8, %s5101_s23 }
 0x457   : > { %p3743_p5 = pnand %p3742_p4, %p5385_p11 }
 0x458   : > { %p3748_p3 = por %p3747_p1, %p3746_p9 }
 0x459   : > { %p3744_p7 = pneg %p3743_p5 }
 0x45a   : > { %p3750_p12 = por %p3749_p6, %p3748_p3 }
 0x45c   : > { %p3751_p13 = pnand %p3750_p12, %p3744_p7 }
 0x45e   : > { %3754 = shalt.err (!%p3751_p13)
}
 0x45f   : > { %s3800_s22 = smov 256   ;;  %s3801_s29 = smov 16  }
 0x460   : > { %3584 = dma.vmem_to_hbm [thread:$0]  (%p5385_p11), %s5096_s18, 1024, %s5101_s23, %s2811_s28, %s3800_s22, %s3800_s22, %s3801_s29  }
 0x461 PF: > { %s2840_s19 = sand.u32 1, %s3781_s24   ;;  %p5386_p8 = scmp.ne.s32.totalorder %s5265_s14, 0 }
 0x462   : > { %p5387_p10 = scmp.ge.s32.totalorder %s3793_s27, 2  ;;  %s2841_s21 = scalar_lea.sflag [#allocation4], %s2840_s19 }
 0x464   : > { %p3591_p0 = pnand %p5387_p10, %p5386_p8 }
 0x466   : > { %3776 = dma.done.wait (!%p3591_p0), %s2841_s21, 1024  }
 0x467   : > { %3778 = vsyncadd (!%p3591_p0), %s2841_s21, 4294966272  ;;  %p20_p2 = scmp.ge.s32.totalorder %s3867_s30, 4   ;;  %s5388_s24 = smov %s3785_s25 }
 0x468   : > { %s5389_s25 = smov %s3789_s26  ;;  %s5390_s26 = smov %s3879_s10 }
 0x469   : > { %s5391_s27 = smov %s3867_s30  ;;  %22 = sbr.rel (!%p20_p2) target bundleno = 5 (0x5), region = 93 }
 0x470   :  { %2846 = vsyncpa [#allocation3], 1 }
 0x471   :  { %2848 = vsyncpa [#allocation3 + $0x1], 1 }
 0x472   :  { %2849 = vsyncpa [#allocation4], 1 }
 0x473   :  { %2851 = vsyncpa [#allocation4 + $0x1], 1 }

// kernel: tpu_custom_call.1
= control target key start
LH: loop header
LB: loop body
LE: loop exit
PB: predicated region body
PF: predicated region fallthrough
CT: control target
= control target key end

     0   :  { %12 = vsyncpa [#allocation3], 0  ;;  %s5145_s0 = inlined_call_operand.hbm [shape: f32[64,256], index: 0, kind: input, shape index: {}]   ;;  %s5146_s1 = inlined_call_operand.vmem [shape: f32[1,256], index: 1, kind: input, shape index: {}]   ;;  %s5147_s2 = inlined_call_operand.vmem [shape: f32[1,256], index: 2, kind: input, shape index: {}]   ;;  %s5148_s3 = inlined_call_operand.vmem [shape: f32[256,16], index: 3, kind: input, shape index: {}]   ;;  %s5149_s4 = inlined_call_operand.vmem [shape: f32[16,256], index: 4, kind: input, shape index: {}]   ;;  %s5150_s5 = inlined_call_operand.vmem [shape: bf16[256,256], index: 5, kind: input, shape index: {}]   ;;  %s5151_s6 = inlined_call_operand.vmem [shape: f32[1,256], index: 6, kind: input, shape index: {}]   ;;  %s5152_s7 = inlined_call_operand.hbm [shape: f32[64,256], index: 7, kind: output, shape index: {}]  }
   0x1   :  { %14 = vsyncpa [#allocation3 + $0x1], 0 }
   0x2   :  { %15 = vsyncpa [#allocation4], 0 }
   0x3   :  { %17 = vsyncpa [#allocation4 + $0x1], 0  ;;  %s3842_s24 = smov 0   ;;  %s3844_s25 = smov 0  }
   0x4   :  { %s3846_s26 = smov 0   ;;  %s3848_s27 = smov 0  }
   0x5 LB: > { %s3863_s28 = sadd.s32 4294967295, %s3793_s27   ;;  %s2898_s29 = sadd.s32 4294967294, %s3793_s27   ;;  %s3793_s27 = sphi %s3848_s27, %s5391_s27   ;;  %s3789_s26 = sphi %s3846_s26, %s5390_s26   ;;  %s3785_s25 = sphi %s3844_s25, %s5389_s25   ;;  %s3781_s24 = sphi %s3842_s24, %s5388_s24  }
   0x6   : > { %s3867_s30 = sadd.s32 1, %s3793_s27   ;;  %s30_s8 = sadd.s32 1, %s3789_s26 }
   0x7   : > { %s27_s9 = ssub.s32 %s3793_s27, %s3867_s30  ;;  %p37_p0 = scmp.ne.s32.totalorder %s3789_s26, %s3785_s25 }
   0x8   : > { %p28_p1 = scmp.eq.s32.totalorder %s27_s9, 0  ;;  %p38_p2 = scmp.eq.s32.totalorder %s3793_s27, 0 }
   0x9   : > { %p43_p3 = scmp.ne.s32.totalorder %s3785_s25, %s3781_s24  ;;  %p44_p4 = scmp.eq.s32.totalorder %s3863_s28, 0 }
   0xa   : > { %s3879_s10 = scalar_select %p28_p1, %s3789_s26, %s30_s8  }
   0xb   : > { %p3881_p5 = por %p38_p2, %p37_p0  ;;  %p3885_p6 = por %p44_p4, %p43_p3 }
   0xc   : > { %p193_p7 = scmp.eq.s32.totalorder %s3863_s28, 1  ;;  %p199_p8 = scmp.eq.s32.totalorder %s2898_s29, 1 }
   0xd   : > { %p3594_p10 = scmp.lt.s32.totalorder %s3793_s27, 2  ;;  %s237_s15 = sand.u32 1, %s3789_s26  }
   0xe   : > { %p3892_p11 = por %p193_p7, %p37_p0  ;;  %p3896_p12 = por %p199_p8, %p43_p3 }
   0xf   : > { %s2947_s16 = sshll.u32 %s3793_s27, 10  ;;  %s2901_s17 = sshll.u32 %s237_s15, 6 }
  0x10   : > { %s5264_s13 = scalar_select %p3892_p11, 1, 0 }
  0x11   : > { %s5265_s14 = scalar_select %p3896_p12, 1, 0 }
  0x12   : > { %s3905_s20 = scalar_lea.hbm %s5145_s0, %s2947_s16  ;;  %s241_s21 = scalar_lea.vmem [#allocation2], %s2901_s17 }
  0x13   : > { %s249_s22 = sshll.u32 %s241_s21, 4  ;;  %p3909_p13 = pnand %p3594_p10, %p3881_p5  ;;  %s3913_s22 = int_to_ptr.vmem [resolvable:$true] %s249_s22 }
  0x14   : > { %s3915_s29 = scalar_lea.sflag [#allocation3], %s237_s15  ;;  %s3697_s8 = scalar_lea.hbm %s3905_s20, 1024 }
  0x15   : > { %p3698_p0 = scmp.ne.s32.totalorder %s3905_s20, %s3697_s8  ;;  %p3699_p1 = pneg %p3909_p13 }
  0x16   : > { %s3702_s16 = scalar_lea.hbm %s5145_s0, 2048  ;;  %p3703_p4 = scmp.lt.u32.totalorder %s3905_s20, %s5145_s0 }
  0x17   : > { %p3700_p2 = pnand %p3699_p1, %p3698_p0  ;;  %p3704_p5 = scmp.lt.u32.totalorder %s3702_s16, %s3697_s8 }
  0x18   : > { %p3706_p8 = scmp.lt.u32.totalorder %s3697_s8, %s3905_s20 }
  0x19   : > { %p3701_p3 = pneg %p3700_p2  ;;  %p3705_p7 = por %p3704_p5, %p3703_p4 }
  0x1b   : > { %p3707_p10 = por %p3706_p8, %p3705_p7 }
  0x1d   : > { %p3708_p9 = pnand %p3707_p10, %p3701_p3 }
  0x1f   : > { %3711 = shalt.err (!%p3708_p9)
}
  0x20   : > { %s3712_s15 = scalar_lea.vmem %s3913_s22, 1024  ;;  %s3795_s19 = smov [#allocation2]  }
  0x21   : > { %p3713_p0 = scmp.ne.s32.totalorder %s3913_s22, %s3712_s15  ;;  %s3717_s21 = sshll.u32 %s3795_s19, 4  ;;  %s3718_s21 = int_to_ptr.vmem [resolvable:$false] %s3717_s21 }
  0x22   : > { %s3719_s9 = scalar_lea.vmem %s3718_s21, 2048  ;;  %p3720_p11 = scmp.lt.s32.totalorder %s3913_s22, %s3718_s21 }
  0x23   : > { %p3715_p2 = pnand %p3713_p0, %p3699_p1  ;;  %p3721_p4 = scmp.lt.s32.totalorder %s3719_s9, %s3712_s15 }
  0x25   : > { %p3716_p12 = pneg %p3715_p2  ;;  %p3722_p5 = por %p3721_p4, %p3720_p11 }
  0x27   : > { %p3723_p7 = pnand %p3722_p5, %p3716_p12 }
  0x29   : > { %3726 = shalt.err (!%p3723_p7)
}
  0x2a   : > { %s3796_s8 = smov 256   ;;  %s3797_s11 = smov 16  }
  0x2b   : > { %3589 = dma.hbm_to_vmem [thread:$0]  (!%p3909_p13), %s3905_s20, 1024, %s3913_s22, %s3915_s29, %s3796_s8, %s3796_s8, %s3797_s11  }
  0x2c   : > { %p2905_p9 = scmp.ge.s32.totalorder %s3793_s27, 1  ;;  %p257_p1 = scmp.lt.s32.totalorder %s3793_s27, 3 }
  0x2e   : > { %p258_p3 = pnand %p2905_p9, %p257_p1 }
  0x30   : > { %261 = sbr.rel (%p258_p3) target bundleno = 1121 (0x461), region = 48 }
  0x37   : > { %s3946_s16 = sand.u32 1, %s3785_s25  }
  0x38   : > { %s2906_s17 = sshll.u32 %s3946_s16, 6  ;;  %s264_s18 = scalar_lea.sflag [#allocation3], %s3946_s16 }
  0x39   : > { %s3952_s15 = scalar_lea.vmem [#allocation2], %s2906_s17 }
  0x3a   : > { %3772 = dma.done.wait (%p3885_p6), %s264_s18, 1024  }
  0x3b   : > { %3774 = vsyncadd (%p3885_p6), %s264_s18, 4294966272  ;;  %v332_v0 = vld [vmem:[%s5148_s3 + $0x80] sm:$0xff]  ;;  %v333_v1 = vld [vmem:[%s5148_s3 + $0x88] sm:$0xff]  ;;  %vm1626_vm0 = vcmask 130048   ;;  %s297_s11 = scalar_lea.vmem [#allocation5], %s2906_s17  ;;  %s2949_s20 = sshll.u32 %s3863_s28, 10 }
  0x3c   : > { %v316_v2 = vld [vmem:[%s5148_s3] sm:$0xff]  ;;  %v397_v3 = vand.u32 4294901760, %v332_v0  ;;  %v400_v4 = vand.u32 4294901760, %v333_v1  ;;  %v317_v5 = vld [vmem:[%s5148_s3 + $0x8] sm:$0xff]  ;;  %v334_v7 = vld [vmem:[%s5148_s3 + $0x90] sm:$0xff]  ;;  %s2825_s18 = sshll.u32 %s297_s11, 4  ;;  %s5101_s23 = scalar_lea.hbm %s5152_s7, %s2949_s20  ;;  %s5096_s18 = int_to_ptr.vmem [resolvable:$true] %s2825_s18 }
  0x3d   : > { %v349_v6 = vand.u32 4294901760, %v316_v2  ;;  %v335_v8 = vld [vmem:[%s5148_s3 + $0x98] sm:$0xff]  ;;  %v352_v9 = vand.u32 4294901760, %v317_v5  ;;  %v403_v10 = vand.u32 4294901760, %v334_v7  ;;  %v318_v12 = vld [vmem:[%s5148_s3 + $0x10] sm:$0xff]  ;;  %v336_v14 = vld [vmem:[%s5148_s3 + $0xa0] sm:$0xff] }
  0x3e   : > { %v406_v11 = vand.u32 4294901760, %v335_v8  ;;  %v319_v13 = vld [vmem:[%s5148_s3 + $0x18] sm:$0xff]  ;;  %v3985_v15 = vpack.c.bf16 %v400_v4, %v397_v3  ;;  %v3987_v16 = vsub.f32 %v332_v0, %v397_v3  ;;  %v3989_v17 = vsub.f32 %v333_v1, %v400_v4  ;;  %v337_v19 = vld [vmem:[%s5148_s3 + $0xa8] sm:$0xff]  ;;  %v320_v20 = vld [vmem:[%s5148_s3 + $0x20] sm:$0xff]  ;;  %s2811_s28 = scalar_lea.sflag [#allocation4], %s3946_s16  ;;  %s3727_s29 = scalar_lea.vmem %s5096_s18, 1024 }
  0x3f   : > { %v3991_v18 = vsub.f32 %v316_v2, %v349_v6  ;;  %v321_v21 = vld [vmem:[%s5148_s3 + $0x28] sm:$0xff]  ;;  %v4002_v22 = vpack.c.bf16 %v352_v9, %v349_v6  ;;  %v4004_v23 = vsub.f32 %v317_v5, %v352_v9  ;;  %v4008_v25 = vsub.f32 %v334_v7, %v403_v10  ;;  %v338_v26 = vld [vmem:[%s5148_s3 + $0xb0] sm:$0xff]  ;;  %v339_v31 = vld [vmem:[%s5148_s3 + $0xb8] sm:$0xff]  ;;  %p3728_p6 = scmp.ne.s32.totalorder %s5096_s18, %s3727_s29  ;;  %p5385_p11 = scmp.ne.s32.totalorder %s5264_s13, 0 }
  0x40   : > { %5267 = vst [vmem:[#allocation8_spill] sm:$0xff] %v3985_v15  ;;  %v4006_v24 = vpack.c.bf16 %v406_v11, %v403_v10  ;;  %3287 = vmatprep.subr.bf16.mxu1 %v3985_v15  ;;  %v4014_v27 = vsub.f32 %v335_v8, %v406_v11  ;;  %v355_v28 = vand.u32 4294901760, %v318_v12  ;;  %v358_v29 = vand.u32 4294901760, %v319_v13  ;;  %v322_v36 = vld [vmem:[%s5148_s3 + $0x30] sm:$0xff]  ;;  %v323_v37 = vld [vmem:[%s5148_s3 + $0x38] sm:$0xff]  ;;  %v340_v42 = vld [vmem:[%s5148_s3 + $0xc0] sm:$0xff] }
  0x41   : > { %5268 = vst [vmem:[#allocation9_spill] sm:$0xff] %v4002_v22  ;;  %v409_v30 = vand.u32 4294901760, %v336_v14  ;;  %3289 = vmatpush3.bf16.msra.mxu1 %v4002_v22  ;;  %v412_v32 = vand.u32 4294901760, %v337_v19  ;;  %v361_v33 = vand.u32 4294901760, %v320_v20  ;;  %v364_v34 = vand.u32 4294901760, %v321_v21  ;;  %v341_v43 = vld [vmem:[%s5148_s3 + $0xc8] sm:$0xff]  ;;  %p3729_p12 = pnand %p3728_p6, %p5385_p11 }
  0x42   : > { %5269 = vst [vmem:[#allocation10_spill] sm:$0xff] %v4006_v24  ;;  %v415_v35 = vand.u32 4294901760, %v338_v26  ;;  %3291 = vmatprep.subr.bf16.mxu1 %v4006_v24  ;;  %v4027_v38 = vpack.c.bf16 %v358_v29, %v355_v28  ;;  %v4029_v39 = vsub.f32 %v318_v12, %v355_v28  ;;  %v4031_v40 = vsub.f32 %v319_v13, %v358_v29  ;;  %v324_v44 = vld [vmem:[%s5148_s3 + $0x40] sm:$0xff]  ;;  %v325_v49 = vld [vmem:[%s5148_s3 + $0x48] sm:$0xff]  ;;  %v342_v58 = vld [vmem:[%s5148_s3 + $0xd0] sm:$0xff]  ;;  %s3799_s19 = smov [#allocation5]  }
  0x43   : > { %v4033_v41 = vsub.f32 %v336_v14, %v409_v30  ;;  %v4044_v45 = vpack.c.bf16 %v412_v32, %v409_v30  ;;  %v4046_v46 = vsub.f32 %v337_v19, %v412_v32  ;;  %v4048_v47 = vpack.c.bf16 %v364_v34, %v361_v33  ;;  %v343_v59 = vld [vmem:[%s5148_s3 + $0xd8] sm:$0xff]  ;;  %v326_v0 = vld [vmem:[%s5148_s3 + $0x50] sm:$0xff]  ;;  %v344_v2 = vld [vmem:[%s5148_s3 + $0xe0] sm:$0xff]  ;;  %p3730_p13 = pneg %p3729_p12  ;;  %s3731_s21 = sshll.u32 %s3799_s19, 4  ;;  %s3732_s21 = int_to_ptr.vmem [resolvable:$false] %s3731_s21 }
  0x44   : > { %5270 = vst [vmem:[#allocation11_spill] sm:$0xff] %v4027_v38  ;;  %v4050_v48 = vsub.f32 %v320_v20, %v361_v33  ;;  %v4055_v50 = vsub.f32 %v321_v21, %v364_v34  ;;  %v418_v51 = vand.u32 4294901760, %v339_v31  ;;  %v4057_v52 = vsub.f32 %v338_v26, %v415_v35  ;;  %v327_v1 = vld [vmem:[%s5148_s3 + $0x58] sm:$0xff]  ;;  %v345_v7 = vld [vmem:[%s5148_s3 + $0xe8] sm:$0xff]  ;;  %v328_v8 = vld [vmem:[%s5148_s3 + $0x60] sm:$0xff]  ;;  %s3733_s9 = scalar_lea.vmem %s3732_s21, 2048  ;;  %p3734_p8 = scmp.lt.s32.totalorder %s5096_s18, %s3732_s21 }
  0x45   : > { %5271 = vst [vmem:[#allocation12_spill] sm:$0xff] %v4044_v45  ;;  %5272 = vst [vmem:[#allocation13_spill] sm:$0xff] %v4048_v47  ;;  %v367_v53 = vand.u32 4294901760, %v322_v36  ;;  %3293 = vmatpush3.bf16.msra.mxu1 %v4027_v38  ;;  %v370_v54 = vand.u32 4294901760, %v323_v37  ;;  %v421_v55 = vand.u32 4294901760, %v340_v42  ;;  %v424_v56 = vand.u32 4294901760, %v341_v43  ;;  %p3735_p10 = scmp.lt.s32.totalorder %s3733_s9, %s3727_s29 }
  0x46   : > { %5273 = vst [vmem:[#allocation14_spill] sm:$0xff] %v4050_v48  ;;  %v373_v57 = vand.u32 4294901760, %v324_v44  ;;  %3295 = vmatprep.subr.bf16.mxu1 %v4044_v45  ;;  %v4067_v60 = vpack.c.bf16 %v418_v51, %v415_v35  ;;  %v4069_v61 = vsub.f32 %v339_v31, %v418_v51  ;;  %v376_v63 = vand.u32 4294901760, %v325_v49  ;;  %v329_v9 = vld [vmem:[%s5148_s3 + $0x68] sm:$0xff]  ;;  %v346_v26 = vld [vmem:[%s5148_s3 + $0xf0] sm:$0xff]  ;;  %v347_v28 = vld [vmem:[%s5148_s3 + $0xf8] sm:$0xff] }
  0x47   : > { %v4071_v62 = vsub.f32 %v322_v36, %v367_v53  ;;  %v4082_v3 = vpack.c.bf16 %v370_v54, %v367_v53  ;;  %v4084_v4 = vsub.f32 %v323_v37, %v370_v54  ;;  %v4086_v5 = vpack.c.bf16 %v424_v56, %v421_v55  ;;  %v330_v29 = vld [vmem:[%s5148_s3 + $0x70] sm:$0xff]  ;;  %v331_v30 = vld [vmem:[%s5148_s3 + $0x78] sm:$0xff]  ;;  %v4122_v35 = vld [vmem:[%s3952_s15 + $0x8] sm:$0xff]  ;;  %p3736_p0 = por %p3735_p10, %p3734_p8 }
  0x48   : > { %5274 = vst [vmem:[#allocation15_spill] sm:$0xff] %v4067_v60  ;;  %v4088_v6 = vsub.f32 %v340_v42, %v421_v55  ;;  %v4099_v10 = vsub.f32 %v341_v43, %v424_v56  ;;  %v4101_v11 = vpack.c.bf16 %v376_v63, %v373_v57  ;;  %v4103_v12 = vsub.f32 %v324_v44, %v373_v57  ;;  %v4125_v36 = vld [vmem:[%s3952_s15] sm:$0xff] }
  0x49   : > { %5275 = vst [vmem:[#allocation16_spill] sm:$0xff] %v4082_v3  ;;  %5276 = vst [vmem:[#allocation17_spill] sm:$0xff] %v4086_v5  ;;  %v4105_v13 = vsub.f32 %v325_v49, %v376_v63  ;;  %3297 = vmatpush3.bf16.msra.mxu1 %v4048_v47  ;;  %v427_v14 = vand.u32 4294901760, %v342_v58  ;;  %v430_v19 = vand.u32 4294901760, %v343_v59  ;;  %v379_v20 = vand.u32 4294901760, %v326_v0  ;;  %p3737_p2 = pnand %p3736_p0, %p3730_p13 }
  0x4a   : > { %5277 = vst [vmem:[#allocation18_spill] sm:$0xff] %v4101_v11  ;;  %v382_v21 = vand.u32 4294901760, %v327_v1  ;;  %3299 = vmatprep.subr.bf16.mxu1 %v4067_v60  ;;  %v433_v31 = vand.u32 4294901760, %v344_v2  ;;  %v436_v32 = vand.u32 4294901760, %v345_v7  ;;  %v385_v33 = vand.u32 4294901760, %v328_v8 }
  0x4b   : > { %v388_v34 = vand.u32 4294901760, %v329_v9  ;;  %v4127_v37 = vpack.c.bf16 %v430_v19, %v427_v14  ;;  %v4129_v42 = vsub.f32 %v342_v58, %v427_v14  ;;  %v4131_v43 = vsub.f32 %v343_v59, %v430_v19  ;;  %v4154_v14 = vld [vmem:[%s3952_s15 + $0x18] sm:$0xff] }
  0x4c   : > { %v4133_v44 = vpack.c.bf16 %v382_v21, %v379_v20  ;;  %v4135_v49 = vsub.f32 %v326_v0, %v379_v20  ;;  %v4137_v51 = vsub.f32 %v327_v1, %v382_v21  ;;  %v4139_v53 = vpack.c.bf16 %v436_v32, %v433_v31 }
  0x4d   : > { %5278 = vst [vmem:[#allocation19_spill] sm:$0xff] %v4127_v37  ;;  %v4141_v54 = vsub.f32 %v344_v2, %v433_v31  ;;  %3301 = vmatpush3.bf16.msra.mxu1 %v4082_v3  ;;  %v4144_v55 = vsub.f32 %v345_v7, %v436_v32  ;;  %v4146_v56 = vpack.c.bf16 %v388_v34, %v385_v33  ;;  %v439_v59 = vand.u32 4294901760, %v346_v26  ;;  %v4157_v2 = vld [vmem:[%s3952_s15 + $0x10] sm:$0xff] }
  0x4e   : > { %5279 = vst [vmem:[#allocation20_spill] sm:$0xff] %v4133_v44  ;;  %5280 = vst [vmem:[#allocation21_spill] sm:$0xff] %v4139_v53  ;;  %v4148_v57 = vsub.f32 %v328_v8, %v385_v33  ;;  %v4150_v58 = vsub.f32 %v329_v9, %v388_v34  ;;  %3303 = vmatprep.subr.bf16.mxu1 %v4086_v5  ;;  %v442_v63 = vand.u32 4294901760, %v347_v28  ;;  %v391_v0 = vand.u32 4294901760, %v330_v29 }
  0x4f   : > { %5281 = vst [vmem:[#allocation22_spill] sm:$0xff] %v4146_v56  ;;  %v394_v1 = vand.u32 4294901760, %v331_v30  ;;  %v4160_v19 = vand.u32 4294901760, %v4122_v35  ;;  %v4163_v7 = vand.u32 4294901760, %v4125_v36  ;;  %v5156_v8 = vand.u32 4294901760, %v3987_v16 }
  0x50   : > { %v4167_v20 = vpack.c.bf16 %v442_v63, %v439_v59  ;;  %v4169_v21 = vsub.f32 %v346_v26, %v439_v59  ;;  %v4171_v31 = vsub.f32 %v347_v28, %v442_v63  ;;  %v4176_v33 = vsub.f32 %v330_v29, %v391_v0 }
  0x51   : > { %v4173_v32 = vpack.c.bf16 %v394_v1, %v391_v0  ;;  %3305 = vmatpush3.bf16.msra.mxu1 %v4101_v11  ;;  %v4178_v34 = vsub.f32 %v331_v30, %v394_v1  ;;  %v4182_v5 = vsub.f32 %v4122_v35, %v4160_v19  ;;  %v4186_v9 = vsub.f32 %v4125_v36, %v4163_v7 }
  0x52   : > { %5282 = vst [vmem:[#allocation23_spill] sm:$0xff] %v4167_v20  ;;  %3307 = vmatprep.subr.bf16.mxu1 %v4127_v37  ;;  %v681_v26 = vsub.f32 %v3987_v16, %v5156_v8  ;;  %v5286_v28 = vand.u32 4294901760, %v3989_v17  ;;  %v5165_v30 = vand.u32 4294901760, %v3991_v18  ;;  %v5166_v59 = vand.u32 4294901760, %v4004_v23  ;;  %1393 = vmatprep.mubr.f32.mxu0 %v4160_v19 }
  0x53   : > { %5283 = vst [vmem:[#allocation24_spill] sm:$0xff] %v4173_v32  ;;  %5284 = vst [vmem:[#allocation25_spill] sm:$0xff] %v4182_v5  ;;  %v5173_v63 = vand.u32 4294901760, %v4182_v5  ;;  %v4201_v1 = vand.u32 4294901760, %v4154_v14  ;;  %v4204_v8 = vand.u32 4294901760, %v4157_v2  ;;  %v5288_v60 = vand.u32 4294901760, %v4186_v9 }
  0x54   : > { %5285 = vst [vmem:[#allocation26_spill] sm:$0xff] %v4186_v9  ;;  %v688_v29 = vsub.f32 %v3989_v17, %v5286_v28  ;;  %v682_v37 = vand.u32 4294901760, %v681_v26  ;;  %v569_v28 = vsub.f32 %v3991_v18, %v5165_v30  ;;  %v576_v3 = vsub.f32 %v4004_v23, %v5166_v59 }
  0x55   : > { %5287 = vst [vmem:[#allocation27_spill] sm:$0xff] %v4204_v8  ;;  %3309 = vmatpush3.bf16.msra.mxu1 %v4133_v44  ;;  %v447_v0 = vsub.f32 %v4182_v5, %v5173_v63  ;;  %v453_v26 = vsub.f32 %v4186_v9, %v5288_v60  ;;  %v4225_v30 = vsub.f32 %v4157_v2, %v4204_v8  ;;  %v5188_v45 = vand.u32 4294901760, %v4008_v25  ;;  %v4230_v63 = vld [vmem:[%s3952_s15 + $0x28] sm:$0xff]  ;;  %v4235_v9 = vld [vmem:[%s3952_s15 + $0x20] sm:$0xff]  ;;  %v4280_v5 = vld [vmem:[%s3952_s15 + $0x38] sm:$0xff] }
  0x56   : > { %v689_v11 = vand.u32 4294901760, %v688_v29  ;;  %v4221_v29 = vsub.f32 %v4154_v14, %v4201_v1  ;;  %3311 = vmatprep.subr.bf16.mxu1 %v4139_v53  ;;  %v570_v44 = vand.u32 4294901760, %v569_v28  ;;  %v577_v47 = vand.u32 4294901760, %v576_v3 }
  0x57   : > { %5290 = vst [vmem:[#allocation29_spill] sm:$0xff] %v4225_v30  ;;  %v448_v38 = vand.u32 4294901760, %v447_v0  ;;  %v454_v24 = vand.u32 4294901760, %v453_v26  ;;  %v5187_v22 = vand.u32 4294901760, %v4225_v30  ;;  %v695_v53 = vsub.f32 %v4008_v25, %v5188_v45 }
  0x58   : > { %5289 = vst [vmem:[#allocation28_spill] sm:$0xff] %v4221_v29  ;;  %v3318_v59 = vpack.c.bf16 %v689_v11, %v682_v37  ;;  %v5186_v60 = vand.u32 4294901760, %v4221_v29  ;;  %v3320_v15 = vpack.c.bf16 %v577_v47, %v570_v44  ;;  %v5191_v11 = vand.u32 4294901760, %v4014_v27 }
  0x59   : > { %v5196_v3 = vand.u32 4294901760, %v4029_v39  ;;  %3313 = vmatpush3.bf16.msra.mxu1 %v4146_v56  ;;  %449 = vmatprep.mubr.f32.mxu1 %v448_v38  ;;  %v468_v0 = vsub.f32 %v4225_v30, %v5187_v22  ;;  %v5197_v47 = vand.u32 4294901760, %v4031_v40  ;;  %v4251_v44 = vand.u32 4294901760, %v4230_v63 }
  0x5a   : > { %v462_v37 = vsub.f32 %v4221_v29, %v5186_v60  ;;  %3315 = vmatprep.subr.bf16.mxu1 %v4167_v20  ;;  %v696_v28 = vand.u32 4294901760, %v695_v53  ;;  %v702_v38 = vsub.f32 %v4014_v27, %v5191_v11  ;;  %v4261_v60 = vand.u32 4294901760, %v4235_v9 }
  0x5b   : > { %5291 = vst [vmem:[#allocation30_spill] sm:$0xff] %v4251_v44  ;;  %v583_v26 = vsub.f32 %v4029_v39, %v5196_v3  ;;  %v469_v45 = vand.u32 4294901760, %v468_v0  ;;  %v590_v56 = vsub.f32 %v4031_v40, %v5197_v47  ;;  %v4268_v53 = vsub.f32 %v4230_v63, %v4251_v44 }
  0x5c   : > { %5292 = vst [vmem:[#allocation31_spill] sm:$0xff] %v4261_v60  ;;  %v463_v22 = vand.u32 4294901760, %v462_v37  ;;  %v703_v11 = vand.u32 4294901760, %v702_v38  ;;  %v4272_v30 = vsub.f32 %v4235_v9, %v4261_v60  ;;  %v5208_v3 = vand.u32 4294901760, %v4033_v41 }
  0x5d   : > { %5293 = vst [vmem:[#allocation32_spill] sm:$0xff] %v4268_v53  ;;  %v584_v20 = vand.u32 4294901760, %v583_v26  ;;  %3317 = vmatpush3.bf16.msra.mxu1 %v4173_v32  ;;  %v591_v37 = vand.u32 4294901760, %v590_v56  ;;  %v5209_v0 = vand.u32 4294901760, %v4268_v53  ;;  %v4288_v32 = vld [vmem:[%s3952_s15 + $0x30] sm:$0xff]  ;;  %v5295_v29 = vand.u32 4294901760, %v4046_v46 }
  0x5e   : > { %5294 = vst [vmem:[#allocation33_spill] sm:$0xff] %v4272_v30  ;;  %3319 = vmatprep.subr.bf16.mxu1 %v3318_v59  ;;  %v3322_v38 = vpack.c.bf16 %v703_v11, %v696_v28  ;;  %v5216_v26 = vand.u32 4294901760, %v4272_v30  ;;  %v709_v60 = vsub.f32 %v4033_v41, %v5208_v3  ;;  %v5296_v11 = vand.u32 4294901760, %v4050_v48 }
  0x5f   : > { %v3324_v56 = vpack.c.bf16 %v591_v37, %v584_v20  ;;  %v477_v47 = vsub.f32 %v4268_v53, %v5209_v0  ;;  %v716_v59 = vsub.f32 %v4046_v46, %v5295_v29  ;;  %v5297_v20 = vand.u32 4294901760, %v4055_v50 }
  0x60   : > { %v597_v28 = vsub.f32 %v4050_v48, %v5296_v11  ;;  %455 = vmatmul.mubr.f32.vlgmr.msra.gmra.mrb[0].mxu1 %v454_v24  ;;  %v483_v3 = vsub.f32 %v4272_v30, %v5216_v26  ;;  %v710_v44 = vand.u32 4294901760, %v709_v60  ;;  %v4306_v0 = vand.u32 4294901760, %v4280_v5 }
  0x61   : > { %v604_v37 = vsub.f32 %v4055_v50, %v5297_v20  ;;  %3321 = vmatpush3.bf16.msra.mxu1 %v3320_v15  ;;  %464 = vmatprep.mubr.f32.mxu1 %v463_v22  ;;  %v478_v29 = vand.u32 4294901760, %v477_v47  ;;  %v717_v53 = vand.u32 4294901760, %v716_v59  ;;  %v4309_v11 = vand.u32 4294901760, %v4288_v32 }
  0x62   : > { %v598_v8 = vand.u32 4294901760, %v597_v28  ;;  %3323 = vmatprep.subr.bf16.mxu1 %v3322_v38  ;;  %v484_v24 = vand.u32 4294901760, %v483_v3  ;;  %v4313_v60 = vsub.f32 %v4280_v5, %v4306_v0  ;;  %v5219_v20 = vand.u32 4294901760, %v4057_v52 }
  0x63   : > { %5298 = vst [vmem:[#allocation34_spill] sm:$0xff] %v4309_v11  ;;  %v605_v48 = vand.u32 4294901760, %v604_v37  ;;  %v3326_v26 = vpack.c.bf16 %v717_v53, %v710_v44  ;;  %v4318_v15 = vsub.f32 %v4288_v32, %v4309_v11  ;;  %v5218_v22 = vand.u32 4294901760, %v4069_v61 }
  0x64   : > { %5299 = vst [vmem:[#allocation35_spill] sm:$0xff] %v4313_v60  ;;  %v5217_v47 = vand.u32 4294901760, %v4071_v62  ;;  %470 = vmatmul.mubr.f32.gmra.mrb[2].mxu1 %v469_v45  ;;  %v5222_v3 = vand.u32 4294901760, %v4313_v60  ;;  %v723_v38 = vsub.f32 %v4057_v52, %v5219_v20  ;;  %v5223_v28 = vand.u32 4294901760, %v4084_v4 }
  0x65   : > { %v3328_v59 = vpack.c.bf16 %v605_v48, %v598_v8  ;;  %3325 = vmatpush3.bf16.msra.mxu1 %v3324_v56  ;;  %479 = vmatprep.mubr.f32.mxu1 %v478_v29  ;;  %v5228_v44 = vand.u32 4294901760, %v4318_v15  ;;  %v730_v53 = vsub.f32 %v4069_v61, %v5218_v22  ;;  %v309_v48 = vmul.f32 %v4122_v35, %v4122_v35 }
  0x66   : > { %v611_v45 = vsub.f32 %v4071_v62, %v5217_v47  ;;  %3327 = vmatprep.subr.bf16.mxu1 %v3326_v26  ;;  %v492_v8 = vsub.f32 %v4313_v60, %v5222_v3  ;;  %v724_v56 = vand.u32 4294901760, %v723_v38  ;;  %v618_v37 = vsub.f32 %v4084_v4, %v5223_v28 }
  0x67   : > { %v308_v29 = vmul.f32 %v4125_v36, %v4125_v36  ;;  %v498_v47 = vsub.f32 %v4318_v15, %v5228_v44  ;;  %v731_v22 = vand.u32 4294901760, %v730_v53  ;;  %v4347_v35 = vand.u32 4294901760, %v309_v48 }
  0x68   : > { %v612_v20 = vand.u32 4294901760, %v611_v45  ;;  %485 = vmatmul.mubr.f32.gmra.mrb[4].mxu1 %v484_v24  ;;  %v493_v26 = vand.u32 4294901760, %v492_v8  ;;  %v619_v30 = vand.u32 4294901760, %v618_v37  ;;  %v5233_v38 = vand.u32 4294901760, %v4088_v6 }
  0x69   : > { %v4349_v3 = vand.u32 4294901760, %v308_v29  ;;  %3329 = vmatpush3.bf16.msra.mxu1 %v3328_v59  ;;  %v499_v28 = vand.u32 4294901760, %v498_v47  ;;  %v3330_v60 = vpack.c.bf16 %v731_v22, %v724_v56  ;;  %v4353_v36 = vsub.f32 %v309_v48, %v4347_v35 }
  0x6a   : > { %v5230_v11 = vand.u32 4294901760, %v4099_v10  ;;  %494 = vmatprep.mubr.f32.mxu1 %v493_v26  ;;  %v3332_v53 = vpack.c.bf16 %v619_v30, %v612_v20  ;;  %v737_v24 = vsub.f32 %v4088_v6, %v5233_v38  ;;  %v5229_v8 = vand.u32 4294901760, %v4103_v12 }
  0x6b   : > { %5300 = vst [vmem:[#allocation36_spill] sm:$0xff] %v4353_v36  ;;  %v4357_v45 = vsub.f32 %v308_v29, %v4349_v3  ;;  %3331 = vmatprep.subr.bf16.mxu1 %v3330_v60  ;;  %v5231_v47 = vand.u32 4294901760, %v4353_v36  ;;  %v5232_v59 = vand.u32 4294901760, %v4105_v13  ;;  %v311_v30 = vmul.f32 %v4154_v14, %v4154_v14 }
  0x6c   : > { %v744_v22 = vsub.f32 %v4099_v10, %v5230_v11  ;;  %500 = vmatmul.mubr.f32.gmra.mrb[6].mxu1 %v499_v28  ;;  %v738_v48 = vand.u32 4294901760, %v737_v24  ;;  %v625_v56 = vsub.f32 %v4103_v12, %v5229_v8  ;;  %v310_v60 = vmul.f32 %v4157_v2, %v4157_v2 }
  0x6d   : > { %5301 = vst [vmem:[#allocation37_spill] sm:$0xff] %v4357_v45  ;;  %v5234_v20 = vand.u32 4294901760, %v4357_v45  ;;  %3333 = vmatpush3.bf16.msra.mxu1 %v3332_v53  ;;  %v507_v37 = vsub.f32 %v4353_v36, %v5231_v47  ;;  %v632_v14 = vsub.f32 %v4105_v13, %v5232_v59  ;;  %v4382_v28 = vand.u32 4294901760, %v311_v30 }
  0x6e   : > { %v745_v29 = vand.u32 4294901760, %v744_v22  ;;  %v626_v24 = vand.u32 4294901760, %v625_v56  ;;  %v4387_v44 = vand.u32 4294901760, %v310_v60  ;;  %v5237_v2 = vand.u32 4294901760, %v4129_v42 }
  0x6f   : > { %v513_v26 = vsub.f32 %v4357_v45, %v5234_v20  ;;  %v508_v53 = vand.u32 4294901760, %v507_v37  ;;  %v633_v11 = vand.u32 4294901760, %v632_v14  ;;  %v4391_v22 = vsub.f32 %v311_v30, %v4382_v28 }
  0x70   : > { %v3334_v8 = vpack.c.bf16 %v745_v29, %v738_v48  ;;  %v4394_v59 = vsub.f32 %v310_v60, %v4387_v44  ;;  %v751_v38 = vsub.f32 %v4129_v42, %v5237_v2  ;;  %v5236_v56 = vand.u32 4294901760, %v4131_v43 }
  0x71   : > { %5302 = vst [vmem:[#allocation38_spill] sm:$0xff] %v4391_v22  ;;  %v514_v47 = vand.u32 4294901760, %v513_v26  ;;  %509 = vmatprep.mubr.f32.mxu1 %v508_v53  ;;  %v3336_v20 = vpack.c.bf16 %v633_v11, %v626_v24  ;;  %v5235_v37 = vand.u32 4294901760, %v4391_v22  ;;  %v5238_v48 = vand.u32 4294901760, %v4135_v49 }
  0x72   : > { %5303 = vst [vmem:[#allocation39_spill] sm:$0xff] %v4394_v59  ;;  %3335 = vmatprep.subr.bf16.mxu1 %v3334_v8  ;;  %v5243_v30 = vand.u32 4294901760, %v4137_v51  ;;  %v5244_v29 = vand.u32 4294901760, %v4394_v59  ;;  %v752_v60 = vand.u32 4294901760, %v751_v38  ;;  %v758_v14 = vsub.f32 %v4131_v43, %v5236_v56 }
  0x73   : > { %515 = vmatmul.mubr.f32.gmra.mrb[8].mxu1 %v514_v47  ;;  %v313_v26 = vmul.f32 %v4230_v63, %v4230_v63  ;;  %v522_v11 = vsub.f32 %v4391_v22, %v5235_v37  ;;  %v639_v8 = vsub.f32 %v4135_v49, %v5238_v48  ;;  %v312_v47 = vmul.f32 %v4235_v9, %v4235_v9 }
  0x74   : > { %3337 = vmatpush3.bf16.msra.mxu1 %v3336_v20  ;;  %v646_v38 = vsub.f32 %v4137_v51, %v5243_v30  ;;  %v528_v63 = vsub.f32 %v4394_v59, %v5244_v29  ;;  %v759_v20 = vand.u32 4294901760, %v758_v14  ;;  %v5247_v53 = vand.u32 4294901760, %v4141_v54 }
  0x75   : > { %v4423_v24 = vand.u32 4294901760, %v313_v26  ;;  %v523_v37 = vand.u32 4294901760, %v522_v11  ;;  %v640_v56 = vand.u32 4294901760, %v639_v8  ;;  %v4426_v48 = vand.u32 4294901760, %v312_v47 }
  0x76   : > { %v647_v2 = vand.u32 4294901760, %v646_v38  ;;  %v529_v22 = vand.u32 4294901760, %v528_v63  ;;  %v3338_v45 = vpack.c.bf16 %v759_v20, %v752_v60  ;;  %v765_v9 = vsub.f32 %v4141_v54, %v5247_v53 }
  0x77   : > { %v4429_v30 = vsub.f32 %v313_v26, %v4423_v24  ;;  %524 = vmatprep.mubr.f32.mxu1 %v523_v37  ;;  %v4435_v29 = vsub.f32 %v312_v47, %v4426_v48  ;;  %v5246_v11 = vand.u32 4294901760, %v4144_v55  ;;  %v5245_v8 = vand.u32 4294901760, %v4148_v57 }
  0x78   : > { %v3340_v14 = vpack.c.bf16 %v647_v2, %v640_v56  ;;  %530 = vmatmul.mubr.f32.gmra.mrb[10].mxu1 %v529_v22  ;;  %3339 = vmatprep.subr.bf16.mxu1 %v3338_v45  ;;  %v766_v38 = vand.u32 4294901760, %v765_v9  ;;  %v5249_v26 = vand.u32 4294901760, %v4150_v58  ;;  %v315_v63 = vmul.f32 %v4280_v5, %v4280_v5 }
  0x79   : > { %5304 = vst [vmem:[#allocation40_spill] sm:$0xff] %v4429_v30  ;;  %v5248_v60 = vand.u32 4294901760, %v4429_v30  ;;  %v5256_v2 = vand.u32 4294901760, %v4435_v29  ;;  %v772_v56 = vsub.f32 %v4144_v55, %v5246_v11  ;;  %v653_v22 = vsub.f32 %v4148_v57, %v5245_v8 }
  0x7a   : > { %3341 = vmatpush3.bf16.msra.mxu1 %v3340_v14  ;;  %v314_v45 = vmul.f32 %v4288_v32, %v4288_v32  ;;  %v660_v5 = vsub.f32 %v4150_v58, %v5249_v26  ;;  %v4458_v47 = vand.u32 4294901760, %v315_v63  ;;  %v5261_v20 = vand.u32 4294901760, %v4169_v21 }
  0x7b   : > { %v537_v37 = vsub.f32 %v4429_v30, %v5248_v60  ;;  %v543_v9 = vsub.f32 %v4435_v29, %v5256_v2  ;;  %v773_v14 = vand.u32 4294901760, %v772_v56  ;;  %v654_v8 = vand.u32 4294901760, %v653_v22 }
  0x7c   : > { %v4464_v11 = vand.u32 4294901760, %v314_v45  ;;  %v661_v53 = vand.u32 4294901760, %v660_v5  ;;  %v4467_v60 = vsub.f32 %v315_v63, %v4458_v47  ;;  %v779_v26 = vsub.f32 %v4169_v21, %v5261_v20 }
  0x7d   : > { %v538_v32 = vand.u32 4294901760, %v537_v37  ;;  %v544_v30 = vand.u32 4294901760, %v543_v9  ;;  %v3342_v59 = vpack.c.bf16 %v773_v14, %v766_v38  ;;  %v5257_v2 = vand.u32 4294901760, %v4171_v31 }
  0x7e   : > { %v4473_v36 = vsub.f32 %v314_v45, %v4464_v11  ;;  %v3344_v56 = vpack.c.bf16 %v661_v53, %v654_v8  ;;  %v5258_v22 = vand.u32 4294901760, %v4467_v60  ;;  %v5259_v37 = vand.u32 4294901760, %v4176_v33 }
  0x7f   : > { %539 = vmatprep.mubr.f32.mxu1 %v538_v32  ;;  %3343 = vmatprep.subr.bf16.mxu1 %v3342_v59  ;;  %v780_v5 = vand.u32 4294901760, %v779_v26  ;;  %v786_v38 = vsub.f32 %v4171_v31, %v5257_v2  ;;  %v673_v45 = vand.u32 4294901760, %v4178_v34 }
  0x80   : > { %545 = vmatmul.mubr.f32.gmra.mrb[12].mxu1 %v544_v30  ;;  %v5260_v63 = vand.u32 4294901760, %v4473_v36  ;;  %v552_v53 = vsub.f32 %v4467_v60, %v5258_v22  ;;  %v667_v8 = vsub.f32 %v4176_v33, %v5259_v37  ;;  %v3350_v22 = vpack.c.bf16 %v3989_v17, %v3987_v16 }
  0x81   : > { %3345 = vmatpush3.bf16.msra.mxu1 %v3344_v56  ;;  %v787_v30 = vand.u32 4294901760, %v786_v38  ;;  %v674_v26 = vsub.f32 %v4178_v34, %v673_v45  ;;  %v5305_v38 = vand.u32 4294901760, %v3987_v16  ;;  %v3354_v16 = vpack.c.bf16 %v4014_v27, %v4008_v25 }
  0x82   : > { %v558_v59 = vsub.f32 %v4473_v36, %v5260_v63  ;;  %v553_v9 = vand.u32 4294901760, %v552_v53  ;;  %v668_v14 = vand.u32 4294901760, %v667_v8  ;;  %v5306_v63 = vand.u32 4294901760, %v3989_v17 }
  0x83   : > { %v3346_v56 = vpack.c.bf16 %v787_v30, %v780_v5  ;;  %v675_v2 = vand.u32 4294901760, %v674_v26  ;;  %v3352_v53 = vpack.c.bf16 %v4004_v23, %v3991_v18  ;;  %v5307_v5 = vand.u32 4294901760, %v3991_v18 }
  0x84   : > { %v559_v32 = vand.u32 4294901760, %v558_v59  ;;  %554 = vmatprep.mubr.f32.mxu1 %v553_v9  ;;  %v3414_v20 = vpack.c.bf16 %v5306_v63, %v5305_v38  ;;  %v5308_v8 = vand.u32 4294901760, %v4004_v23  ;;  %v5309_v30 = vand.u32 4294901760, %v4008_v25 }
  0x85   : > { %3347 = vmatprep.subr.bf16.mxu1 %v3346_v56  ;;  %v3348_v37 = vpack.c.bf16 %v675_v2, %v668_v14  ;;  %v5310_v2 = vand.u32 4294901760, %v4014_v27  ;;  %v5311_v17 = vand.u32 4294901760, %v4029_v39  ;;  %v5313_v18 = vand.u32 4294901760, %v4033_v41  ;;  %v5318_v56 = vld [vmem:[#allocation27_spill] sm:$0xff] }
  0x86   : > { %560 = vmatmul.mubr.f32.gmra.mrb[14].mxu1 %v559_v32  ;;  %v3416_v59 = vpack.c.bf16 %v5308_v8, %v5307_v5  ;;  %3415 = vmatprep.subr.bf16.mxu0 %v3414_v20  ;;  %v5314_v23 = vand.u32 4294901760, %v4046_v46  ;;  %v3356_v25 = vpack.c.bf16 %v4031_v40, %v4029_v39  ;;  %v3358_v27 = vpack.c.bf16 %v4046_v46, %v4033_v41  ;;  %v5315_v20 = vld [vmem:[#allocation14_spill] sm:$0xff] }
  0x87   : > { %790 = vmatprep.mubr.f32.mxu1 %v4160_v19  ;;  %3349 = vmatpush3.bf16.msra.mxu1 %v3348_v37  ;;  %v3418_v26 = vpack.c.bf16 %v5310_v2, %v5309_v30  ;;  %v5312_v37 = vand.u32 4294901760, %v4031_v40  ;;  %v5317_v14 = vand.u32 4294901760, %v4055_v50  ;;  %v5319_v38 = vand.u32 4294901760, %v4057_v52  ;;  %v5321_v39 = vld [vmem:[#allocation30_spill] sm:$0xff]  ;;  %v5324_v30 = vld [vmem:[#allocation31_spill] sm:$0xff] }
  0x88   : > { %3351 = vmatprep.subr.bf16.mxu1 %v3350_v22  ;;  %3417 = vmatpush3.bf16.msra.mxu0 %v3416_v59  ;;  %v3422_v9 = vpack.c.bf16 %v5314_v23, %v5313_v18  ;;  %v5316_v22 = vand.u32 4294901760, %v5315_v20  ;;  %v3360_v40 = vpack.c.bf16 %v4055_v50, %v5315_v20  ;;  %v3362_v41 = vpack.c.bf16 %v4069_v61, %v4057_v52 }
  0x89   : > { %v3420_v63 = vpack.c.bf16 %v5312_v37, %v5311_v17  ;;  %3419 = vmatprep.subr.bf16.mxu0 %v3418_v26  ;;  %v5322_v46 = vand.u32 4294901760, %v4071_v62  ;;  %v5323_v8 = vand.u32 4294901760, %v4084_v4  ;;  %v5325_v2 = vand.u32 4294901760, %v4088_v6 }
  0x8a   : > { %792 = vmatmul.mubr.f32.vlgmr.msra.gmra.mrb[16].mxu1 %v4163_v7  ;;  %v3424_v32 = vpack.c.bf16 %v5317_v14, %v5316_v22  ;;  %v5326_v26 = vand.u32 4294901760, %v4099_v10  ;;  %v3364_v50 = vpack.c.bf16 %v4084_v4, %v4071_v62  ;;  %v3366_v52 = vpack.c.bf16 %v4099_v10, %v4088_v6 }
  0x8b   : > { %3353 = vmatpush3.bf16.msra.mxu1 %v3352_v53  ;;  %797 = vmatprep.mubr.f32.mxu1 %v4201_v1  ;;  %v5320_v53 = vand.u32 4294901760, %v4069_v61  ;;  %v3428_v59 = vpack.c.bf16 %v5323_v8, %v5322_v46  ;;  %v5327_v61 = vand.u32 4294901760, %v4103_v12  ;;  %v5328_v17 = vand.u32 4294901760, %v4105_v13  ;;  %v5350_v46 = vld [vmem:[#allocation12_spill] sm:$0xff]  ;;  %v5351_v8 = vld [vmem:[#allocation33_spill] sm:$0xff] }
  0x8c   : > { %3355 = vmatprep.subr.bf16.mxu1 %v3354_v16  ;;  %3421 = vmatpush3.bf16.msra.mxu0 %v3420_v63  ;;  %v3430_v16 = vpack.c.bf16 %v5326_v26, %v5325_v2  ;;  %v5329_v63 = vld [vmem:[#allocation34_spill] sm:$0xff]  ;;  %v5330_v18 = vand.u32 4294901760, %v4129_v42  ;;  %v5331_v23 = vand.u32 4294901760, %v4131_v43  ;;  %v3368_v62 = vpack.c.bf16 %v4105_v13, %v4103_v12  ;;  %v5353_v2 = vld [vmem:[#allocation35_spill] sm:$0xff] }
  0x8d   : > { %3423 = vmatprep.subr.bf16.mxu0 %v3422_v9  ;;  %v3426_v5 = vpack.c.bf16 %v5320_v53, %v5319_v38  ;;  %v3432_v37 = vpack.c.bf16 %v5328_v17, %v5327_v61  ;;  %v3370_v4 = vpack.c.bf16 %v4131_v43, %v4129_v42  ;;  %v5332_v6 = vand.u32 4294901760, %v4135_v49  ;;  %v5354_v26 = vld [vmem:[#allocation15_spill] sm:$0xff]  ;;  %v5358_v61 = vld [vmem:[#allocation37_spill] sm:$0xff]  ;;  %v5359_v17 = vld [vmem:[#allocation18_spill] sm:$0xff] }
  0x8e   : > { %799 = vmatmul.mubr.f32.gmra.mrb[18].mxu1 %v5318_v56  ;;  %v3434_v9 = vpack.c.bf16 %v5331_v23, %v5330_v18  ;;  %v5333_v10 = vand.u32 4294901760, %v4137_v51  ;;  %v5335_v20 = vand.u32 4294901760, %v4144_v55  ;;  %v3372_v12 = vpack.c.bf16 %v4137_v51, %v4135_v49  ;;  %v5361_v18 = vld [vmem:[#allocation19_spill] sm:$0xff] }
  0x8f   : > { %3357 = vmatpush3.bf16.msra.mxu1 %v3356_v25  ;;  %804 = vmatprep.mubr.f32.mxu1 %v5321_v39  ;;  %v3374_v13 = vpack.c.bf16 %v4144_v55, %v4141_v54  ;;  %v5336_v42 = vand.u32 4294901760, %v4148_v57  ;;  %v5337_v43 = vand.u32 4294901760, %v4150_v58  ;;  %v5339_v38 = vand.u32 4294901760, %v4171_v31  ;;  %v5362_v23 = vld [vmem:[#allocation39_spill] sm:$0xff] }
  0x90   : > { %3359 = vmatprep.subr.bf16.mxu1 %v3358_v27  ;;  %3425 = vmatpush3.bf16.msra.mxu0 %v3424_v32  ;;  %v3436_v25 = vpack.c.bf16 %v5333_v10, %v5332_v6  ;;  %v5334_v27 = vand.u32 4294901760, %v4141_v54  ;;  %v5338_v32 = vand.u32 4294901760, %v4169_v21  ;;  %v3376_v49 = vpack.c.bf16 %v4150_v58, %v4148_v57  ;;  %v5341_v57 = vld [vmem:[#allocation25_spill] sm:$0xff]  ;;  %v5342_v58 = vld [vmem:[#allocation8_spill] sm:$0xff]  ;;  %v5366_v6 = vld [vmem:[#allocation22_spill] sm:$0xff] }
  0x91   : > { %3427 = vmatprep.subr.bf16.mxu0 %v3426_v5  ;;  %v3440_v14 = vpack.c.bf16 %v5337_v43, %v5336_v42  ;;  %v3378_v51 = vpack.c.bf16 %v4171_v31, %v4169_v21  ;;  %v5340_v54 = vand.u32 4294901760, %v4176_v33  ;;  %v3380_v5 = vpack.c.bf16 %v4178_v34, %v4176_v33  ;;  %v5343_v21 = vld [vmem:[#allocation26_spill] sm:$0xff]  ;;  %v5344_v31 = vld [vmem:[#allocation9_spill] sm:$0xff]  ;;  %v5367_v10 = vld [vmem:[#allocation23_spill] sm:$0xff] }
  0x92   : > { %806 = vmatmul.mubr.f32.gmra.mrb[20].mxu1 %v5324_v30  ;;  %v3438_v22 = vpack.c.bf16 %v5335_v20, %v5334_v27  ;;  %v3442_v53 = vpack.c.bf16 %v5339_v38, %v5338_v32  ;;  %v5346_v33 = vld [vmem:[#allocation10_spill] sm:$0xff]  ;;  %v5347_v34 = vld [vmem:[#allocation29_spill] sm:$0xff]  ;;  %v5369_v27 = vand.u32 4294901760, %v5341_v57  ;;  %v5370_v20 = vand.u32 4294901760, %v5343_v21 }
  0x93   : > { %3361 = vmatpush3.bf16.msra.mxu1 %v3360_v40  ;;  %811 = vmatprep.mubr.f32.mxu1 %v4306_v0  ;;  %v3444_v55 = vpack.c.bf16 %v673_v45, %v5340_v54  ;;  %v5345_v45 = vld [vmem:[#allocation28_spill] sm:$0xff]  ;;  %v5348_v40 = vld [vmem:[#allocation11_spill] sm:$0xff]  ;;  %v5374_v42 = vand.u32 4294901760, %v5351_v8  ;;  %v5375_v43 = vand.u32 4294901760, %v5353_v2  ;;  %v5378_v38 = vand.u32 4294901760, %v5358_v61 }
  0x94   : > { %3363 = vmatprep.subr.bf16.mxu1 %v3362_v41  ;;  %3429 = vmatpush3.bf16.msra.mxu0 %v3428_v59  ;;  %v5349_v41 = vld [vmem:[#allocation32_spill] sm:$0xff]  ;;  %v5352_v59 = vld [vmem:[#allocation13_spill] sm:$0xff]  ;;  %v5383_v54 = vand.u32 4294901760, %v4467_v60 }
  0x95   : > { %3431 = vmatprep.subr.bf16.mxu0 %v3430_v16  ;;  %v5355_v16 = vld [vmem:[#allocation16_spill] sm:$0xff] }
  0x96   : > { %813 = vmatmul.mubr.f32.gmra.mrb[22].mxu1 %v5329_v63 }
  0x97   : > { %3365 = vmatpush3.bf16.msra.mxu1 %v3364_v50  ;;  %818 = vmatprep.mubr.f32.mxu1 %v4347_v35  ;;  %v5356_v50 = vld [vmem:[#allocation36_spill] sm:$0xff] }
  0x98   : > { %3367 = vmatprep.subr.bf16.mxu1 %v3366_v52  ;;  %3433 = vmatpush3.bf16.msra.mxu0 %v3432_v37  ;;  %v5357_v52 = vld [vmem:[#allocation17_spill] sm:$0xff]  ;;  %v5360_v37 = vld [vmem:[#allocation38_spill] sm:$0xff]  ;;  %v5377_v32 = vand.u32 4294901760, %v5356_v50 }
  0x99   : > { %3435 = vmatprep.subr.bf16.mxu0 %v3434_v9  ;;  %v5363_v9 = vld [vmem:[#allocation20_spill] sm:$0xff] }
  0x9a   : > { %820 = vmatmul.mubr.f32.gmra.mrb[24].mxu1 %v4349_v3 }
  0x9b   : > { %3369 = vmatpush3.bf16.msra.mxu1 %v3368_v62  ;;  %825 = vmatprep.mubr.f32.mxu1 %v4382_v28  ;;  %v5364_v62 = vld [vmem:[#allocation40_spill] sm:$0xff] }
  0x9c   : > { %3371 = vmatprep.subr.bf16.mxu1 %v3370_v4  ;;  %3437 = vmatpush3.bf16.msra.mxu0 %v3436_v25  ;;  %v5365_v4 = vld [vmem:[#allocation21_spill] sm:$0xff]  ;;  %v5368_v25 = vld [vmem:[#allocation24_spill] sm:$0xff] }
  0x9d   : > { %3439 = vmatprep.subr.bf16.mxu0 %v3438_v22  ;;  %v5371_v22 = vand.u32 4294901760, %v5345_v45 }
  0x9e   : > { %827 = vmatmul.mubr.f32.gmra.mrb[26].mxu1 %v4387_v44 }
  0x9f   : > { %3373 = vmatpush3.bf16.msra.mxu1 %v3372_v12  ;;  %832 = vmatprep.mubr.f32.mxu1 %v4423_v24  ;;  %v5372_v12 = vand.u32 4294901760, %v5347_v34 }
  0xa0   : > { %3375 = vmatprep.subr.bf16.mxu1 %v3374_v13  ;;  %3441 = vmatpush3.bf16.msra.mxu0 %v3440_v14  ;;  %v5373_v13 = vand.u32 4294901760, %v5349_v41  ;;  %v5376_v14 = vand.u32 4294901760, %v4318_v15 }
  0xa1   : > { %3443 = vmatprep.subr.bf16.mxu0 %v3442_v53  ;;  %v5379_v53 = vand.u32 4294901760, %v5360_v37 }
  0xa2   : > { %834 = vmatmul.mubr.f32.gmra.mrb[28].mxu1 %v4426_v48 }
  0xa3   : > { %3377 = vmatpush3.bf16.msra.mxu1 %v3376_v49  ;;  %839 = vmatprep.mubr.f32.mxu1 %v4458_v47  ;;  %v5381_v49 = vand.u32 4294901760, %v5364_v62 }
  0xa4   : > { %3379 = vmatprep.subr.bf16.mxu1 %v3378_v51  ;;  %3445 = vmatpush3.bf16.msra.mxu0 %v3444_v55  ;;  %v5382_v51 = vand.u32 4294901760, %v4435_v29  ;;  %v5384_v55 = vand.u32 4294901760, %v4473_v36 }
  0xa6   : > { %841 = vmatmul.mubr.f32.gmra.mrb[30].mxu1 %v4464_v11 }
  0xa7   : > { %3381 = vmatpush3.bf16.msra.mxu1 %v3380_v5  ;;  %976 = vmatprep.mubr.f32.mxu1 %v5341_v57  ;;  %v1624_v5 = vld [vmem:[%s5149_s4 + $0x10] sm:$0xff] }
  0xa8   : > { %3383 = vmatprep.subr.bf16.mxu1 %v5342_v58  ;;  %1395 = vmatmul.mubr.f32.vlgmr.msra.gmra.mrb[0].mxu0 %v4163_v7 }
  0xa9   : > { %1400 = vmatprep.mubr.f32.mxu0 %v4201_v1 }
  0xaa   : > { %979 = vmatmul.mubr.f32.vlgmr.msra.gmra.mrb[32].mxu1 %v5343_v21  ;;  %v1657_v21 = vand.u32 4294901760, %v1624_v5 }
  0xab   : > { %3385 = vmatpush3.bf16.msra.mxu1 %v5344_v31  ;;  %985 = vmatprep.mubr.f32.mxu1 %v5345_v45 }
  0xac   : > { %3387 = vmatprep.subr.bf16.mxu1 %v5346_v33  ;;  %1402 = vmatmul.mubr.f32.gmra.mrb[2].mxu0 %v5318_v56 }
  0xad   : > { %1407 = vmatprep.mubr.f32.mxu0 %v5321_v39 }
  0xae   : > { %988 = vmatmul.mubr.f32.gmra.mrb[34].mxu1 %v5347_v34 }
  0xaf   : > { %3389 = vmatpush3.bf16.msra.mxu1 %v5348_v40  ;;  %994 = vmatprep.mubr.f32.mxu1 %v5349_v41  ;;  %v4738_v41 = vsub.f32 %v1624_v5, %v1657_v21 }
  0xb0   : > { %3391 = vmatprep.subr.bf16.mxu1 %v5350_v46  ;;  %1409 = vmatmul.mubr.f32.gmra.mrb[4].mxu0 %v5324_v30 }
  0xb1   : > { %1414 = vmatprep.mubr.f32.mxu0 %v4306_v0 }
  0xb2   : > { %997 = vmatmul.mubr.f32.gmra.mrb[36].mxu1 %v5351_v8  ;;  %v3798_v8 = vmov 0.0  }
  0xb3   : > { %3393 = vmatpush3.bf16.msra.mxu1 %v5352_v59  ;;  %1003 = vmatprep.mubr.f32.mxu1 %v5353_v2 }
  0xb4   : > { %3395 = vmatprep.subr.bf16.mxu1 %v5354_v26  ;;  %1416 = vmatmul.mubr.f32.gmra.mrb[6].mxu0 %v5329_v63 }
  0xb5   : > { %1421 = vmatprep.mubr.f32.mxu0 %v4347_v35 }
  0xb6   : > { %1006 = vmatmul.mubr.f32.gmra.mrb[38].mxu1 %v4318_v15  ;;  %v5380_v15 = vand.u32 4294901760, %v5362_v23 }
  0xb7   : > { %3397 = vmatpush3.bf16.msra.mxu1 %v5355_v16  ;;  %1012 = vmatprep.mubr.f32.mxu1 %v5356_v50 }
  0xb8   : > { %3399 = vmatprep.subr.bf16.mxu1 %v5357_v52  ;;  %1423 = vmatmul.mubr.f32.gmra.mrb[8].mxu0 %v4349_v3 }
  0xb9   : > { %1428 = vmatprep.mubr.f32.mxu0 %v4382_v28 }
  0xba   : > { %1015 = vmatmul.mubr.f32.gmra.mrb[40].mxu1 %v5358_v61 }
  0xbb   : > { %3401 = vmatpush3.bf16.msra.mxu1 %v5359_v17  ;;  %1021 = vmatprep.mubr.f32.mxu1 %v5360_v37 }
  0xbc   : > { %3403 = vmatprep.subr.bf16.mxu1 %v5361_v18  ;;  %1430 = vmatmul.mubr.f32.gmra.mrb[10].mxu0 %v4387_v44 }
  0xbd   : > { %1435 = vmatprep.mubr.f32.mxu0 %v4423_v24 }
  0xbe   : > { %1024 = vmatmul.mubr.f32.gmra.mrb[42].mxu1 %v5362_v23 }
  0xbf   : > { %3405 = vmatpush3.bf16.msra.mxu1 %v5363_v9  ;;  %1030 = vmatprep.mubr.f32.mxu1 %v5364_v62 }
  0xc0   : > { %3407 = vmatprep.subr.bf16.mxu1 %v5365_v4  ;;  %1437 = vmatmul.mubr.f32.gmra.mrb[12].mxu0 %v4426_v48 }
  0xc1   : > { %1442 = vmatprep.mubr.f32.mxu0 %v4458_v47 }
  0xc2   : > { %1033 = vmatmul.mubr.f32.gmra.mrb[44].mxu1 %v4435_v29 }
  0xc3   : > { %3409 = vmatpush3.bf16.msra.mxu1 %v5366_v6  ;;  %1039 = vmatprep.mubr.f32.mxu1 %v4467_v60 }
  0xc4   : > { %3411 = vmatprep.subr.bf16.mxu1 %v5367_v10  ;;  %1444 = vmatmul.mubr.f32.gmra.mrb[14].mxu0 %v4464_v11 }
  0xc5   : > { %1719 = vmatprep.mubr.f32.mxu0 %v3798_v8 }
  0xc6   : > { %1042 = vmatmul.mubr.f32.gmra.mrb[46].mxu1 %v4473_v36 }
  0xc7   : > { %3413 = vmatpush3.bf16.msra.mxu1 %v5368_v25  ;;  %1146 = vmatprep.mubr.f32.mxu1 %v5369_v27 }
  0xc8   : > { %3447 = vmatprep.subr.bf16.mxu1 %v5342_v58 }
  0xca   : > { %1150 = vmatmul.mubr.f32.vlgmr.msra.gmra.mrb[48].mxu1 %v5370_v20 }
  0xcb   : > { %3449 = vmatpush3.bf16.msra.mxu1 %v5344_v31  ;;  %1157 = vmatprep.mubr.f32.mxu1 %v5371_v22 }
  0xcc   : > { %3451 = vmatprep.subr.bf16.mxu1 %v5346_v33 }
  0xce   : > { %1161 = vmatmul.mubr.f32.gmra.mrb[50].mxu1 %v5372_v12 }
  0xcf   : > { %3453 = vmatpush3.bf16.msra.mxu1 %v5348_v40  ;;  %1168 = vmatprep.mubr.f32.mxu1 %v5373_v13  ;;  %v1828_v13 = vand.u32 4294901760, %v4738_v41 }
  0xd0   : > { %3455 = vmatprep.subr.bf16.mxu1 %v5350_v46 }
  0xd2   : > { %1172 = vmatmul.mubr.f32.gmra.mrb[52].mxu1 %v5374_v42 }
  0xd3   : > { %3457 = vmatpush3.bf16.msra.mxu1 %v5352_v59  ;;  %1179 = vmatprep.mubr.f32.mxu1 %v5375_v43 }
  0xd4   : > { %3459 = vmatprep.subr.bf16.mxu1 %v5354_v26 }
  0xd6   : > { %1183 = vmatmul.mubr.f32.gmra.mrb[54].mxu1 %v5376_v14 }
  0xd7   : > { %3461 = vmatpush3.bf16.msra.mxu1 %v5355_v16  ;;  %1190 = vmatprep.mubr.f32.mxu1 %v5377_v32 }
  0xd8   : > { %3463 = vmatprep.subr.bf16.mxu1 %v5357_v52 }
  0xda   : > { %1194 = vmatmul.mubr.f32.gmra.mrb[56].mxu1 %v5378_v38  ;;  %v1829_v38 = vsub.f32 %v4738_v41, %v1828_v13 }
  0xdb   : > { %3465 = vmatpush3.bf16.msra.mxu1 %v5359_v17  ;;  %1201 = vmatprep.mubr.f32.mxu1 %v5379_v53 }
  0xdc   : > { %3467 = vmatprep.subr.bf16.mxu1 %v5361_v18 }
  0xde   : > { %1205 = vmatmul.mubr.f32.gmra.mrb[58].mxu1 %v5380_v15 }
  0xdf   : > { %3469 = vmatpush3.bf16.msra.mxu1 %v5363_v9  ;;  %1212 = vmatprep.mubr.f32.mxu1 %v5381_v49 }
  0xe0   : > { %3471 = vmatprep.subr.bf16.mxu1 %v5365_v4 }
  0xe2   : > { %1216 = vmatmul.mubr.f32.gmra.mrb[60].mxu1 %v5382_v51 }
  0xe3   : > { %3473 = vmatpush3.bf16.msra.mxu1 %v5366_v6  ;;  %1223 = vmatprep.mubr.f32.mxu1 %v5383_v54 }
  0xe4   : > { %3475 = vmatprep.subr.bf16.mxu1 %v5367_v10 }
  0xe6   : > { %1227 = vmatmul.mubr.f32.gmra.mrb[62].mxu1 %v5384_v55 }
  0xe7   : > { %3477 = vmatpush3.bf16.msra.mxu1 %v5368_v25  ;;  %1546 = vmatprep.mubr.f32.mxu1 %v4160_v19 }
  0xea   : > { %1548 = vmatmul.mubr.f32.vlgmr.msra.gmra.mrb[64].mxu1 %v4163_v7 }
  0xeb   : > { %1553 = vmatprep.mubr.f32.mxu1 %v4201_v1 }
  0xee   : > { %1555 = vmatmul.mubr.f32.gmra.mrb[66].mxu1 %v5318_v56 }
  0xef   : > { %1560 = vmatprep.mubr.f32.mxu1 %v5321_v39 }
  0xf2   : > { %1562 = vmatmul.mubr.f32.gmra.mrb[68].mxu1 %v5324_v30 }
  0xf3   : > { %1567 = vmatprep.mubr.f32.mxu1 %v4306_v0 }
  0xf6   : > { %1569 = vmatmul.mubr.f32.gmra.mrb[70].mxu1 %v5329_v63  ;;  %v1622_v63 = vld [vmem:[%s5149_s4] sm:$0xff] }
  0xf7   : > { %1574 = vmatprep.mubr.f32.mxu1 %v4347_v35  ;;  %v1653_v58 = vand.u32 4294901760, %v1622_v63 }
  0xf9   : > { %v4732_v45 = vpack.c.bf16 %v1657_v21, %v1653_v58  ;;  %v4736_v40 = vsub.f32 %v1622_v63, %v1653_v58 }
  0xfa   : > { %1576 = vmatmul.mubr.f32.gmra.mrb[72].mxu1 %v4349_v3 }
  0xfb   : > { %1581 = vmatprep.mubr.f32.mxu1 %v4382_v28  ;;  %v1816_v22 = vand.u32 4294901760, %v4736_v40 }
  0xfd   : > { %v1817_v32 = vsub.f32 %v4736_v40, %v1816_v22 }
  0xfe   : > { %1583 = vmatmul.mubr.f32.gmra.mrb[74].mxu1 %v4387_v44 }
  0xff   : > { %1588 = vmatprep.mubr.f32.mxu1 %v4423_v24  ;;  %v1625_v24 = vld [vmem:[%s5149_s4 + $0x18] sm:$0xff]  ;;  %v1818_v54 = vand.u32 4294901760, %v1817_v32 }
 0x100   : > { %v1655_v30 = vand.u32 4294901760, %v1625_v24 }
 0x102   : > { %1590 = vmatmul.mubr.f32.gmra.mrb[76].mxu1 %v4426_v48  ;;  %v1623_v48 = vld [vmem:[%s5149_s4 + $0x8] sm:$0xff]  ;;  %v4743_v62 = vsub.f32 %v1625_v24, %v1655_v30 }
 0x103   : > { %1595 = vmatprep.mubr.f32.mxu1 %v4458_v47  ;;  %v1651_v47 = vand.u32 4294901760, %v1623_v48 }
 0x104   : > { %v1822_v20 = vand.u32 4294901760, %v4743_v62 }
 0x105   : > { %v4730_v31 = vpack.c.bf16 %v1655_v30, %v1651_v47  ;;  %v4741_v9 = vsub.f32 %v1623_v48, %v1651_v47 }
 0x106   : > { %1597 = vmatmul.mubr.f32.gmra.mrb[78].mxu1 %v4464_v11  ;;  %v1823_v14 = vsub.f32 %v4743_v62, %v1822_v20 }
 0x107   : > { %3479 = vmatprep.subr.bf16.mxu0 %v4730_v31  ;;  %v1810_v27 = vand.u32 4294901760, %v4741_v9 }
 0x108   : > { %3481 = vmatpush1.bf16.msra.mxu0 %v4732_v45  ;;  %v1824_v51 = vand.u32 4294901760, %v1823_v14 }
 0x109   : > { %v1811_v43 = vsub.f32 %v4741_v9, %v1810_v27 }
 0x10b   : > { %v1812_v49 = vand.u32 4294901760, %v1811_v43 }
 0x133   : > { %v2982_v19 = vpop.f32.mrb[0].mxu1 }
 0x134   : > { %v2983_v7 = vpop.f32.mrb[1].mxu1 }
 0x135   : > { %v2984_v1 = vadd.f32 %v2983_v7, %v2982_v19  ;;  %v1830_v19 = vand.u32 4294901760, %v1829_v38 }
 0x137   : > { %v2985_v0 = vpop.f32.mrb[2].mxu1 }
 0x138   : > { %v2986_v36 = vpop.f32.mrb[3].mxu1 }
 0x139   : > { %v2987_v35 = vadd.f32 %v2986_v36, %v2985_v0  ;;  %v4761_v0 = vpack.c.bf16 %v1830_v19, %v1818_v54 }
 0x13b   : > { %v2988_v29 = vpop.f32.mrb[4].mxu1 }
 0x13c   : > { %v2989_v3 = vpop.f32.mrb[5].mxu1 }
 0x13d   : > { %v2990_v60 = vadd.f32 %v2989_v3, %v2988_v29 }
 0x13f   : > { %v2991_v28 = vpop.f32.mrb[6].mxu1 }
 0x140   : > { %v2992_v56 = vpop.f32.mrb[7].mxu1 }
 0x141   : > { %v2993_v44 = vadd.f32 %v2992_v56, %v2991_v28 }
 0x146   : > { %v2994_v39 = vpop.f32.mrb[8].mxu1 }
 0x147   : > { %v2995_v11 = vpop.f32.mrb[9].mxu1 }
 0x148   : > { %v2996_v57 = vadd.f32 %v2995_v11, %v2994_v39 }
 0x14b   : > { %v2997_v33 = vpop.f32.mrb[10].mxu1 }
 0x14c   : > { %v2998_v34 = vpop.f32.mrb[11].mxu1 }
 0x14d   : > { %v2999_v46 = vadd.f32 %v2998_v34, %v2997_v33 }
 0x153   : > { %v3000_v59 = vpop.f32.mrb[12].mxu1 }
 0x154   : > { %v3001_v2 = vpop.f32.mrb[13].mxu1 }
 0x155   : > { %v3002_v26 = vadd.f32 %v3001_v2, %v3000_v59 }
 0x159   : > { %v3003_v16 = vpop.f32.mrb[14].mxu1 }
 0x15a   : > { %v3004_v50 = vpop.f32.mrb[15].mxu1 }
 0x15b   : > { %v3005_v52 = vadd.f32 %v3004_v50, %v3003_v16 }
 0x15d   : > { %v3038_v61 = vpop.f32.mrb[16].mxu1 }
 0x15e   : > { %v3039_v17 = vpop.f32.mrb[17].mxu1 }
 0x15f   : > { %v3040_v37 = vadd.f32 %v3039_v17, %v3038_v61 }
 0x161   : > { %v794_v18 = vadd.f32 %v3040_v37, %v2984_v1  ;;  %v3041_v23 = vpop.f32.mrb[18].mxu1  ;;  %v3482_v1 = vpack.c.bf16 %v1824_v51, %v1812_v49 }
 0x162   : > { %v3042_v4 = vpop.f32.mrb[19].mxu1 }
 0x163   : > { %v3043_v6 = vadd.f32 %v3042_v4, %v3041_v23  ;;  %3483 = vmatprep.subr.bf16.mxu0 %v3482_v1 }
 0x165   : > { %v801_v10 = vadd.f32 %v3043_v6, %v2987_v35  ;;  %v3044_v25 = vpop.f32.mrb[20].mxu1 }
 0x166   : > { %v3045_v12 = vpop.f32.mrb[21].mxu1 }
 0x167   : > { %v3046_v42 = vadd.f32 %v3045_v12, %v3044_v25 }
 0x169   : > { %v808_v53 = vadd.f32 %v3046_v42, %v2990_v60  ;;  %v3047_v15 = vpop.f32.mrb[22].mxu1 }
 0x16a   : > { %v3048_v55 = vpop.f32.mrb[23].mxu1 }
 0x16b   : > { %v3049_v7 = vadd.f32 %v3048_v55, %v3047_v15 }
 0x16d   : > { %v815_v36 = vadd.f32 %v3049_v7, %v2993_v44  ;;  %v3050_v35 = vpop.f32.mrb[24].mxu1 }
 0x16e   : > { %v3051_v29 = vpop.f32.mrb[25].mxu1 }
 0x16f   : > { %v3052_v3 = vadd.f32 %v3051_v29, %v3050_v35 }
 0x171   : > { %v822_v28 = vadd.f32 %v3052_v3, %v2996_v57  ;;  %v3053_v56 = vpop.f32.mrb[26].mxu1  ;;  %v3486_v57 = vpack.c.bf16 %v4743_v62, %v4741_v9  ;;  %v3639_v9 = vld [vmem:[%s5150_s5 + $0x20] ss:$8 sps:$4 sm:$0xff]   ;;  %v3644_v62 = vld [vmem:[%s5150_s5 + $0x34] ss:$8 sps:$4 sm:$0xff]  }
 0x172   : > { %v3054_v39 = vpop.f32.mrb[27].mxu1 }
 0x173   : > { %v3055_v48 = vadd.f32 %v3054_v39, %v3053_v56 }
 0x175   : > { %v829_v60 = vadd.f32 %v3055_v48, %v2999_v46  ;;  %v3056_v24 = vpop.f32.mrb[28].mxu1  ;;  %v3488_v46 = vpack.c.bf16 %v4738_v41, %v4736_v40  ;;  %v3665_v40 = vld [vmem:[%s5150_s5 + $0xa4] ss:$8 sps:$4 sm:$0xff]   ;;  %v3663_v41 = vld [vmem:[%s5150_s5 + $0xa0] ss:$8 sps:$4 sm:$0xff]  }
 0x176   : > { %v3057_v11 = vpop.f32.mrb[29].mxu1 }
 0x177   : > { %v3058_v47 = vadd.f32 %v3057_v11, %v3056_v24 }
 0x179   : > { %v836_v30 = vadd.f32 %v3058_v47, %v3002_v26  ;;  %v3059_v63 = vpop.f32.mrb[30].mxu1 }
 0x17a   : > { %v3060_v5 = vpop.f32.mrb[31].mxu1 }
 0x17b   : > { %v3061_v58 = vadd.f32 %v3060_v5, %v3059_v63  ;;  %v3206_v21 = vpop.f32.mrb[0].mxu0 }
 0x17c   : > { %v3207_v33 = vpop.f32.mrb[1].mxu0 }
 0x17d   : > { %v843_v34 = vadd.f32 %v3061_v58, %v3005_v52  ;;  %v3094_v44 = vpop.f32.mrb[32].mxu1  ;;  %v3208_v59 = vadd.f32 %v3207_v33, %v3206_v21 }
 0x17e   : > { %v3095_v2 = vpop.f32.mrb[33].mxu1 }
 0x17f   : > { %v3096_v16 = vadd.f32 %v3095_v2, %v3094_v44  ;;  %v3209_v50 = vpop.f32.mrb[2].mxu0 }
 0x180   : > { %v3210_v61 = vpop.f32.mrb[3].mxu0 }
 0x181   : > { %v981_v17 = vadd.f32 %v3096_v16, %v794_v18  ;;  %v3097_v26 = vpop.f32.mrb[34].mxu1  ;;  %v3211_v37 = vadd.f32 %v3210_v61, %v3209_v50 }
 0x182   : > { %v3098_v23 = vpop.f32.mrb[35].mxu1 }
 0x183   : > { %v3099_v4 = vadd.f32 %v3098_v23, %v3097_v26  ;;  %v3212_v6 = vpop.f32.mrb[4].mxu0 }
 0x184   : > { %v3213_v25 = vpop.f32.mrb[5].mxu0 }
 0x185   : > { %v990_v52 = vadd.f32 %v3099_v4, %v801_v10  ;;  %v3100_v12 = vpop.f32.mrb[36].mxu1  ;;  %v3214_v42 = vadd.f32 %v3213_v25, %v3212_v6 }
 0x186   : > { %v3101_v43 = vpop.f32.mrb[37].mxu1 }
 0x187   : > { %v3102_v14 = vadd.f32 %v3101_v43, %v3100_v12  ;;  %v3215_v32 = vpop.f32.mrb[6].mxu0 }
 0x188   : > { %v3216_v38 = vpop.f32.mrb[7].mxu0 }
 0x189   : > { %v999_v15 = vadd.f32 %v3102_v14, %v808_v53  ;;  %v3103_v49 = vpop.f32.mrb[38].mxu1  ;;  %v3217_v51 = vadd.f32 %v3216_v38, %v3215_v32 }
 0x18a   : > { %v3104_v54 = vpop.f32.mrb[39].mxu1 }
 0x18b   : > { %v3105_v55 = vadd.f32 %v3104_v54, %v3103_v49  ;;  %v3218_v19 = vpop.f32.mrb[8].mxu0 }
 0x18c   : > { %v3219_v18 = vpop.f32.mrb[9].mxu0 }
 0x18d   : > { %v1008_v7 = vadd.f32 %v3105_v55, %v815_v36  ;;  %v3106_v1 = vpop.f32.mrb[40].mxu1  ;;  %v3220_v35 = vadd.f32 %v3219_v18, %v3218_v19 }
 0x18e   : > { %v3107_v29 = vpop.f32.mrb[41].mxu1 }
 0x18f   : > { %v3108_v3 = vadd.f32 %v3107_v29, %v3106_v1  ;;  %v3221_v56 = vpop.f32.mrb[10].mxu0 }
 0x190   : > { %v3222_v10 = vpop.f32.mrb[11].mxu0 }
 0x191   : > { %v1017_v39 = vadd.f32 %v3108_v3, %v822_v28  ;;  %v3109_v48 = vpop.f32.mrb[42].mxu1  ;;  %v3223_v24 = vadd.f32 %v3222_v10, %v3221_v56 }
 0x192   : > { %v3110_v11 = vpop.f32.mrb[43].mxu1 }
 0x193   : > { %v3111_v47 = vadd.f32 %v3110_v11, %v3109_v48  ;;  %v3224_v63 = vpop.f32.mrb[12].mxu0 }
 0x194   : > { %v3225_v53 = vpop.f32.mrb[13].mxu0 }
 0x195   : > { %v1026_v5 = vadd.f32 %v3111_v47, %v829_v60  ;;  %v3112_v58 = vpop.f32.mrb[44].mxu1  ;;  %v3226_v21 = vadd.f32 %v3225_v53, %v3224_v63 }
 0x196   : > { %v3113_v33 = vpop.f32.mrb[45].mxu1 }
 0x197   : > { %v3114_v44 = vadd.f32 %v3113_v33, %v3112_v58  ;;  %v3227_v2 = vpop.f32.mrb[14].mxu0 }
 0x198   : > { %v3228_v36 = vpop.f32.mrb[15].mxu0 }
 0x199   : > { %v1035_v16 = vadd.f32 %v3114_v44, %v836_v30  ;;  %v3115_v50 = vpop.f32.mrb[46].mxu1  ;;  %v3229_v61 = vadd.f32 %v3228_v36, %v3227_v2 }
 0x19a   : > { %v3116_v26 = vpop.f32.mrb[47].mxu1 }
 0x19b   : > { %v3117_v23 = vadd.f32 %v3116_v26, %v3115_v50 }
 0x19d   : > { %v1044_v4 = vadd.f32 %v3117_v23, %v843_v34  ;;  %v3150_v28 = vpop.f32.mrb[48].mxu1 }
 0x19e   : > { %v3151_v6 = vpop.f32.mrb[49].mxu1 }
 0x19f   : > { %v3152_v25 = vadd.f32 %v3151_v6, %v3150_v28 }
 0x1a1   : > { %v1152_v12 = vadd.f32 %v3152_v25, %v981_v17  ;;  %v3153_v43 = vpop.f32.mrb[50].mxu1 }
 0x1a2   : > { %v3154_v14 = vpop.f32.mrb[51].mxu1 }
 0x1a3   : > { %v1397_v32 = vadd.f32 %v3208_v59, %v1152_v12  ;;  %v3155_v60 = vadd.f32 %v3154_v14, %v3153_v43 }
 0x1a5   : > { %v1163_v38 = vadd.f32 %v3155_v60, %v990_v52  ;;  %v3156_v49 = vpop.f32.mrb[52].mxu1 }
 0x1a6   : > { %v3157_v54 = vpop.f32.mrb[53].mxu1 }
 0x1a7   : > { %v1404_v55 = vadd.f32 %v3211_v37, %v1163_v38  ;;  %v3158_v19 = vadd.f32 %v3157_v54, %v3156_v49 }
 0x1a9   : > { %v1174_v18 = vadd.f32 %v3158_v19, %v999_v15  ;;  %v3159_v30 = vpop.f32.mrb[54].mxu1 }
 0x1aa   : > { %v3160_v1 = vpop.f32.mrb[55].mxu1 }
 0x1ab   : > { %v1411_v29 = vadd.f32 %v3214_v42, %v1174_v18  ;;  %v3161_v3 = vadd.f32 %v3160_v1, %v3159_v30 }
 0x1ad   : > { %v1185_v56 = vadd.f32 %v3161_v3, %v1008_v7  ;;  %v3162_v34 = vpop.f32.mrb[56].mxu1 }
 0x1ae   : > { %v3163_v10 = vpop.f32.mrb[57].mxu1 }
 0x1af   : > { %v1418_v48 = vadd.f32 %v3217_v51, %v1185_v56  ;;  %v3164_v11 = vadd.f32 %v3163_v10, %v3162_v34 }
 0x1b1   : > { %v1196_v17 = vadd.f32 %v3164_v11, %v1017_v39  ;;  %v3165_v47 = vpop.f32.mrb[58].mxu1 }
 0x1b2   : > { %v3166_v63 = vpop.f32.mrb[59].mxu1 }
 0x1b3   : > { %v1425_v59 = vadd.f32 %v3220_v35, %v1196_v17  ;;  %v3167_v53 = vadd.f32 %v3166_v63, %v3165_v47 }
 0x1b5   : > { %v1207_v52 = vadd.f32 %v3167_v53, %v1026_v5  ;;  %v3168_v58 = vpop.f32.mrb[60].mxu1 }
 0x1b6   : > { %v3169_v33 = vpop.f32.mrb[61].mxu1 }
 0x1b7   : > { %v4767_v37 = vadd.f32 %v3223_v24, %v1207_v52  ;;  %v3170_v15 = vadd.f32 %v3169_v33, %v3168_v58 }
 0x1b9   : > { %v1218_v44 = vadd.f32 %v3170_v15, %v1035_v16  ;;  %v3171_v2 = vpop.f32.mrb[62].mxu1 }
 0x1ba   : > { %v3172_v42 = vpop.f32.mrb[63].mxu1 }
 0x1bb   : > { %v4769_v36 = vadd.f32 %v3226_v21, %v1218_v44  ;;  %v3173_v7 = vadd.f32 %v3172_v42, %v3171_v2 }
 0x1bd   : > { %v1229_v50 = vadd.f32 %v3173_v7, %v1044_v4  ;;  %v3262_v51 = vpop.f32.mrb[64].mxu1 }
 0x1be   : > { %v3263_v26 = vpop.f32.mrb[65].mxu1 }
 0x1bf   : > { %v4771_v39 = vadd.f32 %v3229_v61, %v1229_v50  ;;  %v3264_v23 = vadd.f32 %v3263_v26, %v3262_v51 }
 0x1c1   : > { %v1550_v35 = vadd.f32 %v3264_v23, %v1397_v32  ;;  %v3265_v5 = vpop.f32.mrb[66].mxu1 }
 0x1c2   : > { %v3266_v28 = vpop.f32.mrb[67].mxu1 }
 0x1c3   : > { %v1628_v24 = vsel %vm1626_vm0, %v1550_v35, 0  ;;  %v3267_v6 = vadd.f32 %v3266_v28, %v3265_v5  ;;  %v1602_v52 = vmul.f32 %v1550_v35, %v1550_v35 }
 0x1c4   : > { %v4774_v25 = vand.u32 4294901760, %v1628_v24 }
 0x1c5   : > { %v1557_v16 = vadd.f32 %v3267_v6, %v1404_v55  ;;  %v3268_v12 = vpop.f32.mrb[68].mxu1 }
 0x1c6   : > { %v4777_v21 = vsub.f32 %v1628_v24, %v4774_v25  ;;  %v3269_v4 = vpop.f32.mrb[69].mxu1 }
 0x1c7   : > { %v1631_v43 = vsel %vm1626_vm0, %v1557_v16, 0  ;;  %v3270_v61 = vadd.f32 %v3269_v4, %v3268_v12 }
 0x1c8   : > { %v1722_v14 = vand.u32 4294901760, %v4777_v21  ;;  %v4781_v60 = vand.u32 4294901760, %v1631_v43 }
 0x1c9   : > { %v1564_v32 = vadd.f32 %v3270_v61, %v1411_v29  ;;  %v3271_v38 = vpop.f32.mrb[70].mxu1 }
 0x1ca   : > { %v1723_v49 = vsub.f32 %v4777_v21, %v1722_v14  ;;  %v4787_v54 = vsub.f32 %v1631_v43, %v4781_v60  ;;  %v3272_v55 = vpop.f32.mrb[71].mxu1 }
 0x1cb   : > { %v1634_v19 = vsel %vm1626_vm0, %v1564_v32, 0  ;;  %v3273_v18 = vadd.f32 %v3272_v55, %v3271_v38  ;;  %v1604_v12 = vmul.f32 %v1564_v32, %v1564_v32 }
 0x1cc   : > { %v1724_v30 = vand.u32 4294901760, %v1723_v49  ;;  %v4790_v1 = vand.u32 4294901760, %v1634_v19  ;;  %v1733_v3 = vand.u32 4294901760, %v4787_v54 }
 0x1cd   : > { %v1571_v56 = vadd.f32 %v3273_v18, %v1418_v48  ;;  %v3274_v34 = vpop.f32.mrb[72].mxu1 }
 0x1ce   : > { %v4794_v29 = vsub.f32 %v1634_v19, %v4790_v1  ;;  %v3275_v10 = vpop.f32.mrb[73].mxu1  ;;  %1725 = vmatmul.mubr.f32.vlgmr.msra.gmra.mrb[16].mxu0 %v1724_v30  ;;  %v1734_v11 = vsub.f32 %v4787_v54, %v1733_v3 }
 0x1cf   : > { %v1637_v17 = vsel %vm1626_vm0, %v1571_v56, 0  ;;  %v3276_v47 = vadd.f32 %v3275_v10, %v3274_v34  ;;  %1730 = vmatprep.mubr.f32.mxu0 %v3798_v8  ;;  %3485 = vmatpush1.bf16.msra.mxu0 %v4761_v0  ;;  %v1605_v55 = vmul.f32 %v1571_v56, %v1571_v56 }
 0x1d0   : > { %v4802_v63 = vand.u32 4294901760, %v1637_v17  ;;  %v1735_v48 = vand.u32 4294901760, %v1734_v11  ;;  %v1744_v53 = vand.u32 4294901760, %v4794_v29  ;;  %3487 = vmatprep.subr.bf16.mxu0 %v3486_v57  ;;  %v1603_v57 = vmul.f32 %v1557_v16, %v1557_v16 }
 0x1d1   : > { %v1578_v58 = vadd.f32 %v3276_v47, %v1425_v59  ;;  %v3277_v33 = vpop.f32.mrb[74].mxu1 }
 0x1d2   : > { %v4809_v15 = vsub.f32 %v1637_v17, %v4802_v63  ;;  %v3278_v44 = vpop.f32.mrb[75].mxu1  ;;  %1736 = vmatmul.mubr.f32.gmra.mrb[18].mxu0 %v1735_v48  ;;  %v1745_v0 = vsub.f32 %v4794_v29, %v1744_v53 }
 0x1d3   : > { %v1606_v2 = vsub.f32 %v1578_v58, %v1602_v52  ;;  %v3279_v42 = vadd.f32 %v3278_v44, %v3277_v33  ;;  %1741 = vmatprep.mubr.f32.mxu0 %v3798_v8 }
 0x1d4   : > { %v1746_v7 = vand.u32 4294901760, %v1745_v0  ;;  %v1755_v50 = vand.u32 4294901760, %v4809_v15 }
 0x1d5   : > { %v1610_v51 = vmax.f32 %v1606_v2, 0.0  ;;  %v1585_v59 = vadd.f32 %v3279_v42, %v4767_v37  ;;  %v3280_v26 = vpop.f32.mrb[76].mxu1 }
 0x1d6   : > { %v3281_v23 = vpop.f32.mrb[77].mxu1  ;;  %1747 = vmatmul.mubr.f32.gmra.mrb[20].mxu0 %v1746_v7  ;;  %v1756_v35 = vsub.f32 %v4809_v15, %v1755_v50 }
 0x1d7   : > { %v1614_v5 = vadd.f32 1e-05, %v1610_v51  ;;  %v1607_v28 = vsub.f32 %v1585_v59, %v1603_v57  ;;  %v3282_v24 = vadd.f32 %v3281_v23, %v3280_v26  ;;  %1752 = vmatprep.mubr.f32.mxu0 %v3798_v8 }
 0x1d8   : > { %v1757_v6 = vand.u32 4294901760, %v1756_v35 }
 0x1d9   : > { %3681 = vrsqrt.f32 %v1614_v5  ;;  %v1611_v4 = vmax.f32 %v1607_v28, 0.0  ;;  %v1592_v16 = vadd.f32 %v3282_v24, %v4769_v36  ;;  %v3283_v43 = vpop.f32.mrb[78].mxu1 }
 0x1da   : > { %v3284_v37 = vpop.f32.mrb[79].mxu1  ;;  %1758 = vmatmul.mubr.f32.gmra.mrb[22].mxu0 %v1757_v6 }
 0x1db   : > { %v1615_v61 = vadd.f32 1e-05, %v1611_v4  ;;  %v1608_v38 = vsub.f32 %v1592_v16, %v1604_v12  ;;  %v3285_v49 = vadd.f32 %v3284_v37, %v3283_v43  ;;  %1763 = vmatprep.mubr.f32.mxu0 %v3798_v8  ;;  %v3635_v43 = vld [vmem:[%s5150_s5 + $0x4] ss:$8 sps:$4 sm:$0xff]   ;;  %v3638_v37 = vld [vmem:[%s5150_s5 + $0x14] ss:$8 sps:$4 sm:$0xff]  }
 0x1dc   : > { %2749 = vmatprep.subr.bf16.mxu1 %v3635_v43 }
 0x1dd   : > { %3683 = vrsqrt.f32 %v1615_v61  ;;  %v1612_v19 = vmax.f32 %v1608_v38, 0.0  ;;  %v1599_v18 = vadd.f32 %v3285_v49, %v4771_v39  ;;  %v3494_v61 = vpack.c.bf16 %v1822_v20, %v1810_v27  ;;  %v3636_v38 = vld [vmem:[%s5150_s5 + $0x10] ss:$8 sps:$4 sm:$0xff]   ;;  %v3641_v49 = vld [vmem:[%s5150_s5 + $0x24] ss:$8 sps:$4 sm:$0xff]  }
 0x1de   : > { %v3642_v27 = vld [vmem:[%s5150_s5 + $0x30] ss:$8 sps:$4 sm:$0xff]   ;;  %v3647_v20 = vld [vmem:[%s5150_s5 + $0x44] ss:$8 sps:$4 sm:$0xff]  }
 0x1df   : > { %v1616_v30 = vadd.f32 1e-05, %v1612_v19  ;;  %v1609_v34 = vsub.f32 %v1599_v18, %v1605_v55  ;;  %v3645_v55 = vld [vmem:[%s5150_s5 + $0x40] ss:$8 sps:$4 sm:$0xff]   ;;  %v3650_v19 = vld [vmem:[%s5150_s5 + $0x54] ss:$8 sps:$4 sm:$0xff]  }
 0x1e0   : > { %v3648_v18 = vld [vmem:[%s5150_s5 + $0x50] ss:$8 sps:$4 sm:$0xff]  }
 0x1e1   : > { %3685 = vrsqrt.f32 %v1616_v30  ;;  %v1613_v32 = vmax.f32 %v1609_v34, 0.0  ;;  %v3653_v30 = vld [vmem:[%s5150_s5 + $0x64] ss:$8 sps:$4 sm:$0xff]   ;;  %v3651_v34 = vld [vmem:[%s5150_s5 + $0x60] ss:$8 sps:$4 sm:$0xff]  }
 0x1e3   : > { %v3682_v10 = vpop.eup %3681  ;;  %v1617_v11 = vadd.f32 1e-05, %v1613_v32  ;;  %v3656_v32 = vld [vmem:[%s5150_s5 + $0x74] ss:$8 sps:$4 sm:$0xff]  }
 0x1e4   : > { %v1640_v36 = vsel %vm1626_vm0, %v3682_v10, 0  ;;  %v3654_v10 = vld [vmem:[%s5150_s5 + $0x70] ss:$8 sps:$4 sm:$0xff]  }
 0x1e5   : > { %3687 = vrsqrt.f32 %v1617_v11  ;;  %v4825_v17 = vand.u32 4294901760, %v1640_v36  ;;  %v3659_v11 = vld [vmem:[%s5150_s5 + $0x84] ss:$8 sps:$4 sm:$0xff]  }
 0x1e7   : > { %v3684_v47 = vpop.eup %3683  ;;  %v4828_v48 = vsub.f32 %v1640_v36, %v4825_v17  ;;  %v3657_v36 = vld [vmem:[%s5150_s5 + $0x80] ss:$8 sps:$4 sm:$0xff]  }
 0x1e8   : > { %v1643_v56 = vsel %vm1626_vm0, %v3684_v47, 0  ;;  %v3496_v47 = vpack.c.bf16 %v1828_v13, %v1816_v22  ;;  %v3666_v22 = vld [vmem:[%s5150_s5 + $0xb0] ss:$8 sps:$4 sm:$0xff]   ;;  %v3671_v13 = vld [vmem:[%s5150_s5 + $0xc4] ss:$8 sps:$4 sm:$0xff]  }
 0x1e9   : > { %v1766_v52 = vand.u32 4294901760, %v4828_v48  ;;  %v4832_v39 = vand.u32 4294901760, %v1643_v56 }
 0x1eb   : > { %v3686_v58 = vpop.eup %3685  ;;  %v1767_v33 = vsub.f32 %v4828_v48, %v1766_v52  ;;  %v4838_v44 = vsub.f32 %v1643_v56, %v4832_v39 }
 0x1ec   : > { %v1646_v0 = vsel %vm1626_vm0, %v3686_v58, 0 }
 0x1ed   : > { %v1768_v2 = vand.u32 4294901760, %v1767_v33  ;;  %v1777_v42 = vand.u32 4294901760, %v4838_v44  ;;  %v4842_v7 = vand.u32 4294901760, %v1646_v0  ;;  %v2501_v33 = vld [vmem:[%s5146_s1] sm:$0x3] }
 0x1ef   : > { %v3688_v57 = vpop.eup %3687  ;;  %1769 = vmatmul.mubr.f32.gmra.mrb[24].mxu0 %v1768_v2  ;;  %v1778_v51 = vsub.f32 %v4838_v44, %v1777_v42  ;;  %v4848_v59 = vsub.f32 %v1646_v0, %v4842_v7  ;;  %v3689_v0 = vld [vmem:[%s3952_s15] sm:$0xff] }
 0x1f0   : > { %1774 = vmatprep.mubr.f32.mxu0 %v3798_v8  ;;  %v1649_v26 = vsel %vm1626_vm0, %v3688_v57, 0 }
 0x1f1   : > { %v1779_v23 = vand.u32 4294901760, %v1778_v51  ;;  %v1788_v35 = vand.u32 4294901760, %v4848_v59  ;;  %v4853_v5 = vand.u32 4294901760, %v1649_v26 }
 0x1f3   : > { %1780 = vmatmul.mubr.f32.gmra.mrb[26].mxu0 %v1779_v23  ;;  %v1789_v28 = vsub.f32 %v4848_v59, %v1788_v35  ;;  %v4859_v24 = vsub.f32 %v1649_v26, %v4853_v5  ;;  %v2521_v23 = vld [vmem:[%s5147_s2] sm:$0x3] }
 0x1f4   : > { %1785 = vmatprep.mubr.f32.mxu0 %v3798_v8 }
 0x1f5   : > { %v1790_v6 = vand.u32 4294901760, %v1789_v28  ;;  %v1799_v12 = vand.u32 4294901760, %v4859_v24  ;;  %v3691_v28 = vld [vmem:[%s3952_s15 + $0x10] sm:$0xff] }
 0x1f7   : > { %1791 = vmatmul.mubr.f32.gmra.mrb[28].mxu0 %v1790_v6  ;;  %v1800_v4 = vsub.f32 %v4859_v24, %v1799_v12  ;;  %v3692_v6 = vld [vmem:[%s3952_s15 + $0x18] sm:$0xff] }
 0x1f8   : > { %1796 = vmatprep.mubr.f32.mxu0 %v3798_v8 }
 0x1f9   : > { %v1801_v16 = vand.u32 4294901760, %v1800_v4 }
 0x1fb   : > { %1802 = vmatmul.mubr.f32.gmra.mrb[30].mxu0 %v1801_v16 }
 0x1fc   : > { %1892 = vmatprep.mubr.f32.mxu0 %v3798_v8 }
 0x1ff   : > { %1894 = vmatmul.mubr.f32.vlgmr.msra.gmra.mrb[16].mxu0 %v4774_v25 }
 0x200   : > { %3489 = vmatpush1.bf16.msra.mxu0 %v3488_v46  ;;  %1899 = vmatprep.mubr.f32.mxu0 %v3798_v8  ;;  %v3633_v46 = vld [vmem:[%s5150_s5] ss:$8 sps:$4 sm:$0xff]  }
 0x201   : > { %3491 = vmatprep.subr.bf16.mxu0 %v4730_v31  ;;  %2750 = vmatpush1.bf16.msra.mxu1 %v3633_v46 }
 0x202   : > { %2751 = vmatprep.subr.bf16.mxu1 %v3638_v37 }
 0x203   : > { %1901 = vmatmul.mubr.f32.gmra.mrb[18].mxu0 %v4781_v60 }
 0x204   : > { %1906 = vmatprep.mubr.f32.mxu0 %v3798_v8 }
 0x205   : > { %2752 = vmatpush1.bf16.msra.mxu1 %v3636_v38 }
 0x206   : > { %2753 = vmatprep.subr.bf16.mxu1 %v3641_v49 }
 0x207   : > { %1908 = vmatmul.mubr.f32.gmra.mrb[20].mxu0 %v4790_v1 }
 0x208   : > { %1913 = vmatprep.mubr.f32.mxu0 %v3798_v8 }
 0x209   : > { %2754 = vmatpush1.bf16.msra.mxu1 %v3639_v9  ;;  %v3693_v9 = vld [vmem:[%s3952_s15 + $0x20] sm:$0xff] }
 0x20a   : > { %2755 = vmatprep.subr.bf16.mxu1 %v3644_v62 }
 0x20b   : > { %1915 = vmatmul.mubr.f32.gmra.mrb[22].mxu0 %v4802_v63 }
 0x20c   : > { %1920 = vmatprep.mubr.f32.mxu0 %v3798_v8 }
 0x20d   : > { %2756 = vmatpush1.bf16.msra.mxu1 %v3642_v27 }
 0x20e   : > { %2757 = vmatprep.subr.bf16.mxu1 %v3647_v20  ;;  %v3694_v20 = vld [vmem:[%s3952_s15 + $0x28] sm:$0xff] }
 0x20f   : > { %1922 = vmatmul.mubr.f32.gmra.mrb[24].mxu0 %v4825_v17 }
 0x210   : > { %1927 = vmatprep.mubr.f32.mxu0 %v3798_v8 }
 0x211   : > { %2758 = vmatpush1.bf16.msra.mxu1 %v3645_v55 }
 0x212   : > { %2759 = vmatprep.subr.bf16.mxu1 %v3650_v19 }
 0x213   : > { %1929 = vmatmul.mubr.f32.gmra.mrb[26].mxu0 %v4832_v39 }
 0x214   : > { %1934 = vmatprep.mubr.f32.mxu0 %v3798_v8 }
 0x215   : > { %2760 = vmatpush1.bf16.msra.mxu1 %v3648_v18 }
 0x216   : > { %2761 = vmatprep.subr.bf16.mxu1 %v3653_v30 }
 0x217   : > { %1936 = vmatmul.mubr.f32.gmra.mrb[28].mxu0 %v4842_v7 }
 0x218   : > { %1941 = vmatprep.mubr.f32.mxu0 %v3798_v8 }
 0x219   : > { %2762 = vmatpush1.bf16.msra.mxu1 %v3651_v34 }
 0x21a   : > { %2763 = vmatprep.subr.bf16.mxu1 %v3656_v32 }
 0x21b   : > { %1943 = vmatmul.mubr.f32.gmra.mrb[30].mxu0 %v4853_v5 }
 0x21c   : > { %2021 = vmatprep.mubr.f32.mxu0 %v3798_v8 }
 0x21d   : > { %2764 = vmatpush1.bf16.msra.mxu1 %v3654_v10 }
 0x21e   : > { %2765 = vmatprep.subr.bf16.mxu1 %v3659_v11 }
 0x21f   : > { %2024 = vmatmul.mubr.f32.vlgmr.msra.gmra.mrb[16].mxu0 %v4777_v21  ;;  %v3674_v21 = vld [vmem:[%s5150_s5 + $0xd4] ss:$8 sps:$4 sm:$0xff]  }
 0x220   : > { %3493 = vmatpush1.bf16.msra.mxu0 %v4732_v45  ;;  %2029 = vmatprep.mubr.f32.mxu0 %v3798_v8 }
 0x221   : > { %3495 = vmatprep.subr.bf16.mxu0 %v3494_v61  ;;  %2766 = vmatpush1.bf16.msra.mxu1 %v3657_v36 }
 0x223   : > { %2032 = vmatmul.mubr.f32.gmra.mrb[18].mxu0 %v4787_v54  ;;  %v3675_v54 = vld [vmem:[%s5150_s5 + $0xe0] ss:$8 sps:$4 sm:$0xff]  }
 0x224   : > { %2037 = vmatprep.mubr.f32.mxu0 %v3798_v8 }
 0x227   : > { %2040 = vmatmul.mubr.f32.gmra.mrb[20].mxu0 %v4794_v29 }
 0x228   : > { %2045 = vmatprep.mubr.f32.mxu0 %v3798_v8 }
 0x22b   : > { %2048 = vmatmul.mubr.f32.gmra.mrb[22].mxu0 %v4809_v15 }
 0x22c   : > { %2053 = vmatprep.mubr.f32.mxu0 %v3798_v8 }
 0x22f   : > { %2056 = vmatmul.mubr.f32.gmra.mrb[24].mxu0 %v4828_v48 }
 0x230   : > { %2061 = vmatprep.mubr.f32.mxu0 %v3798_v8 }
 0x233   : > { %2064 = vmatmul.mubr.f32.gmra.mrb[26].mxu0 %v4838_v44 }
 0x234   : > { %2069 = vmatprep.mubr.f32.mxu0 %v3798_v8 }
 0x237   : > { %2072 = vmatmul.mubr.f32.gmra.mrb[28].mxu0 %v4848_v59 }
 0x238   : > { %2077 = vmatprep.mubr.f32.mxu0 %v3798_v8 }
 0x23b   : > { %2080 = vmatmul.mubr.f32.gmra.mrb[30].mxu0 %v4859_v24 }
 0x23c   : > { %2154 = vmatprep.mubr.f32.mxu0 %v3798_v8 }
 0x23f   : > { %2158 = vmatmul.mubr.f32.vlgmr.msra.gmra.mrb[16].mxu0 %v1722_v14  ;;  %v3672_v14 = vld [vmem:[%s5150_s5 + $0xd0] ss:$8 sps:$4 sm:$0xff]  }
 0x240   : > { %3497 = vmatpush1.bf16.msra.mxu0 %v3496_v47  ;;  %2163 = vmatprep.mubr.f32.mxu0 %v3798_v8 }
 0x241   : > { %3499 = vmatprep.subr.bf16.mxu0 %v4730_v31  ;;  %v3662_v31 = vld [vmem:[%s5150_s5 + $0x94] ss:$8 sps:$4 sm:$0xff]  }
 0x242   : > { %2767 = vmatprep.subr.bf16.mxu1 %v3662_v31  ;;  %v3695_v31 = vld [vmem:[%s3952_s15 + $0x30] sm:$0xff] }
 0x243   : > { %2167 = vmatmul.mubr.f32.gmra.mrb[18].mxu0 %v1733_v3  ;;  %v3678_v3 = vld [vmem:[%s5150_s5 + $0xf0] ss:$8 sps:$4 sm:$0xff]  }
 0x244   : > { %2172 = vmatprep.mubr.f32.mxu0 %v3798_v8 }
 0x247   : > { %2176 = vmatmul.mubr.f32.gmra.mrb[20].mxu0 %v1744_v53 }
 0x248   : > { %2181 = vmatprep.mubr.f32.mxu0 %v3798_v8 }
 0x24b   : > { %2185 = vmatmul.mubr.f32.gmra.mrb[22].mxu0 %v1755_v50  ;;  %v2503_v50 = vlaneseq }
 0x24c   : > { %2190 = vmatprep.mubr.f32.mxu0 %v3798_v8 }
 0x24d   : > { %v2504_v56 = vshrl.u32 %v2503_v50, 7 }
 0x24f   : > { %2194 = vmatmul.mubr.f32.gmra.mrb[24].mxu0 %v1766_v52  ;;  %v5066_v58 = vsub.s32 0, %v2504_v56  ;;  %v5071_v44 = vsub.s32 1, %v2504_v56 }
 0x250   : > { %2199 = vmatprep.mubr.f32.mxu0 %v3798_v8 }
 0x251   : > { %v2506_v59 = vrot.slane %v2501_v33, %v5066_v58  ;;  %v2526_v46 = vrot.slane %v2521_v23, %v5066_v58  ;;  %v2530_v38 = vrot.slane %v2521_v23, %v5071_v44 }
 0x253   : > { %2203 = vmatmul.mubr.f32.gmra.mrb[26].mxu0 %v1777_v42  ;;  %v3690_v42 = vld [vmem:[%s3952_s15 + $0x8] sm:$0xff] }
 0x254   : > { %2208 = vmatprep.mubr.f32.mxu0 %v3798_v8 }
 0x257   : > { %2212 = vmatmul.mubr.f32.gmra.mrb[28].mxu0 %v1788_v35 }
 0x258   : > { %2217 = vmatprep.mubr.f32.mxu0 %v3798_v8 }
 0x25b   : > { %2221 = vmatmul.mubr.f32.gmra.mrb[30].mxu0 %v1799_v12 }
 0x25c   : > { %2303 = vmatprep.mubr.f32.mxu0 %v3798_v8 }
 0x25f   : > { %2305 = vmatmul.mubr.f32.vlgmr.msra.gmra.mrb[16].mxu0 %v4774_v25 }
 0x260   : > { %3501 = vmatpush1.bf16.msra.mxu0 %v4732_v45  ;;  %2310 = vmatprep.mubr.f32.mxu0 %v3798_v8  ;;  %v3660_v45 = vld [vmem:[%s5150_s5 + $0x90] ss:$8 sps:$4 sm:$0xff]  }
 0x261   : > { %2768 = vmatpush1.bf16.msra.mxu1 %v3660_v45 }
 0x262   : > { %2769 = vmatprep.subr.bf16.mxu1 %v3665_v40 }
 0x263   : > { %2312 = vmatmul.mubr.f32.gmra.mrb[18].mxu0 %v4781_v60 }
 0x264   : > { %2317 = vmatprep.mubr.f32.mxu0 %v3798_v8 }
 0x265   : > { %2770 = vmatpush1.bf16.msra.mxu1 %v3663_v41  ;;  %v3696_v41 = vld [vmem:[%s3952_s15 + $0x38] sm:$0xff] }
 0x267   : > { %2319 = vmatmul.mubr.f32.gmra.mrb[20].mxu0 %v4790_v1 }
 0x268   : > { %2324 = vmatprep.mubr.f32.mxu0 %v3798_v8 }
 0x26b   : > { %2326 = vmatmul.mubr.f32.gmra.mrb[22].mxu0 %v4802_v63 }
 0x26c   : > { %2331 = vmatprep.mubr.f32.mxu0 %v3798_v8 }
 0x26f   : > { %2333 = vmatmul.mubr.f32.gmra.mrb[24].mxu0 %v4825_v17 }
 0x270   : > { %2338 = vmatprep.mubr.f32.mxu0 %v3798_v8 }
 0x273   : > { %2340 = vmatmul.mubr.f32.gmra.mrb[26].mxu0 %v4832_v39 }
 0x274   : > { %2345 = vmatprep.mubr.f32.mxu0 %v3798_v8 }
 0x277   : > { %2347 = vmatmul.mubr.f32.gmra.mrb[28].mxu0 %v4842_v7 }
 0x278   : > { %2352 = vmatprep.mubr.f32.mxu0 %v3798_v8 }
 0x27b   : > { %2354 = vmatmul.mubr.f32.gmra.mrb[30].mxu0 %v4853_v5 }
 0x27c   : > { %2428 = vmatprep.mubr.f32.mxu0 %v3798_v8 }
 0x27f   : > { %2430 = vmatmul.mubr.f32.vlgmr.msra.gmra.mrb[16].mxu0 %v4774_v25  ;;  %v3669_v25 = vld [vmem:[%s5150_s5 + $0xc0] ss:$8 sps:$4 sm:$0xff]  }
 0x280   : > { %2435 = vmatprep.mubr.f32.mxu0 %v3798_v8 }
 0x283   : > { %2437 = vmatmul.mubr.f32.gmra.mrb[18].mxu0 %v4781_v60  ;;  %v3677_v60 = vld [vmem:[%s5150_s5 + $0xe4] ss:$8 sps:$4 sm:$0xff]  }
 0x284   : > { %2442 = vmatprep.mubr.f32.mxu0 %v3798_v8 }
 0x287   : > { %2444 = vmatmul.mubr.f32.gmra.mrb[20].mxu0 %v4790_v1  ;;  %v3680_v1 = vld [vmem:[%s5150_s5 + $0xf4] ss:$8 sps:$4 sm:$0xff]  }
 0x288   : > { %2449 = vmatprep.mubr.f32.mxu0 %v3798_v8 }
 0x28b   : > { %2451 = vmatmul.mubr.f32.gmra.mrb[22].mxu0 %v4802_v63 }
 0x28c   : > { %2456 = vmatprep.mubr.f32.mxu0 %v3798_v8 }
 0x28f   : > { %2458 = vmatmul.mubr.f32.gmra.mrb[24].mxu0 %v4825_v17 }
 0x290   : > { %2463 = vmatprep.mubr.f32.mxu0 %v3798_v8 }
 0x293   : > { %2465 = vmatmul.mubr.f32.gmra.mrb[26].mxu0 %v4832_v39 }
 0x294   : > { %2470 = vmatprep.mubr.f32.mxu0 %v3798_v8 }
 0x297   : > { %2472 = vmatmul.mubr.f32.gmra.mrb[28].mxu0 %v4842_v7 }
 0x298   : > { %2477 = vmatprep.mubr.f32.mxu0 %v3798_v8  ;;  %v3668_v8 = vld [vmem:[%s5150_s5 + $0xb4] ss:$8 sps:$4 sm:$0xff]  }
 0x299   : > { %2771 = vmatprep.subr.bf16.mxu1 %v3668_v8 }
 0x29a   : > { %2772 = vmatpush1.bf16.msra.mxu1 %v3666_v22 }
 0x29b   : > { %2479 = vmatmul.mubr.f32.gmra.mrb[30].mxu0 %v4853_v5  ;;  %2773 = vmatprep.subr.bf16.mxu1 %v3671_v13  ;;  %v2510_v5 = vrot.slane %v2501_v33, %v5071_v44 }
 0x29e   : > { %2774 = vmatpush1.bf16.msra.mxu1 %v3669_v25 }
 0x29f   : > { %2775 = vmatprep.subr.bf16.mxu1 %v3674_v21 }
 0x2a2   : > { %2776 = vmatpush1.bf16.msra.mxu1 %v3672_v14 }
 0x2a3   : > { %2777 = vmatprep.subr.bf16.mxu1 %v3677_v60 }
 0x2a6   : > { %2778 = vmatpush1.bf16.msra.mxu1 %v3675_v54 }
 0x2a7   : > { %2779 = vmatprep.subr.bf16.mxu1 %v3680_v1 }
 0x2aa   : > { %2780 = vmatpush1.bf16.msra.mxu1 %v3678_v3 }
 0x352   : > { %v2431_v29 = vpop.f32.mrb[16].mxu0 }
 0x353   : > { %v2433_v63 = vpop.f32.mrb[17].mxu0  ;;  %v2485_v2 = vsub.f32 %v3689_v0, %v2431_v29 }
 0x354   : > { %v2486_v7 = vsub.f32 %v3690_v42, %v2433_v63 }
 0x356   : > { %v2438_v53 = vpop.f32.mrb[18].mxu0 }
 0x357   : > { %v2440_v15 = vpop.f32.mrb[19].mxu0  ;;  %v2487_v24 = vsub.f32 %v3691_v28, %v2438_v53 }
 0x358   : > { %v2488_v12 = vsub.f32 %v3692_v6, %v2440_v15 }
 0x35a   : > { %v2445_v17 = vpop.f32.mrb[20].mxu0 }
 0x35b   : > { %v2447_v48 = vpop.f32.mrb[21].mxu0  ;;  %v2489_v62 = vsub.f32 %v3693_v9, %v2445_v17 }
 0x35c   : > { %v2490_v55 = vsub.f32 %v3694_v20, %v2447_v48  ;;  %v2577_v48 = vld [vmem:[%s5151_s6] sm:$0x3] }
 0x35d   : > { %v2582_v56 = vrot.slane %v2577_v48, %v5066_v58 }
 0x35e   : > { %v2452_v52 = vpop.f32.mrb[22].mxu0 }
 0x35f   : > { %v2454_v39 = vpop.f32.mrb[23].mxu0  ;;  %v2491_v45 = vsub.f32 %v3695_v31, %v2452_v52  ;;  %v2586_v52 = vrot.slane %v2577_v48, %v5071_v44 }
 0x360   : > { %v2492_v8 = vsub.f32 %v3696_v41, %v2454_v39 }
 0x362   : > { %v2459_v57 = vpop.f32.mrb[24].mxu0 }
 0x363   : > { %v2493_v51 = vmul.f32 %v2485_v2, %v2459_v57  ;;  %v2461_v26 = vpop.f32.mrb[25].mxu0 }
 0x364   : > { %v2494_v35 = vmul.f32 %v2486_v7, %v2461_v26 }
 0x365   : > { %v2513_v16 = vmul.f32 %v2506_v59, %v2493_v51 }
 0x366   : > { %v2466_v4 = vpop.f32.mrb[26].mxu0  ;;  %v2514_v61 = vmul.f32 %v2510_v5, %v2494_v35 }
 0x367   : > { %v2495_v43 = vmul.f32 %v2487_v24, %v2466_v4  ;;  %v2468_v37 = vpop.f32.mrb[27].mxu0  ;;  %v2533_v30 = vadd.f32 %v2526_v46, %v2513_v16 }
 0x368   : > { %v2496_v49 = vmul.f32 %v2488_v12, %v2468_v37  ;;  %v2534_v11 = vadd.f32 %v2530_v38, %v2514_v61 }
 0x369   : > { %v2515_v27 = vmul.f32 %v2506_v59, %v2495_v43 }
 0x36a   : > { %v2516_v19 = vmul.f32 %v2510_v5, %v2496_v49  ;;  %v2473_v18 = vpop.f32.mrb[28].mxu0 }
 0x36b   : > { %v2535_v34 = vadd.f32 %v2526_v46, %v2515_v27  ;;  %v2497_v32 = vmul.f32 %v2489_v62, %v2473_v18  ;;  %v2475_v10 = vpop.f32.mrb[29].mxu0 }
 0x36c   : > { %v2536_v36 = vadd.f32 %v2530_v38, %v2516_v19  ;;  %v2498_v47 = vmul.f32 %v2490_v55, %v2475_v10 }
 0x36d   : > { %v2541_v40 = vpack.c.bf16 %v2535_v34, %v2533_v30  ;;  %v2517_v25 = vmul.f32 %v2506_v59, %v2497_v32 }
 0x36e   : > { %v2480_v22 = vpop.f32.mrb[30].mxu0  ;;  %v2542_v13 = vpack.c.bf16 %v2536_v36, %v2534_v11  ;;  %v2518_v60 = vmul.f32 %v2510_v5, %v2498_v47 }
 0x36f   : > { %v2499_v21 = vmul.f32 %v2491_v45, %v2480_v22  ;;  %v2482_v14 = vpop.f32.mrb[31].mxu0  ;;  %v2537_v29 = vadd.f32 %v2526_v46, %v2517_v25 }
 0x370   : > { %v2500_v54 = vmul.f32 %v2492_v8, %v2482_v14  ;;  %2781 = vmatprep.mubr.bf16.mxu1 %v2542_v13  ;;  %v2538_v53 = vadd.f32 %v2530_v38, %v2518_v60 }
 0x371   : > { %v2519_v1 = vmul.f32 %v2506_v59, %v2499_v21  ;;  %2782 = vmatmul.mubr.bf16.vlgmr.msra.gmra.mrb[80].mxu1 %v2541_v40 }
 0x372   : > { %v2520_v3 = vmul.f32 %v2510_v5, %v2500_v54 }
 0x373   : > { %v2539_v63 = vadd.f32 %v2526_v46, %v2519_v1 }
 0x374   : > { %v2540_v15 = vadd.f32 %v2530_v38, %v2520_v3 }
 0x375   : > { %v2543_v50 = vpack.c.bf16 %v2539_v63, %v2537_v29 }
 0x376   : > { %v2544_v17 = vpack.c.bf16 %v2540_v15, %v2538_v53 }
 0x378   : > { %2791 = vmatprep.mubr.bf16.mxu1 %v2544_v17 }
 0x379   : > { %2792 = vmatmul.mubr.bf16.gmra.mrb[84].mxu1 %v2543_v50 }
 0x444   : > { %v2783_v39 = vpop.f32.mrb[80].mxu1 }
 0x445   : > { %v2784_v33 = vadd.f32 %v2783_v39, %v2582_v56  ;;  %v2785_v0 = vpop.f32.mrb[81].mxu1 }
 0x446   : > { %v2786_v2 = vadd.f32 %v2785_v0, %v2586_v52  ;;  %v2787_v42 = vpop.f32.mrb[82].mxu1 }
 0x447   : > { %2802 = vst [vmem:[%s297_s11] sm:$0xff] %v2784_v33  ;;  %v2788_v7 = vadd.f32 %v2787_v42, %v2582_v56  ;;  %v2789_v57 = vpop.f32.mrb[83].mxu1 }
 0x448   : > { %2803 = vst [vmem:[%s297_s11 + $0x8] sm:$0xff] %v2786_v2  ;;  %v2790_v51 = vadd.f32 %v2789_v57, %v2586_v52 }
 0x449   : > { %2804 = vst [vmem:[%s297_s11 + $0x10] sm:$0xff] %v2788_v7 }
 0x44a   : > { %2805 = vst [vmem:[%s297_s11 + $0x18] sm:$0xff] %v2790_v51 }
 0x44c   : > { %v2793_v58 = vpop.f32.mrb[84].mxu1 }
 0x44d   : > { %v2794_v44 = vadd.f32 %v2793_v58, %v2582_v56  ;;  %v2795_v59 = vpop.f32.mrb[85].mxu1 }
 0x44e   : > { %v2796_v26 = vadd.f32 %v2795_v59, %v2586_v52  ;;  %v2797_v23 = vpop.f32.mrb[86].mxu1 }
 0x44f   : > { %2806 = vst [vmem:[%s297_s11 + $0x20] sm:$0xff] %v2794_v44  ;;  %v2798_v35 = vadd.f32 %v2797_v23, %v2582_v56  ;;  %v2799_v5 = vpop.f32.mrb[87].mxu1 }
 0x450   : > { %2807 = vst [vmem:[%s297_s11 + $0x28] sm:$0xff] %v2796_v26  ;;  %v2800_v28 = vadd.f32 %v2799_v5, %v2586_v52 }
 0x451   : > { %2808 = vst [vmem:[%s297_s11 + $0x30] sm:$0xff] %v2798_v35 }
 0x452   : > { %2809 = vst [vmem:[%s297_s11 + $0x38] sm:$0xff] %v2800_v28 }
 0x453   : > { %3740 = shalt.err (!%p3737_p2)
}
 0x454   : > { %s3741_s8 = scalar_lea.hbm %s5101_s23, 1024  ;;  %s3745_s11 = scalar_lea.hbm %s5152_s7, 2048 }
 0x455   : > { %p3742_p4 = scmp.ne.s32.totalorder %s5101_s23, %s3741_s8  ;;  %p3746_p9 = scmp.lt.u32.totalorder %s5101_s23, %s5152_s7 }
 0x456   : > { %p3747_p1 = scmp.lt.u32.totalorder %s3745_s11, %s3741_s8  ;;  %p3749_p6 = scmp.lt.u32.totalorder %s3741_s8, %s5101_s23 }
 0x457   : > { %p3743_p5 = pnand %p3742_p4, %p5385_p11 }
 0x458   : > { %p3748_p3 = por %p3747_p1, %p3746_p9 }
 0x459   : > { %p3744_p7 = pneg %p3743_p5 }
 0x45a   : > { %p3750_p12 = por %p3749_p6, %p3748_p3 }
 0x45c   : > { %p3751_p13 = pnand %p3750_p12, %p3744_p7 }
 0x45e   : > { %3754 = shalt.err (!%p3751_p13)
}
 0x45f   : > { %s3800_s22 = smov 256   ;;  %s3801_s29 = smov 16  }
 0x460   : > { %3584 = dma.vmem_to_hbm [thread:$0]  (%p5385_p11), %s5096_s18, 1024, %s5101_s23, %s2811_s28, %s3800_s22, %s3800_s22, %s3801_s29  }
 0x461 PF: > { %s2840_s19 = sand.u32 1, %s3781_s24   ;;  %p5386_p8 = scmp.ne.s32.totalorder %s5265_s14, 0 }
 0x462   : > { %p5387_p10 = scmp.ge.s32.totalorder %s3793_s27, 2  ;;  %s2841_s21 = scalar_lea.sflag [#allocation4], %s2840_s19 }
 0x464   : > { %p3591_p0 = pnand %p5387_p10, %p5386_p8 }
 0x466   : > { %3776 = dma.done.wait (!%p3591_p0), %s2841_s21, 1024  }
 0x467   : > { %3778 = vsyncadd (!%p3591_p0), %s2841_s21, 4294966272  ;;  %p20_p2 = scmp.ge.s32.totalorder %s3867_s30, 4   ;;  %s5388_s24 = smov %s3785_s25 }
 0x468   : > { %s5389_s25 = smov %s3789_s26  ;;  %s5390_s26 = smov %s3879_s10 }
 0x469   : > { %s5391_s27 = smov %s3867_s30  ;;  %22 = sbr.rel (!%p20_p2) target bundleno = 5 (0x5), region = 93 }
 0x470   :  { %2846 = vsyncpa [#allocation3], 1 }
 0x471   :  { %2848 = vsyncpa [#allocation3 + $0x1], 1 }
 0x472   :  { %2849 = vsyncpa [#allocation4], 1 }
 0x473   :  { %2851 = vsyncpa [#allocation4 + $0x1], 1 }

</bundles_post_ra>
